<compile_context>
chip_gen: v7x
topology: tpu7x:2x2x1
jax: 0.10.0
libtpu: 0.0.40
codegen_flags: <defaults>
</compile_context>

<pallas_src>
import functools

import jax
import jax.numpy as jnp
import numpy as np
from jax.experimental import pallas as pl
from jax.experimental.pallas import tpu as pltpu


# ------------------------------ fused kernel ------------------------------- #

def _bottleneck_kernel(xm_ref, xh_ref, w1_ref, b1_ref, w2_ref, b2_ref,
                       w3_ref, b3_ref, o_ref, a1_ref,
                       *, H, W, TH, dil, r_axis, cdt):
    """Fused bottleneck for one (image, row-block) tile.

    xm_ref : (TH, W, Cin)        main rows of the row-padded input
    xh_ref : (2*dil, W, Cin)     bottom halo rows of the row-padded input
    w1_ref : (Cin, P)            b1_ref : (1, P)      (BN scale folded into weights)
    w2_ref : (3, 3P, P)          b2_ref : (1, P)      (kw taps concatenated along K)
    w3_ref : (P, Cout)           b3_ref : (1, Cout)
    o_ref  : (TH, W, Cout)
    a1_ref : (TH + 2*dil, W + 2*dil, P)  VMEM scratch in the compute dtype
             (conv1 output incl. halo rows and the 3x3 conv's zero padding)
    """
    Cin = xm_ref.shape[-1]
    P = w1_ref.shape[1]
    Cout = w3_ref.shape[1]
    m = 2 * dil
    r = pl.program_id(r_axis)
    g0 = r * TH - dil                       # image row of a1 row 0 (may be <0 / >=H)

    w1 = w1_ref[...]
    b1 = b1_ref[...]

    def conv1_piece(x_piece, n_rows, i0):
        # 1x1 conv + bias + ReLU.  Rows outside the image (the 3x3 conv's zero
        # padding and the tile-alignment pad) are zeroed with a cheap row mask
        # built from a single dim-0 iota (no div/mod, no column masking).
        y = jnp.dot(x_piece.reshape(n_rows * W, Cin), w1,
                    preferred_element_type=jnp.float32)
        y = jnp.maximum(y + b1, 0.0)
        f = jax.lax.broadcasted_iota(jnp.int32, (n_rows * W, P), 0)
        lo = (0 - (g0 + i0)) * W            # flat index of image row 0
        hi = (H - (g0 + i0)) * W            # flat index just past image row H-1
        y = jnp.where((f >= lo) & (f < hi), y, 0.0)
        return y.astype(cdt).reshape(n_rows, W, P)

    # conv1 output (+ halo rows) into the VMEM scratch; pad columns are zeros.
    a1_ref[0:TH, dil:dil + W, :] = conv1_piece(xm_ref[...], TH, 0)
    a1_ref[TH:TH + m, dil:dil + W, :] = conv1_piece(xh_ref[...], m, TH)
    zcol = jnp.zeros((TH + m, dil, P), cdt)
    a1_ref[:, 0:dil, :] = zcol
    a1_ref[:, dil + W:, :] = zcol

    # conv2: 3x3 dilated conv as three matmuls with K = 3*P (kw taps concatenated
    # along K, matching the host-side w2 regrouping); accumulate in vregs.
    acc = None
    for kh in range(3):
        a_kh = a1_ref[kh * dil:kh * dil + TH, :, :]          # (TH, W+2dil, P)
        x_kh = jnp.concatenate(
            [a_kh[:, kw * dil:kw * dil + W, :] for kw in range(3)],
            axis=-1).reshape(TH * W, 3 * P)
        c = jnp.dot(x_kh, w2_ref[kh], preferred_element_type=jnp.float32)
        acc = c if acc is None else acc + c
    a2 = jnp.maximum(acc + b2_ref[...], 0.0).astype(cdt)

    # conv3 + identity residual + ReLU.  The residual rows are rebuilt from the
    # xm/xh blocks already on chip (no third HBM input stream).
    res = jnp.concatenate([xm_ref[dil:TH, :, :], xh_ref[0:dil, :, :]], axis=0)
    res = res.reshape(TH * W, Cout).astype(jnp.float32)
    y = jnp.dot(a2, w3_ref[...], preferred_element_type=jnp.float32)
    y = jnp.maximum(y + b3_ref[...] + res, 0.0)
    o_ref[...] = y.reshape(TH, W, Cout).astype(o_ref.dtype)


# ------------------------------ host wrapper -------------------------------- #

def bottleneck_forward(x, params, *, stride=1, dilation=1,
                       compute_dtype=jnp.float32, max_tile_rows=None,
                       channels_last=False):
    """Equivalent of Bottleneck.forward with downsample=None (identity residual)."""
    # TODO(synk): stride > 1 / downsample branch not implemented (downsample=None).
    assert stride == 1, "identity residual requires stride == 1"
    if channels_last:
        N, H, W, Cin = x.shape
    else:
        N, Cin, H, W = x.shape
    P = params["w1"].shape[1]
    Cout = params["w3"].shape[1]
    assert Cin == 4 * P and Cout == Cin
    dil = int(dilation)
    m = 2 * dil
    # NOTE: for best layouts W should be a multiple of 8 (16 for bf16); correctness
    # does not depend on it.

    # Fold BN scales into the conv weights host-side; the kernel only adds a
    # per-channel bias and applies ReLU.  w2 is regrouped to (3, 3P, P): for each
    # kh, the three kw taps are concatenated along the contraction dim.
    s1 = params["s1"].reshape(-1).astype(jnp.float32)
    s2 = params["s2"].reshape(-1).astype(jnp.float32)
    s3 = params["s3"].reshape(-1).astype(jnp.float32)
    w1 = (params["w1"].astype(jnp.float32) * s1[None, :]).astype(compute_dtype)
    w2 = (params["w2"].astype(jnp.float32) * s2[None, None, :])
    w2 = w2.reshape(3, 3 * P, P).astype(compute_dtype)
    w3 = (params["w3"].astype(jnp.float32) * s3[None, :]).astype(compute_dtype)
    b1 = params["b1"].reshape(1, P).astype(jnp.float32)
    b2 = params["b2"].reshape(1, P).astype(jnp.float32)
    b3 = params["b3"].reshape(1, Cout).astype(jnp.float32)

    # Row tile: whole image when it fits a conservative per-step VMEM budget
    # (fewer grid steps, less halo re-read); multiple of 2*dil so the halo blocks
    # stay block-aligned.
    itm = jnp.dtype(compute_dtype).itemsize
    per_row = (2 * W * Cin * itm            # xm input block (double-buffered)
               + 2 * W * Cout * itm         # output block (double-buffered)
               + (W + m) * P * itm          # a1 scratch
               + W * 3 * P * itm            # conv2 im2col working set
               + W * P * 4)                 # conv2 f32 accumulator (vregs/spill)
    budget = 12 * 1024 * 1024
    th_wish = pl.cdiv(H, m) * m
    th_fit = max(m, (budget // per_row) // m * m)
    TH = min(th_wish, th_fit, max(m, (256 // m) * m))
    if max_tile_rows is not None:
        TH = min(TH, max(m, (int(max_tile_rows) // m) * m))
    H_pad = pl.cdiv(H, TH) * TH
    R = H_pad // TH
    hstep = TH // m                         # halo block-index stride

    # NHWC, single row-only pad: `dil` zero rows on top (3x3 conv padding) and
    # dil + (H_pad - H) on the bottom (conv padding + tile alignment).  No width
    # pad: the 3x3 conv's column padding lives in the VMEM scratch.
    x_nhwc = x if channels_last else jnp.transpose(x, (0, 2, 3, 1))
    xp = jnp.pad(x_nhwc.astype(compute_dtype),
                 ((0, 0), (dil, dil + H_pad - H), (0, 0), (0, 0)))

    # Put the larger parallel extent first so the grid can shard across both
    # TensorCores on v7x even when N == 1.
    if N >= R:
        grid, r_axis = (N, R), 1
        def nr(a, b):
            return a, b
    else:
        grid, r_axis = (R, N), 0
        def nr(a, b):
            return b, a

    def im_x(a, b):
        n, r = nr(a, b)
        return (n, r, 0, 0)

    def im_halo(a, b):
        n, r = nr(a, b)
        return (n, (r + 1) * hstep, 0, 0)

    def im_w(a, b):
        return (0, 0)

    def im_w2(a, b):
        return (0, 0, 0)

    # Explicit VMEM limit (v7x has 64 MiB physical; the 32 MiB scoped default can
    # be too small once TH grows).  Generous headroom, capped below 64 MiB.
    step_bytes = per_row * TH + 2 * m * W * Cin * itm
    step_bytes += 2 * (Cin * P + 3 * 3 * P * P + P * Cout) * itm
    step_bytes += 2 * (2 * P + Cout) * 4
    vmem_limit = int(min(max(2 * step_bytes, 32 << 20), 56 << 20))

    kernel = functools.partial(_bottleneck_kernel, H=H, W=W, TH=TH, dil=dil,
                               r_axis=r_axis, cdt=compute_dtype)

    out = pl.pallas_call(
        kernel,
        out_shape=jax.ShapeDtypeStruct((N, H_pad, W, Cout), compute_dtype),
        grid=grid,
        in_specs=[
            # main rows of the row-padded input: padded rows [r*TH, r*TH + TH)
            pl.BlockSpec((None, TH, W, Cin), im_x),
            # bottom halo: padded rows [(r+1)*TH, (r+1)*TH + 2*dil)
            pl.BlockSpec((None, m, W, Cin), im_halo),
            # weights / biases: same block every step -> stay VMEM-resident
            pl.BlockSpec((Cin, P), im_w),
            pl.BlockSpec((1, P), im_w),
            pl.BlockSpec((3, 3 * P, P), im_w2),
            pl.BlockSpec((1, P), im_w),
            pl.BlockSpec((P, Cout), im_w),
            pl.BlockSpec((1, Cout), im_w),
        ],
        out_specs=pl.BlockSpec((None, TH, W, Cout), im_x),
        scratch_shapes=[
            pltpu.VMEM((TH + m, W + m, P), compute_dtype),   # conv1 out + halo + pad
        ],
        compiler_params=pltpu.CompilerParams(
            dimension_semantics=("parallel", "parallel"),
            vmem_limit_bytes=vmem_limit),
    )(xp, xp, w1, b1, w2, b2, w3, b3)

    out = out[:, :H]                                   # drop tile-alignment rows
    return out if channels_last else jnp.transpose(out, (0, 3, 1, 2))


# ------------------------------ reference ----------------------------------- #

def bottleneck_reference(x_nchw, p, *, dilation=1):
    x = jnp.transpose(x_nchw, (0, 2, 3, 1)).astype(jnp.float32)

    def conv(v, w_hwio, dil=1, pad=0):
        return jax.lax.conv_general_dilated(
            v, w_hwio, window_strides=(1, 1),
            padding=[(pad, pad), (pad, pad)],
            rhs_dilation=(dil, dil),
            dimension_numbers=("NHWC", "HWIO", "NHWC"))

    o = conv(x, p["w1"].reshape(1, 1, *p["w1"].shape))
    o = jnp.maximum(o * p["s1"] + p["b1"], 0.0)
    w2 = p["w2"].reshape(3, 3, p["w2"].shape[1], p["w2"].shape[2])
    o = conv(o, w2, dil=dilation, pad=dilation)
    o = jnp.maximum(o * p["s2"] + p["b2"], 0.0)
    o = conv(o, p["w3"].reshape(1, 1, *p["w3"].shape))
    o = jnp.maximum(o * p["s3"] + p["b3"] + x, 0.0)
    return jnp.transpose(o, (0, 3, 1, 2))


# --------------------------------- main -------------------------------------- #

if __name__ == "__main__":

    def bn_fold(k, c, eps=1e-5):
        kg, kb, km, kv = jax.random.split(k, 4)
        gamma = 1.0 + 0.1 * jax.random.normal(kg, (c,), jnp.float32)
        beta = 0.1 * jax.random.normal(kb, (c,), jnp.float32)
        mean = 0.1 * jax.random.normal(km, (c,), jnp.float32)
        var = 1.0 + 0.1 * jax.random.uniform(kv, (c,), jnp.float32)
        scale = gamma * jax.lax.rsqrt(var + eps)
        bias = beta - mean * scale
        return scale.reshape(1, c), bias.reshape(1, c)

    def make_params(key, inplanes, planes):
        ks = jax.random.split(key, 6)
        w1 = 0.1 * jax.random.normal(ks[0], (inplanes, planes), jnp.float32)
        w2 = 0.1 * jax.random.normal(ks[1], (9, planes, planes), jnp.float32)
        w3 = 0.1 * jax.random.normal(ks[2], (planes, 4 * planes), jnp.float32)
        s1, b1 = bn_fold(ks[3], planes)
        s2, b2 = bn_fold(ks[4], planes)
        s3, b3 = bn_fold(ks[5], 4 * planes)
        return dict(w1=w1, w2=w2, w3=w3,
                    s1=s1, b1=b1, s2=s2, b2=b2, s3=s3, b3=b3)

    def check(N, planes, H, W, dilation, compute_dtype, tol, max_tile_rows=None):
        kx, kp = jax.random.split(jax.random.PRNGKey(0), 2)
        inplanes = 4 * planes
        x = jax.random.normal(kx, (N, inplanes, H, W), jnp.float32)
        params = make_params(kp, inplanes, planes)
        out = bottleneck_forward(x, params, stride=1, dilation=dilation,
                                 compute_dtype=compute_dtype,
                                 max_tile_rows=max_tile_rows)
        out = jax.block_until_ready(out)
        assert out.shape == (N, inplanes, H, W)
        ref = bottleneck_reference(x, params, dilation=dilation)
        np.testing.assert_allclose(np.asarray(out.astype(jnp.float32)),
                                   np.asarray(ref), atol=tol, rtol=tol)

    # f32 compute, lane-dense Cout = 128, dilation 1, whole-image row tile (R=1).
    check(N=2, planes=32, H=16, W=16, dilation=1,
          compute_dtype=jnp.float32, tol=5e-3)
    # bf16 activations / weights / conv1 scratch with f32 accumulation.
    check(N=2, planes=32, H=16, W=16, dilation=1,
          compute_dtype=jnp.bfloat16, tol=5e-2)
    # dilation=2 with H not a multiple of 8 (row-pad / mask path).
    check(N=1, planes=32, H=12, W=16, dilation=2,
          compute_dtype=jnp.float32, tol=5e-3)
    # multi row-block path: halo re-read, bottom-row masking, swapped grid (R > N).
    check(N=1, planes=32, H=20, W=16, dilation=1,
          compute_dtype=jnp.float32, tol=5e-3, max_tile_rows=8)
    check(N=2, planes=32, H=12, W=16, dilation=2,
          compute_dtype=jnp.float32, tol=5e-3, max_tile_rows=4)

    print("KERNEL_OK")
</pallas_src>

<mosaic_0001>
module attributes {stable_mosaic.version = 11 : i64} {
  func.func @_bottleneck_kernel(%arg0: i32, %arg1: i32, %arg2: memref<1x16x16x128xf32, #tpu.memory_space<vmem>>, %arg3: memref<1x2x16x128xf32, #tpu.memory_space<vmem>>, %arg4: memref<128x32xf32, #tpu.memory_space<vmem>>, %arg5: memref<1x32xf32, #tpu.memory_space<vmem>>, %arg6: memref<3x96x32xf32, #tpu.memory_space<vmem>>, %arg7: memref<1x32xf32, #tpu.memory_space<vmem>>, %arg8: memref<32x128xf32, #tpu.memory_space<vmem>>, %arg9: memref<1x128xf32, #tpu.memory_space<vmem>>, %arg10: memref<1x16x16x128xf32, #tpu.memory_space<vmem>>, %arg11: memref<18x18x32xf32, #tpu.memory_space<vmem>>) attributes {dimension_semantics = [#tpu.dimension_semantics<parallel>, #tpu.dimension_semantics<parallel>], iteration_bounds = array<i64: 2, 1>, scalar_prefetch = 0 : i64, scratch_operands = 1 : i64, tpu.core_type = #tpu.core_type<tc>, window_params = [{transform_indices = @transform_0, window_bounds = array<i64: 1, 16, 16, 128>}, {transform_indices = @transform_1, window_bounds = array<i64: 1, 2, 16, 128>}, {pipeline_mode = #tpu.pipeline_mode<synchronous>, transform_indices = @transform_2, window_bounds = array<i64: 128, 32>}, {pipeline_mode = #tpu.pipeline_mode<synchronous>, transform_indices = @transform_3, window_bounds = array<i64: 1, 32>}, {pipeline_mode = #tpu.pipeline_mode<synchronous>, transform_indices = @transform_4, window_bounds = array<i64: 3, 96, 32>}, {pipeline_mode = #tpu.pipeline_mode<synchronous>, transform_indices = @transform_5, window_bounds = array<i64: 1, 32>}, {pipeline_mode = #tpu.pipeline_mode<synchronous>, transform_indices = @transform_6, window_bounds = array<i64: 32, 128>}, {pipeline_mode = #tpu.pipeline_mode<synchronous>, transform_indices = @transform_7, window_bounds = array<i64: 1, 128>}, {transform_indices = @transform_8, window_bounds = array<i64: 1, 16, 16, 128>}]} {
    %c16_i32 = arith.constant 16 : i32
    %0 = arith.muli %arg1, %c16_i32 : i32
    %c1_i32 = arith.constant 1 : i32
    %1 = arith.subi %0, %c1_i32 : i32
    %c0 = arith.constant 0 : index
    %c0_0 = arith.constant 0 : index
    %2 = vector.load %arg4[%c0, %c0_0] : memref<128x32xf32, #tpu.memory_space<vmem>>, vector<128x32xf32>
    %c0_1 = arith.constant 0 : index
    %c0_2 = arith.constant 0 : index
    %3 = vector.load %arg5[%c0_1, %c0_2] : memref<1x32xf32, #tpu.memory_space<vmem>>, vector<1x32xf32>
    %c0_3 = arith.constant 0 : index
    %c0_4 = arith.constant 0 : index
    %c0_5 = arith.constant 0 : index
    %c0_6 = arith.constant 0 : index
    %4 = vector.load %arg2[%c0_3, %c0_4, %c0_5, %c0_6] : memref<1x16x16x128xf32, #tpu.memory_space<vmem>>, vector<1x16x16x128xf32>
    %5 = vector.shape_cast %4 : vector<1x16x16x128xf32> to vector<16x16x128xf32>
    %6 = vector.shape_cast %5 : vector<16x16x128xf32> to vector<256x128xf32>
    %cst = arith.constant dense<0.000000e+00> : vector<256x32xf32>
    %7 = tpu.matmul %6, %2, %cst {dimension_numbers = #tpu.dot_dimension_numbers<[1], [0], [0], [1], [0, 0, 1, 1], [], []>} : vector<256x128xf32>, vector<128x32xf32>, vector<256x32xf32> -> vector<256x32xf32>
    %8 = vector.broadcast %3 : vector<1x32xf32> to vector<256x32xf32>
    %9 = arith.addf %7, %8 : vector<256x32xf32>
    %cst_7 = arith.constant 0.000000e+00 : f32
    %10 = vector.broadcast %cst_7 : f32 to vector<256x32xf32>
    %11 = arith.maximumf %9, %10 : vector<256x32xf32>
    %12 = tpu.iota {dimensions = array<i32: 0>} : vector<256x32xi32>
    %c0_i32 = arith.constant 0 : i32
    %13 = arith.addi %1, %c0_i32 : i32
    %c0_i32_8 = arith.constant 0 : i32
    %14 = arith.subi %c0_i32_8, %13 : i32
    %c16_i32_9 = arith.constant 16 : i32
    %15 = arith.muli %14, %c16_i32_9 : i32
    %c0_i32_10 = arith.constant 0 : i32
    %16 = arith.addi %1, %c0_i32_10 : i32
    %c16_i32_11 = arith.constant 16 : i32
    %17 = arith.subi %c16_i32_11, %16 : i32
    %c16_i32_12 = arith.constant 16 : i32
    %18 = arith.muli %17, %c16_i32_12 : i32
    %19 = vector.broadcast %15 : i32 to vector<256x32xi32>
    %20 = arith.cmpi sge, %12, %19 : vector<256x32xi32>
    %21 = vector.broadcast %18 : i32 to vector<256x32xi32>
    %22 = arith.cmpi slt, %12, %21 : vector<256x32xi32>
    %23 = arith.andi %20, %22 : vector<256x32xi1>
    %cst_13 = arith.constant 0.000000e+00 : f32
    %24 = vector.broadcast %cst_13 : f32 to vector<256x32xf32>
    %25 = arith.select %23, %11, %24 : vector<256x32xi1>, vector<256x32xf32>
    %26 = vector.shape_cast %25 : vector<256x32xf32> to vector<16x16x32xf32>
    %c0_14 = arith.constant 0 : index
    %c1 = arith.constant 1 : index
    %c0_15 = arith.constant 0 : index
    %27 = vector.load %arg11[%c0_14, %c1, %c0_15] : memref<18x18x32xf32, #tpu.memory_space<vmem>>, vector<16x16x32xf32>
    tpu.vector_store %arg11[%c0_14, %c1, %c0_15], %26 {strides = array<i32>} : memref<18x18x32xf32, #tpu.memory_space<vmem>>, vector<16x16x32xf32>,
    %c0_16 = arith.constant 0 : index
    %c0_17 = arith.constant 0 : index
    %c0_18 = arith.constant 0 : index
    %c0_19 = arith.constant 0 : index
    %28 = vector.load %arg3[%c0_16, %c0_17, %c0_18, %c0_19] : memref<1x2x16x128xf32, #tpu.memory_space<vmem>>, vector<1x2x16x128xf32>
    %29 = vector.shape_cast %28 : vector<1x2x16x128xf32> to vector<2x16x128xf32>
    %30 = vector.shape_cast %29 : vector<2x16x128xf32> to vector<32x128xf32>
    %cst_20 = arith.constant dense<0.000000e+00> : vector<32x32xf32>
    %31 = tpu.matmul %30, %2, %cst_20 {dimension_numbers = #tpu.dot_dimension_numbers<[1], [0], [0], [1], [0, 0, 1, 1], [], []>} : vector<32x128xf32>, vector<128x32xf32>, vector<32x32xf32> -> vector<32x32xf32>
    %32 = vector.broadcast %3 : vector<1x32xf32> to vector<32x32xf32>
    %33 = arith.addf %31, %32 : vector<32x32xf32>
    %cst_21 = arith.constant 0.000000e+00 : f32
    %34 = vector.broadcast %cst_21 : f32 to vector<32x32xf32>
    %35 = arith.maximumf %33, %34 : vector<32x32xf32>
    %36 = tpu.iota {dimensions = array<i32: 0>} : vector<32x32xi32>
    %c16_i32_22 = arith.constant 16 : i32
    %37 = arith.addi %1, %c16_i32_22 : i32
    %c0_i32_23 = arith.constant 0 : i32
    %38 = arith.subi %c0_i32_23, %37 : i32
    %c16_i32_24 = arith.constant 16 : i32
    %39 = arith.muli %38, %c16_i32_24 : i32
    %c16_i32_25 = arith.constant 16 : i32
    %40 = arith.addi %1, %c16_i32_25 : i32
    %c16_i32_26 = arith.constant 16 : i32
    %41 = arith.subi %c16_i32_26, %40 : i32
    %c16_i32_27 = arith.constant 16 : i32
    %42 = arith.muli %41, %c16_i32_27 : i32
    %43 = vector.broadcast %39 : i32 to vector<32x32xi32>
    %44 = arith.cmpi sge, %36, %43 : vector<32x32xi32>
    %45 = vector.broadcast %42 : i32 to vector<32x32xi32>
    %46 = arith.cmpi slt, %36, %45 : vector<32x32xi32>
    %47 = arith.andi %44, %46 : vector<32x32xi1>
    %cst_28 = arith.constant 0.000000e+00 : f32
    %48 = vector.broadcast %cst_28 : f32 to vector<32x32xf32>
    %49 = arith.select %47, %35, %48 : vector<32x32xi1>, vector<32x32xf32>
    %50 = vector.shape_cast %49 : vector<32x32xf32> to vector<2x16x32xf32>
    %c16 = arith.constant 16 : index
    %c1_29 = arith.constant 1 : index
    %c0_30 = arith.constant 0 : index
    %51 = vector.load %arg11[%c16, %c1_29, %c0_30] : memref<18x18x32xf32, #tpu.memory_space<vmem>>, vector<2x16x32xf32>
    tpu.vector_store %arg11[%c16, %c1_29, %c0_30], %50 {strides = array<i32>} : memref<18x18x32xf32, #tpu.memory_space<vmem>>, vector<2x16x32xf32>,
    %cst_31 = arith.constant 0.000000e+00 : f32
    %52 = vector.broadcast %cst_31 : f32 to vector<18x1x32xf32>
    %c0_32 = arith.constant 0 : index
    %c0_33 = arith.constant 0 : index
    %c0_34 = arith.constant 0 : index
    %53 = vector.load %arg11[%c0_32, %c0_33, %c0_34] : memref<18x18x32xf32, #tpu.memory_space<vmem>>, vector<18x1x32xf32>
    tpu.vector_store %arg11[%c0_32, %c0_33, %c0_34], %52 {strides = array<i32>} : memref<18x18x32xf32, #tpu.memory_space<vmem>>, vector<18x1x32xf32>,
    %c0_35 = arith.constant 0 : index
    %c17 = arith.constant 17 : index
    %c0_36 = arith.constant 0 : index
    %54 = vector.load %arg11[%c0_35, %c17, %c0_36] : memref<18x18x32xf32, #tpu.memory_space<vmem>>, vector<18x1x32xf32>
    tpu.vector_store %arg11[%c0_35, %c17, %c0_36], %52 {strides = array<i32>} : memref<18x18x32xf32, #tpu.memory_space<vmem>>, vector<18x1x32xf32>,
    %c0_37 = arith.constant 0 : index
    %c0_38 = arith.constant 0 : index
    %c0_39 = arith.constant 0 : index
    %55 = vector.load %arg11[%c0_37, %c0_38, %c0_39] : memref<18x18x32xf32, #tpu.memory_space<vmem>>, vector<16x18x32xf32>
    %56 = vector.extract_strided_slice %55 {offsets = [0, 0, 0], sizes = [16, 16, 32], strides = [1, 1, 1]} : vector<16x18x32xf32> to vector<16x16x32xf32>
    %57 = vector.extract_strided_slice %55 {offsets = [0, 1, 0], sizes = [16, 16, 32], strides = [1, 1, 1]} : vector<16x18x32xf32> to vector<16x16x32xf32>
    %58 = vector.extract_strided_slice %55 {offsets = [0, 2, 0], sizes = [16, 16, 32], strides = [1, 1, 1]} : vector<16x18x32xf32> to vector<16x16x32xf32>
    %59 = tpu.concatenate %56, %57, %58 in 2 : vector<16x16x32xf32>, vector<16x16x32xf32>, vector<16x16x32xf32> -> vector<16x16x96xf32>
    %60 = vector.shape_cast %59 : vector<16x16x96xf32> to vector<256x96xf32>
    %c0_40 = arith.constant 0 : index
    %c0_41 = arith.constant 0 : index
    %c0_42 = arith.constant 0 : index
    %61 = vector.load %arg6[%c0_40, %c0_41, %c0_42] : memref<3x96x32xf32, #tpu.memory_space<vmem>>, vector<1x96x32xf32>
    %62 = vector.shape_cast %61 : vector<1x96x32xf32> to vector<96x32xf32>
    %cst_43 = arith.constant dense<0.000000e+00> : vector<256x32xf32>
    %63 = tpu.matmul %60, %62, %cst_43 {dimension_numbers = #tpu.dot_dimension_numbers<[1], [0], [0], [1], [0, 0, 1, 1], [], []>} : vector<256x96xf32>, vector<96x32xf32>, vector<256x32xf32> -> vector<256x32xf32>
    %c1_44 = arith.constant 1 : index
    %c0_45 = arith.constant 0 : index
    %c0_46 = arith.constant 0 : index
    %64 = vector.load %arg11[%c1_44, %c0_45, %c0_46] : memref<18x18x32xf32, #tpu.memory_space<vmem>>, vector<16x18x32xf32>
    %65 = vector.extract_strided_slice %64 {offsets = [0, 0, 0], sizes = [16, 16, 32], strides = [1, 1, 1]} : vector<16x18x32xf32> to vector<16x16x32xf32>
    %66 = vector.extract_strided_slice %64 {offsets = [0, 1, 0], sizes = [16, 16, 32], strides = [1, 1, 1]} : vector<16x18x32xf32> to vector<16x16x32xf32>
    %67 = vector.extract_strided_slice %64 {offsets = [0, 2, 0], sizes = [16, 16, 32], strides = [1, 1, 1]} : vector<16x18x32xf32> to vector<16x16x32xf32>
    %68 = tpu.concatenate %65, %66, %67 in 2 : vector<16x16x32xf32>, vector<16x16x32xf32>, vector<16x16x32xf32> -> vector<16x16x96xf32>
    %69 = vector.shape_cast %68 : vector<16x16x96xf32> to vector<256x96xf32>
    %c1_47 = arith.constant 1 : index
    %c0_48 = arith.constant 0 : index
    %c0_49 = arith.constant 0 : index
    %70 = vector.load %arg6[%c1_47, %c0_48, %c0_49] : memref<3x96x32xf32, #tpu.memory_space<vmem>>, vector<1x96x32xf32>
    %71 = vector.shape_cast %70 : vector<1x96x32xf32> to vector<96x32xf32>
    %cst_50 = arith.constant dense<0.000000e+00> : vector<256x32xf32>
    %72 = tpu.matmul %69, %71, %cst_50 {dimension_numbers = #tpu.dot_dimension_numbers<[1], [0], [0], [1], [0, 0, 1, 1], [], []>} : vector<256x96xf32>, vector<96x32xf32>, vector<256x32xf32> -> vector<256x32xf32>
    %73 = arith.addf %63, %72 : vector<256x32xf32>
    %c2 = arith.constant 2 : index
    %c0_51 = arith.constant 0 : index
    %c0_52 = arith.constant 0 : index
    %74 = vector.load %arg11[%c2, %c0_51, %c0_52] : memref<18x18x32xf32, #tpu.memory_space<vmem>>, vector<16x18x32xf32>
    %75 = vector.extract_strided_slice %74 {offsets = [0, 0, 0], sizes = [16, 16, 32], strides = [1, 1, 1]} : vector<16x18x32xf32> to vector<16x16x32xf32>
    %76 = vector.extract_strided_slice %74 {offsets = [0, 1, 0], sizes = [16, 16, 32], strides = [1, 1, 1]} : vector<16x18x32xf32> to vector<16x16x32xf32>
    %77 = vector.extract_strided_slice %74 {offsets = [0, 2, 0], sizes = [16, 16, 32], strides = [1, 1, 1]} : vector<16x18x32xf32> to vector<16x16x32xf32>
    %78 = tpu.concatenate %75, %76, %77 in 2 : vector<16x16x32xf32>, vector<16x16x32xf32>, vector<16x16x32xf32> -> vector<16x16x96xf32>
    %79 = vector.shape_cast %78 : vector<16x16x96xf32> to vector<256x96xf32>
    %c2_53 = arith.constant 2 : index
    %c0_54 = arith.constant 0 : index
    %c0_55 = arith.constant 0 : index
    %80 = vector.load %arg6[%c2_53, %c0_54, %c0_55] : memref<3x96x32xf32, #tpu.memory_space<vmem>>, vector<1x96x32xf32>
    %81 = vector.shape_cast %80 : vector<1x96x32xf32> to vector<96x32xf32>
    %cst_56 = arith.constant dense<0.000000e+00> : vector<256x32xf32>
    %82 = tpu.matmul %79, %81, %cst_56 {dimension_numbers = #tpu.dot_dimension_numbers<[1], [0], [0], [1], [0, 0, 1, 1], [], []>} : vector<256x96xf32>, vector<96x32xf32>, vector<256x32xf32> -> vector<256x32xf32>
    %83 = arith.addf %73, %82 : vector<256x32xf32>
    %c0_57 = arith.constant 0 : index
    %c0_58 = arith.constant 0 : index
    %84 = vector.load %arg7[%c0_57, %c0_58] : memref<1x32xf32, #tpu.memory_space<vmem>>, vector<1x32xf32>
    %85 = vector.broadcast %84 : vector<1x32xf32> to vector<256x32xf32>
    %86 = arith.addf %83, %85 : vector<256x32xf32>
    %cst_59 = arith.constant 0.000000e+00 : f32
    %87 = vector.broadcast %cst_59 : f32 to vector<256x32xf32>
    %88 = arith.maximumf %86, %87 : vector<256x32xf32>
    %c0_60 = arith.constant 0 : index
    %c1_61 = arith.constant 1 : index
    %c0_62 = arith.constant 0 : index
    %c0_63 = arith.constant 0 : index
    %89 = vector.load %arg2[%c0_60, %c1_61, %c0_62, %c0_63] : memref<1x16x16x128xf32, #tpu.memory_space<vmem>>, vector<1x15x16x128xf32>
    %90 = vector.shape_cast %89 : vector<1x15x16x128xf32> to vector<15x16x128xf32>
    %c0_64 = arith.constant 0 : index
    %c0_65 = arith.constant 0 : index
    %c0_66 = arith.constant 0 : index
    %c0_67 = arith.constant 0 : index
    %91 = vector.load %arg3[%c0_64, %c0_65, %c0_66, %c0_67] : memref<1x2x16x128xf32, #tpu.memory_space<vmem>>, vector<1x1x16x128xf32>
    %92 = vector.shape_cast %91 : vector<1x1x16x128xf32> to vector<1x16x128xf32>
    %93 = tpu.concatenate %90, %92 in 0 : vector<15x16x128xf32>, vector<1x16x128xf32> -> vector<16x16x128xf32>
    %94 = vector.shape_cast %93 : vector<16x16x128xf32> to vector<256x128xf32>
    %c0_68 = arith.constant 0 : index
    %c0_69 = arith.constant 0 : index
    %95 = vector.load %arg8[%c0_68, %c0_69] : memref<32x128xf32, #tpu.memory_space<vmem>>, vector<32x128xf32>
    %cst_70 = arith.constant dense<0.000000e+00> : vector<256x128xf32>
    %96 = tpu.matmul %88, %95, %cst_70 {dimension_numbers = #tpu.dot_dimension_numbers<[1], [0], [0], [1], [0, 0, 1, 1], [], []>} : vector<256x32xf32>, vector<32x128xf32>, vector<256x128xf32> -> vector<256x128xf32>
    %c0_71 = arith.constant 0 : index
    %c0_72 = arith.constant 0 : index
    %97 = vector.load %arg9[%c0_71, %c0_72] : memref<1x128xf32, #tpu.memory_space<vmem>>, vector<1x128xf32>
    %98 = vector.broadcast %97 : vector<1x128xf32> to vector<256x128xf32>
    %99 = arith.addf %96, %98 : vector<256x128xf32>
    %100 = arith.addf %99, %94 : vector<256x128xf32>
    %cst_73 = arith.constant 0.000000e+00 : f32
    %101 = vector.broadcast %cst_73 : f32 to vector<256x128xf32>
    %102 = arith.maximumf %100, %101 : vector<256x128xf32>
    %103 = vector.shape_cast %102 : vector<256x128xf32> to vector<16x16x128xf32>
    %c0_74 = arith.constant 0 : index
    %c0_75 = arith.constant 0 : index
    %c0_76 = arith.constant 0 : index
    %c0_77 = arith.constant 0 : index
    %104 = vector.load %arg10[%c0_74, %c0_75, %c0_76, %c0_77] : memref<1x16x16x128xf32, #tpu.memory_space<vmem>>, vector<1x16x16x128xf32>
    %105 = vector.shape_cast %104 : vector<1x16x16x128xf32> to vector<16x16x128xf32>
    %106 = vector.shape_cast %103 : vector<16x16x128xf32> to vector<1x16x16x128xf32>
    tpu.vector_store %arg10[%c0_74, %c0_75, %c0_76, %c0_77], %106 {strides = array<i32>} : memref<1x16x16x128xf32, #tpu.memory_space<vmem>>, vector<1x16x16x128xf32>,
    return
  }
  func.func @transform_0(%arg0: i32, %arg1: i32) -> (i32, i32, i32, i32) {
    %c0_i32 = arith.constant 0 : i32
    %c0_i32_0 = arith.constant 0 : i32
    %c0_i32_1 = arith.constant 0 : i32
    return %arg0, %arg1, %c0_i32, %c0_i32_0 : i32, i32, i32, i32
  }
  func.func @transform_1(%arg0: i32, %arg1: i32) -> (i32, i32, i32, i32) {
    %c1_i32 = arith.constant 1 : i32
    %0 = arith.addi %arg1, %c1_i32 : i32
    %c8_i32 = arith.constant 8 : i32
    %1 = arith.muli %0, %c8_i32 : i32
    %c0_i32 = arith.constant 0 : i32
    %c0_i32_0 = arith.constant 0 : i32
    %c0_i32_1 = arith.constant 0 : i32
    return %arg0, %1, %c0_i32, %c0_i32_0 : i32, i32, i32, i32
  }
  func.func @transform_2(%arg0: i32, %arg1: i32) -> (i32, i32) {
    %c0_i32 = arith.constant 0 : i32
    %c0_i32_0 = arith.constant 0 : i32
    %c0_i32_1 = arith.constant 0 : i32
    return %c0_i32, %c0_i32_0 : i32, i32
  }
  func.func @transform_3(%arg0: i32, %arg1: i32) -> (i32, i32) {
    %c0_i32 = arith.constant 0 : i32
    %c0_i32_0 = arith.constant 0 : i32
    %c0_i32_1 = arith.constant 0 : i32
    return %c0_i32, %c0_i32_0 : i32, i32
  }
  func.func @transform_4(%arg0: i32, %arg1: i32) -> (i32, i32, i32) {
    %c0_i32 = arith.constant 0 : i32
    %c0_i32_0 = arith.constant 0 : i32
    %c0_i32_1 = arith.constant 0 : i32
    %c0_i32_2 = arith.constant 0 : i32
    return %c0_i32, %c0_i32_0, %c0_i32_1 : i32, i32, i32
  }
  func.func @transform_5(%arg0: i32, %arg1: i32) -> (i32, i32) {
    %c0_i32 = arith.constant 0 : i32
    %c0_i32_0 = arith.constant 0 : i32
    %c0_i32_1 = arith.constant 0 : i32
    return %c0_i32, %c0_i32_0 : i32, i32
  }
  func.func @transform_6(%arg0: i32, %arg1: i32) -> (i32, i32) {
    %c0_i32 = arith.constant 0 : i32
    %c0_i32_0 = arith.constant 0 : i32
    %c0_i32_1 = arith.constant 0 : i32
    return %c0_i32, %c0_i32_0 : i32, i32
  }
  func.func @transform_7(%arg0: i32, %arg1: i32) -> (i32, i32) {
    %c0_i32 = arith.constant 0 : i32
    %c0_i32_0 = arith.constant 0 : i32
    %c0_i32_1 = arith.constant 0 : i32
    return %c0_i32, %c0_i32_0 : i32, i32
  }
  func.func @transform_8(%arg0: i32, %arg1: i32) -> (i32, i32, i32, i32) {
    %c0_i32 = arith.constant 0 : i32
    %c0_i32_0 = arith.constant 0 : i32
    %c0_i32_1 = arith.constant 0 : i32
    return %arg0, %arg1, %c0_i32, %c0_i32_0 : i32, i32, i32, i32
  }
}

</mosaic_0001>

<bundles_post_ra>
// kernel: tpu_custom_call.1
= control target key start
LH: loop header
LB: loop body
LE: loop exit
PB: predicated region body
PF: predicated region fallthrough
CT: control target
= control target key end

     0   :  { %s7759_s0 = inlined_call_operand.hbm [shape: f32[2,18,16,128], index: 0, kind: input, shape index: {}]   ;;  %s7760_s1 = inlined_call_operand.hbm [shape: f32[2,18,16,128], index: 1, kind: input, shape index: {}]   ;;  %s7761_s2 = inlined_call_operand.vmem [shape: f32[128,32], index: 2, kind: input, shape index: {}]   ;;  %s7762_s3 = inlined_call_operand.vmem [shape: f32[1,32], index: 3, kind: input, shape index: {}]   ;;  %s7763_s4 = inlined_call_operand.vmem [shape: f32[3,96,32], index: 4, kind: input, shape index: {}]   ;;  %s7764_s5 = inlined_call_operand.vmem [shape: f32[1,32], index: 5, kind: input, shape index: {}]   ;;  %s7765_s6 = inlined_call_operand.vmem [shape: f32[32,128], index: 6, kind: input, shape index: {}]   ;;  %s7766_s7 = inlined_call_operand.vmem [shape: f32[1,128], index: 7, kind: input, shape index: {}]   ;;  %s7767_s8 = inlined_call_operand.hbm [shape: f32[2,16,16,128], index: 8, kind: output, shape index: {}]  }
   0x1   :  { %7785 = sst [smem:[#allocation52_spill]] %s7759_s0 }
   0x2   :  { %13 = vsyncpa [#allocation4], 0 }
   0x3   :  { %15 = vsyncpa [#allocation4 + $0x1], 0 }
   0x4   :  { %16 = vsyncpa [#allocation7], 0 }
   0x5   :  { %18 = vsyncpa [#allocation7 + $0x1], 0 }
   0x6   :  { %19 = vsyncpa [#allocation5], 0 }
   0x7   :  { %21 = vsyncpa [#allocation5 + $0x1], 0  ;;  %s5669_s27 = smov 0   ;;  %s5671_s28 = smov 0  }
   0x8   :  { %s5673_s29 = smov 0   ;;  %s5675_s30 = smov 0  }
   0x9   :  { %s5677_s9 = smov 0   ;;  %s5679_s10 = smov 0  }
   0xa LB: > { %7786 = sst [smem:[#allocation12_spill]] %s5600_s29  ;;  %s4317_s11 = sadd.s32 4294967295, %s5612_s10   ;;  %s5612_s10 = sphi %s5679_s10, %s27_s10   ;;  %s5608_s9 = sphi %s5677_s9, %s7884_s9   ;;  %s5604_s30 = sphi %s5675_s30, %s7883_s30   ;;  %s5600_s29 = sphi %s5673_s29, %s7879_s29   ;;  %s5596_s28 = sphi %s5671_s28, %s7882_s28   ;;  %s5592_s27 = sphi %s5669_s27, %s7881_s27  }
   0xb   : > { %s4318_s12 = sadd.s32 4294967294, %s5612_s10   ;;  %s39_s13 = sadd.s32 1, %s5608_s9 }
   0xc   : > { %s48_s14 = sadd.s32 1, %s5600_s29  ;;  %p41_p0 = scmp.ge.s32.totalorder %s39_s13, 2 }
   0xd   : > { %p55_p1 = scmp.ne.s32.totalorder %s5600_s29, %s5596_s28  ;;  %p56_p2 = scmp.eq.s32.totalorder %s5612_s10, 0 }
   0xe   : > { %p61_p3 = scmp.ne.s32.totalorder %s5596_s28, %s5592_s27  ;;  %s7886_s13 = smov (%p41_p0, %s39_s13), 0 }
   0xf   : > { %7787 = sst [smem:[#allocation13_spill]] %s7886_s13  ;;  %p5710_p4 = por %p56_p2, %p55_p1 }
  0x10   : > { %p62_p5 = scmp.eq.s32.totalorder %s4317_s11, 0  ;;  %s43_s16 = ssub.s32 %s5608_s9, %s7886_s13 }
  0x11   : > { %p245_p6 = scmp.eq.s32.totalorder %s4317_s11, 1  ;;  %p46_p7 = scmp.eq.s32.totalorder %s43_s16, 0 }
  0x12   : > { %p5716_p8 = por %p62_p5, %p61_p3  ;;  %p251_p10 = scmp.eq.s32.totalorder %s4318_s12, 1 }
  0x13   : > { %p5720_p9 = por %p245_p6, %p55_p1  ;;  %p5384_p13 = scmp.lt.s32.totalorder %s5612_s10, 2 }
  0x14   : > { %s7789_s17 = scalar_select %p5716_p8, 1, 0 }
  0x15   : > { %s7790_s18 = scalar_select %p5720_p9, 1, 0 }
  0x16   : > { %s5725_s19 = scalar_select %p46_p7, %s5600_s29, %s48_s14  }
  0x17   : > { %p5727_p11 = por %p251_p10, %p61_p3  ;;  %s5734_s21 = sand.u32 1, %s5600_s29  }
  0x18   : > { %7791 = sst [smem:[#allocation14_spill]] %s5725_s19  ;;  %s4321_s22 = sshll.u32 %s5734_s21, 8 }
  0x19   : > { %s7792_s20 = scalar_select %p5727_p11, 1, 0 }
  0x1a   : > { %s7768_s23 = smul.u32 4608, %s5608_s9  ;;  %s293_s24 = scalar_lea.vmem [#allocation3], %s4321_s22 }
  0x1b   : > { %7793 = sst [smem:[#allocation15_spill]] %s7792_s20  ;;  %s311_s25 = sshll.u32 %s293_s24, 4  ;;  %s5751_s25 = int_to_ptr.vmem [resolvable:$true] %s311_s25 }
  0x1c   : > { %p5740_p0 = pnand %p5384_p13, %p5710_p4  ;;  %s7795_s0 = sld [smem:[#allocation52_spill]] }
  0x1e   : > { %p5467_p3 = pneg %p5740_p0 }
  0x22   : > { %s5749_s14 = scalar_lea.hbm %s7795_s0, %s7768_s23  ;;  %s5470_s11 = scalar_lea.hbm %s7795_s0, 9216 }
  0x23   : > { %s5465_s16 = scalar_lea.hbm %s5749_s14, 4096  ;;  %p5471_p6 = scmp.lt.u32.totalorder %s5749_s14, %s7795_s0 }
  0x24   : > { %p5466_p2 = scmp.ne.s32.totalorder %s5749_s14, %s5465_s16  ;;  %p5472_p7 = scmp.lt.u32.totalorder %s5470_s11, %s5465_s16 }
  0x25   : > { %p5474_p13 = scmp.lt.u32.totalorder %s5465_s16, %s5749_s14 }
  0x26   : > { %p5468_p4 = pnand %p5467_p3, %p5466_p2  ;;  %p5473_p10 = por %p5472_p7, %p5471_p6 }
  0x28   : > { %p5469_p5 = pneg %p5468_p4  ;;  %p5475_p12 = por %p5474_p13, %p5473_p10 }
  0x2a   : > { %p5476_p1 = pnand %p5475_p12, %p5469_p5 }
  0x2c   : > { %5479 = shalt.err (!%p5476_p1)
}
  0x2d   : > { %s5480_s15 = scalar_lea.vmem %s5751_s25, 4096  ;;  %s5614_s22 = smov [#allocation3]  }
  0x2e   : > { %p5481_p2 = scmp.ne.s32.totalorder %s5751_s25, %s5480_s15  ;;  %s5485_s24 = sshll.u32 %s5614_s22, 4  ;;  %s5486_s24 = int_to_ptr.vmem [resolvable:$false] %s5485_s24 }
  0x2f   : > { %s5487_s23 = scalar_lea.vmem %s5486_s24, 8192  ;;  %p5488_p9 = scmp.lt.s32.totalorder %s5751_s25, %s5486_s24 }
  0x30   : > { %p5483_p4 = pnand %p5481_p2, %p5467_p3  ;;  %p5489_p6 = scmp.lt.s32.totalorder %s5487_s23, %s5480_s15 }
  0x32   : > { %p5484_p11 = pneg %p5483_p4  ;;  %p5490_p7 = por %p5489_p6, %p5488_p9 }
  0x34   : > { %p5491_p10 = pnand %p5490_p7, %p5484_p11 }
  0x36   : > { %5494 = shalt.err (!%p5491_p10)
}
  0x37   : > { %s7773_s16 = smov 128   ;;  %s5616_s11 = smov 8  }
  0x38   : > { %s7796_s15 = scalar_lea.sflag [#allocation4], %s5734_s21  ;;  %p345_p9 = scmp.lt.s32.totalorder %s5612_s10, 3 }
  0x39   : > { %5376 = dma.hbm_to_vmem [thread:$0]  (!%p5740_p0), %s5749_s14, 4096, %s5751_s25, %s7796_s15, %s7773_s16, %s7773_s16, %s5616_s11  }
  0x3a   : > { %s4323_s12 = sshll.u32 %s5734_s21, 5  ;;  %s7797_s22 = smul.u32 4608, %s5608_s9 }
  0x3b   : > { %p7798_p11 = scmp.ge.s32.totalorder %s5612_s10, 1  ;;  %s325_s29 = scalar_lea.vmem [#allocation6], %s4323_s12 }
  0x3c   : > { %s4248_s0 = scalar_lea.hbm %s7760_s1, %s7797_s22  ;;  %s337_s20 = sshll.u32 %s325_s29, 4  ;;  %s5800_s20 = int_to_ptr.vmem [resolvable:$true] %s337_s20 }
  0x3d   : > { %p5794_p12 = pnand %p7798_p11, %p345_p9  ;;  %s5798_s19 = scalar_lea.hbm %s4248_s0, 4096 }
  0x3e   : > { %s322_s25 = scalar_lea.sflag [#allocation7], %s5734_s21  ;;  %s5525_s14 = scalar_lea.hbm %s4248_s0, 4608 }
  0x3f   : > { %p5496_p1 = scmp.ne.s32.totalorder %s5798_s19, %s5525_s14  ;;  %s5500_s24 = scalar_lea.hbm %s7760_s1, 9216 }
  0x40   : > { %p5501_p2 = scmp.lt.u32.totalorder %s5798_s19, %s7760_s1  ;;  %p5502_p4 = scmp.lt.u32.totalorder %s5500_s24, %s5525_s14 }
  0x41   : > { %p5498_p5 = pnand %p5496_p1, %p5467_p3  ;;  %p5504_p7 = scmp.lt.u32.totalorder %s5525_s14, %s5798_s19 }
  0x42   : > { %p5503_p6 = por %p5502_p4, %p5501_p2 }
  0x43   : > { %p5499_p13 = pneg %p5498_p5 }
  0x44   : > { %p5505_p10 = por %p5504_p7, %p5503_p6 }
  0x46   : > { %p5506_p9 = pnand %p5505_p10, %p5499_p13 }
  0x48   : > { %5509 = shalt.err (!%p5506_p9)
}
  0x49   : > { %s5510_s0 = scalar_lea.vmem %s5800_s20, 512  ;;  %s5617_s29 = smov [#allocation6]  }
  0x4a   : > { %p5511_p11 = scmp.ne.s32.totalorder %s5800_s20, %s5510_s0  ;;  %s5515_s12 = sshll.u32 %s5617_s29, 4  ;;  %s5516_s12 = int_to_ptr.vmem [resolvable:$false] %s5515_s12 }
  0x4b   : > { %s5517_s16 = scalar_lea.vmem %s5516_s12, 1024  ;;  %p5518_p8 = scmp.lt.s32.totalorder %s5800_s20, %s5516_s12 }
  0x4c   : > { %p5513_p1 = pnand %p5511_p11, %p5467_p3  ;;  %p5519_p2 = scmp.lt.s32.totalorder %s5517_s16, %s5510_s0 }
  0x4e   : > { %p5514_p5 = pneg %p5513_p1  ;;  %p5520_p4 = por %p5519_p2, %p5518_p8 }
  0x50   : > { %p5521_p6 = pnand %p5520_p4, %p5514_p5 }
  0x52   : > { %5524 = shalt.err (!%p5521_p6)
}
  0x53   : > { %s7800_s14 = smov 128   ;;  %349 = sbr.rel (%p5794_p12) target bundleno = 1301 (0x515), region = 52 }
  0x54   : > { %5379 = dma.hbm_to_vmem [thread:$0]  (!%p5740_p0), %s5798_s19, 512, %s5800_s20, %s322_s25, %s7800_s14, %s7800_s14, %s5616_s11  }
  0x5a   : > { %s5833_s15 = sand.u32 1, %s5596_s28   ;;  %p7801_p8 = scmp.ne.s32.totalorder %s7789_s17, 0 }
  0x5b   : > { %s4326_s22 = sshll.u32 %s5833_s15, 8  ;;  %s352_s26 = scalar_lea.sflag [#allocation4], %s5833_s15 }
  0x5c   : > { %s5839_s24 = scalar_lea.vmem [#allocation3], %s4326_s22 }
  0x5d   : > { %5579 = dma.done.wait (%p7801_p8), %s352_s26, 4096  }
  0x5e   : > { %5581 = vsyncadd (%p7801_p8), %s352_s26, 4294963200  ;;  %s4327_s13 = sshll.u32 %s5833_s15, 5  ;;  %s361_s19 = scalar_lea.sflag [#allocation7], %s5833_s15 }
  0x5f   : > { %s5847_s20 = scalar_lea.vmem [#allocation6], %s4327_s13 }
  0x60   : > { %5583 = dma.done.wait (%p7801_p8), %s361_s19, 512  }
  0x61   : > { %5585 = vsyncadd (%p7801_p8), %s361_s19, 4294966784  ;;  %v413_v0 = vld [vmem:[%s7761_s2] sm:$0xff]  ;;  %v414_v1 = vld [vmem:[%s7761_s2 + $0x8] sm:$0xff]  ;;  %vm892_vm0 = vcmask 261120   ;;  %vm1042_vm1 = vcmask 253952   ;;  %v5618_v48 = vmov 0.0  }
  0x62   : > { %v415_v2 = vld [vmem:[%s7761_s2 + $0x10] sm:$0xff]  ;;  %v5146_v3 = vpack.c.bf16 %v414_v1, %v413_v0  ;;  %v416_v4 = vld [vmem:[%s7761_s2 + $0x18] sm:$0xff]  ;;  %v417_v6 = vld [vmem:[%s7761_s2 + $0x20] sm:$0xff]  ;;  %893 = vst.msk [vmem:[#allocation2 + $0x1] sm:$0xff] %vm892_vm0, %v5618_v48  ;;  %vm1175_vm2 = vcmask 1046528   ;;  %s5619_s12 = smov 32  }
  0x63   : > { %v5150_v5 = vpack.c.bf16 %v416_v4, %v415_v2  ;;  %v418_v7 = vld [vmem:[%s7761_s2 + $0x28] sm:$0xff]  ;;  %v925_v9 = vld [vmem:[%s5847_s20] sm:$0xff]  ;;  %v420_v11 = vld [vmem:[%s7761_s2 + $0x38] sm:$0xff]  ;;  %894 = vst.msk [vmem:[#allocation2 + $0x9] sm:$0xff] %vm892_vm0, %v5618_v48  ;;  %vm1352_vm3 = vcmask 1045504   ;;  %s5620_s16 = smov 64  }
  0x64   : > { %5179 = vmatprep.subr.bf16.mxu1 %v5146_v3  ;;  %5147 = vmatprep.subr.bf16.mxu0 %v5146_v3  ;;  %v5154_v8 = vpack.c.bf16 %v418_v7, %v417_v6  ;;  %v419_v10 = vld [vmem:[%s7761_s2 + $0x30] sm:$0xff]  ;;  %v421_v14 = vld [vmem:[%s7761_s2 + $0x40] sm:$0xff]  ;;  %v422_v15 = vld [vmem:[%s7761_s2 + $0x48] sm:$0xff]  ;;  %1043 = vst.msk [vmem:[#allocation2] sm:$0x1] %vm1042_vm1, %v5618_v48  ;;  %vm1561_vm4 = vcmask 523264  }
  0x65   : > { %5181 = vmatpush3.bf16.msra.mxu1 %v5146_v3  ;;  %5149 = vmatpush3.bf16.msra.mxu0 %v5146_v3  ;;  %v430_v12 = vld [vmem:[%s5839_s24] sm:$0xff]  ;;  %v5158_v13 = vpack.c.bf16 %v420_v11, %v419_v10  ;;  %v5162_v16 = vpack.c.bf16 %v422_v15, %v421_v14  ;;  %v424_v18 = vld [vmem:[%s7761_s2 + $0x58] sm:$0xff]  ;;  %v425_v20 = vld [vmem:[%s7761_s2 + $0x60] sm:$0xff]  ;;  %1040 = vst.msk [vmem:[#allocation2 + $0x199] sm:$0xff] %vm892_vm0, %v5618_v48  ;;  %vm2132_vm5 = vcmask 785408   ;;  %s7613_s25 = scalar_lea.vmem [#allocation8], %s4326_s22 }
  0x66   : > { %5183 = vmatprep.subr.bf16.mxu1 %v5150_v5  ;;  %5151 = vmatprep.subr.bf16.mxu0 %v5150_v5  ;;  %v423_v17 = vld [vmem:[%s7761_s2 + $0x50] sm:$0xff]  ;;  %v426_v21 = vld [vmem:[%s7761_s2 + $0x68] sm:$0xff]  ;;  %v428_v24 = vld [vmem:[%s7761_s2 + $0x78] sm:$0xff]  ;;  %1041 = vst.msk [vmem:[#allocation2 + $0x1a1] sm:$0xff] %vm892_vm0, %v5618_v48  ;;  %s4519_s22 = sshll.u32 %s5604_s30, 12  ;;  %s4187_s30 = scalar_lea.sflag [#allocation5], %s5833_s15 }
  0x67   : > { %4868 = vmatprep.mubr.f32.mxu1 %v925_v9  ;;  %4788 = vmatprep.mubr.f32.mxu0 %v430_v12  ;;  %v5166_v19 = vpack.c.bf16 %v424_v18, %v423_v17  ;;  %v5170_v22 = vpack.c.bf16 %v426_v21, %v425_v20  ;;  %v427_v23 = vld [vmem:[%s7761_s2 + $0x70] sm:$0xff]  ;;  %v926_v26 = vld [vmem:[%s5847_s20 + $0x8] sm:$0xff]  ;;  %v432_v28 = vld [vmem:[%s5839_s24 + $0x10] sm:$0xff]  ;;  %1044 = vst.msk [vmem:[#allocation2 + $0x18] sm:$0x1] %vm1042_vm1, %v5618_v48  ;;  %s7706_s23 = scalar_lea.hbm %s7767_s8, %s4519_s22  ;;  %p7874_p3 = scmp.ne.s32.totalorder %s7790_s18, 0 }
  0x68   : > { %v5174_v25 = vpack.c.bf16 %v428_v24, %v427_v23  ;;  %v431_v27 = vld [vmem:[%s5839_s24 + $0x8] sm:$0xff]  ;;  %v433_v29 = vld [vmem:[%s5839_s24 + $0x18] sm:$0xff]  ;;  %v434_v30 = vld [vmem:[%s5839_s24 + $0x20] sm:$0xff]  ;;  %1045 = vst.msk [vmem:[#allocation2 + $0x30] sm:$0x1] %vm1042_vm1, %v5618_v48  ;;  %s5621_s0 = smov [#allocation8]  }
  0x69   : > { %5185 = vmatpush3.bf16.msra.mxu1 %v5150_v5  ;;  %5153 = vmatpush3.bf16.msra.mxu0 %v5150_v5  ;;  %v435_v31 = vld [vmem:[%s5839_s24 + $0x28] sm:$0xff]  ;;  %v436_v32 = vld [vmem:[%s5839_s24 + $0x30] sm:$0xff]  ;;  %v437_v33 = vld [vmem:[%s5839_s24 + $0x38] sm:$0xff]  ;;  %1046 = vst.msk [vmem:[#allocation2 + $0x48] sm:$0x1] %vm1042_vm1, %v5618_v48  ;;  %s5530_s29 = sshll.u32 %s5621_s0, 4  ;;  %s5531_s29 = int_to_ptr.vmem [resolvable:$false] %s5530_s29 }
  0x6a   : > { %5187 = vmatprep.subr.bf16.mxu1 %v5154_v8  ;;  %5155 = vmatprep.subr.bf16.mxu0 %v5154_v8  ;;  %v438_v34 = vld [vmem:[%s5839_s24 + $0x40] sm:$0xff]  ;;  %v439_v35 = vld [vmem:[%s5839_s24 + $0x48] sm:$0xff]  ;;  %v440_v36 = vld [vmem:[%s5839_s24 + $0x50] sm:$0xff]  ;;  %1047 = vst.msk [vmem:[#allocation2 + $0x60] sm:$0x1] %vm1042_vm1, %v5618_v48  ;;  %s5532_s17 = scalar_lea.vmem %s5531_s29, 8192 }
  0x6b   : > { %v441_v37 = vld [vmem:[%s5839_s24 + $0x58] sm:$0xff]  ;;  %v442_v38 = vld [vmem:[%s5839_s24 + $0x60] sm:$0xff]  ;;  %v443_v39 = vld [vmem:[%s5839_s24 + $0x68] sm:$0xff]  ;;  %1048 = vst.msk [vmem:[#allocation2 + $0x78] sm:$0x1] %vm1042_vm1, %v5618_v48 }
  0x6c   : > { %v444_v40 = vld [vmem:[%s5839_s24 + $0x70] sm:$0xff]  ;;  %v445_v41 = vld [vmem:[%s5839_s24 + $0x78] sm:$0xff]  ;;  %v446_v42 = vld [vmem:[%s5839_s24 + $0x80] sm:$0xff]  ;;  %1049 = vst.msk [vmem:[#allocation2 + $0x90] sm:$0x1] %vm1042_vm1, %v5618_v48 }
  0x6d   : > { %5189 = vmatpush3.bf16.msra.mxu1 %v5154_v8  ;;  %5157 = vmatpush3.bf16.msra.mxu0 %v5154_v8  ;;  %v447_v43 = vld [vmem:[%s5839_s24 + $0x88] sm:$0xff]  ;;  %v448_v44 = vld [vmem:[%s5839_s24 + $0x90] sm:$0xff]  ;;  %v449_v45 = vld [vmem:[%s5839_s24 + $0x98] sm:$0xff]  ;;  %1050 = vst.msk [vmem:[#allocation2 + $0xa8] sm:$0x1] %vm1042_vm1, %v5618_v48 }
  0x6e   : > { %5191 = vmatprep.subr.bf16.mxu1 %v5158_v13  ;;  %5159 = vmatprep.subr.bf16.mxu0 %v5158_v13  ;;  %v450_v46 = vld [vmem:[%s5839_s24 + $0xa0] sm:$0xff]  ;;  %v451_v47 = vld [vmem:[%s5839_s24 + $0xa8] sm:$0xff]  ;;  %1051 = vst.msk [vmem:[#allocation2 + $0xc0] sm:$0x1] %vm1042_vm1, %v5618_v48  ;;  %1052 = vst.msk [vmem:[#allocation2 + $0xd8] sm:$0x1] %vm1042_vm1, %v5618_v48 }
  0x6f   : > { %1053 = vst.msk [vmem:[#allocation2 + $0xf0] sm:$0x1] %vm1042_vm1, %v5618_v48  ;;  %1054 = vst.msk [vmem:[#allocation2 + $0x108] sm:$0x1] %vm1042_vm1, %v5618_v48  ;;  %v1079_v49 = vld [vmem:[#allocation2] sm:$0xff]  ;;  %v1080_v50 = vld [vmem:[#allocation2 + $0x8] sm:$0xff] }
  0x70   : > { %1055 = vst.msk [vmem:[#allocation2 + $0x120] sm:$0x1] %vm1042_vm1, %v5618_v48  ;;  %1056 = vst.msk [vmem:[#allocation2 + $0x138] sm:$0x1] %vm1042_vm1, %v5618_v48  ;;  %v1176_v51 = vrot.slane %v1079_v49, 1  ;;  %v1177_v52 = vrot.slane %v1080_v50, 1 }
  0x71   : > { %5193 = vmatpush3.bf16.msra.mxu1 %v5158_v13  ;;  %5161 = vmatpush3.bf16.msra.mxu0 %v5158_v13  ;;  %1057 = vst.msk [vmem:[#allocation2 + $0x150] sm:$0x1] %vm1042_vm1, %v5618_v48  ;;  %1058 = vst.msk [vmem:[#allocation2 + $0x168] sm:$0x1] %vm1042_vm1, %v5618_v48  ;;  %v1353_v57 = vrot.slane %v1079_v49, 2  ;;  %v1354_v58 = vrot.slane %v1080_v50, 2 }
  0x72   : > { %5195 = vmatprep.subr.bf16.mxu1 %v5162_v16  ;;  %5163 = vmatprep.subr.bf16.mxu0 %v5162_v16  ;;  %1059 = vst.msk [vmem:[#allocation2 + $0x180] sm:$0x1] %vm1042_vm1, %v5618_v48  ;;  %1060 = vst.msk [vmem:[#allocation2 + $0x198] sm:$0x1] %vm1042_vm1, %v5618_v48  ;;  %v1178_v55 = vsel %vm1175_vm2, %v1176_v51, %v1177_v52  ;;  %v452_v62 = vld [vmem:[%s5839_s24 + $0xb0] sm:$0xff]  ;;  %v453_v63 = vld [vmem:[%s5839_s24 + $0xb8] sm:$0xff] }
  0x73   : > { %1061 = vst.msk [vmem:[#allocation2 + $0x11] sm:$0x1] %vm1042_vm1, %v5618_v48  ;;  %1062 = vst.msk [vmem:[#allocation2 + $0x29] sm:$0x1] %vm1042_vm1, %v5618_v48  ;;  %1256 = vrot.lane.b32.xlu0 %v1178_v55, %s5619_s12  ;;  %v1355_v60 = vsel %vm1352_vm3, %v1353_v57, %v1354_v58  ;;  %v454_v0 = vld [vmem:[%s5839_s24 + $0xc0] sm:$0xff]  ;;  %v455_v1 = vld [vmem:[%s5839_s24 + $0xc8] sm:$0xff] }
  0x74   : > { %1063 = vst.msk [vmem:[#allocation2 + $0x41] sm:$0x1] %vm1042_vm1, %v5618_v48  ;;  %1064 = vst.msk [vmem:[#allocation2 + $0x59] sm:$0x1] %vm1042_vm1, %v5618_v48  ;;  %v456_v2 = vld [vmem:[%s5839_s24 + $0xd0] sm:$0xff]  ;;  %v457_v3 = vld [vmem:[%s5839_s24 + $0xd8] sm:$0xff] }
  0x75   : > { %5197 = vmatpush3.bf16.msra.mxu1 %v5162_v16  ;;  %5165 = vmatpush3.bf16.msra.mxu0 %v5162_v16  ;;  %1065 = vst.msk [vmem:[#allocation2 + $0x71] sm:$0x1] %vm1042_vm1, %v5618_v48  ;;  %1066 = vst.msk [vmem:[#allocation2 + $0x89] sm:$0x1] %vm1042_vm1, %v5618_v48  ;;  %v458_v4 = vld [vmem:[%s5839_s24 + $0xe0] sm:$0xff]  ;;  %v459_v5 = vld [vmem:[%s5839_s24 + $0xe8] sm:$0xff] }
  0x76   : > { %5199 = vmatprep.subr.bf16.mxu1 %v5166_v19  ;;  %5167 = vmatprep.subr.bf16.mxu0 %v5166_v19  ;;  %1067 = vst.msk [vmem:[#allocation2 + $0xa1] sm:$0x1] %vm1042_vm1, %v5618_v48  ;;  %1068 = vst.msk [vmem:[#allocation2 + $0xb9] sm:$0x1] %vm1042_vm1, %v5618_v48  ;;  %v460_v6 = vld [vmem:[%s5839_s24 + $0xf0] sm:$0xff]  ;;  %v461_v7 = vld [vmem:[%s5839_s24 + $0xf8] sm:$0xff] }
  0x77   : > { %1069 = vst.msk [vmem:[#allocation2 + $0xd1] sm:$0x1] %vm1042_vm1, %v5618_v48  ;;  %1070 = vst.msk [vmem:[#allocation2 + $0xe9] sm:$0x1] %vm1042_vm1, %v5618_v48  ;;  %1433 = vrot.lane.b32.xlu0 %v1355_v60, %s5620_s16  ;;  %v4330_v8 = vld [vmem:[%s7763_s4 + $0x60] sm:$0xff]  ;;  %v4331_v9 = vld [vmem:[%s7763_s4 + $0x68] sm:$0xff] }
  0x78   : > { %1071 = vst.msk [vmem:[#allocation2 + $0x101] sm:$0x1] %vm1042_vm1, %v5618_v48  ;;  %1072 = vst.msk [vmem:[#allocation2 + $0x119] sm:$0x1] %vm1042_vm1, %v5618_v48  ;;  %v5210_v10 = vpack.c.bf16 %v4331_v9, %v4330_v8  ;;  %v4332_v11 = vld [vmem:[%s7763_s4 + $0x70] sm:$0xff]  ;;  %v4333_v12 = vld [vmem:[%s7763_s4 + $0x78] sm:$0xff] }
  0x79   : > { %5201 = vmatpush3.bf16.msra.mxu1 %v5166_v19  ;;  %5169 = vmatpush3.bf16.msra.mxu0 %v5166_v19  ;;  %1073 = vst.msk [vmem:[#allocation2 + $0x131] sm:$0x1] %vm1042_vm1, %v5618_v48  ;;  %1074 = vst.msk [vmem:[#allocation2 + $0x149] sm:$0x1] %vm1042_vm1, %v5618_v48  ;;  %v5214_v13 = vpack.c.bf16 %v4333_v12, %v4332_v11  ;;  %v5998_v14 = vld [vmem:[%s7762_s3] ss:$0 sm:$0xff] }
  0x7a   : > { %5203 = vmatprep.subr.bf16.mxu1 %v5170_v22  ;;  %5171 = vmatprep.subr.bf16.mxu0 %v5170_v22  ;;  %1075 = vst.msk [vmem:[#allocation2 + $0x161] sm:$0x1] %vm1042_vm1, %v5618_v48  ;;  %1076 = vst.msk [vmem:[#allocation2 + $0x179] sm:$0x1] %vm1042_vm1, %v5618_v48  ;;  %v1081_v53 = vld [vmem:[#allocation2 + $0x10] sm:$0x3] }
  0x7b   : > { %1077 = vst.msk [vmem:[#allocation2 + $0x191] sm:$0x1] %vm1042_vm1, %v5618_v48  ;;  %1078 = vst.msk [vmem:[#allocation2 + $0x1a9] sm:$0x1] %vm1042_vm1, %v5618_v48  ;;  %v1179_v54 = vrot.slane %v1081_v53, 1  ;;  %v1356_v59 = vrot.slane %v1081_v53, 2 }
  0x7c   : > { %v4334_v15 = vld [vmem:[%s7763_s4 + $0x80] sm:$0xff]  ;;  %v4335_v16 = vld [vmem:[%s7763_s4 + $0x88] sm:$0xff] }
  0x7d   : > { %5205 = vmatpush3.bf16.msra.mxu1 %v5170_v22  ;;  %5173 = vmatpush3.bf16.msra.mxu0 %v5170_v22  ;;  %v1180_v56 = vsel %vm1175_vm2, %v1177_v52, %v1179_v54  ;;  %v1357_v61 = vsel %vm1352_vm3, %v1354_v58, %v1356_v59  ;;  %v5218_v19 = vpack.c.bf16 %v4335_v16, %v4334_v15  ;;  %v928_v49 = vld [vmem:[%s5847_s20 + $0x18] sm:$0xff] }
  0x7e   : > { %5207 = vmatprep.subr.bf16.mxu1 %v5174_v25  ;;  %5175 = vmatprep.subr.bf16.mxu0 %v5174_v25 }
  0x7f   : > { %1258 = vrot.lane.b32.xlu1 %v1180_v56, %s5619_s12 }
  0x81   : > { %5209 = vmatpush3.bf16.msra.mxu1 %v5174_v25  ;;  %5177 = vmatpush3.bf16.msra.mxu0 %v5174_v25  ;;  %v4336_v25 = vld [vmem:[%s7763_s4 + $0x90] sm:$0xff] }
  0x82   : > { %5211 = vmatprep.subr.bf16.mxu1 %v5210_v10 }
  0x83   : > { %1435 = vrot.lane.b32.xlu1 %v1357_v61, %s5620_s16 }
  0x84   : > { %4869 = vmatmul.mubr.f32.vlgmr.msra.gmra.mrb[0].mxu1 %v926_v26  ;;  %4789 = vmatmul.mubr.f32.vlgmr.msra.gmra.mrb[0].mxu0 %v431_v27  ;;  %v4337_v26 = vld [vmem:[%s7763_s4 + $0x98] sm:$0xff] }
  0x85   : > { %4791 = vmatprep.mubr.f32.mxu0 %v432_v28  ;;  %5213 = vmatpush3.bf16.msra.mxu1 %v5210_v10 }
  0x86   : > { %5215 = vmatprep.subr.bf16.mxu1 %v5214_v13 }
  0x88   : > { %4792 = vmatmul.mubr.f32.gmra.mrb[2].mxu0 %v433_v29  ;;  %v5222_v29 = vpack.c.bf16 %v4337_v26, %v4336_v25 }
  0x89   : > { %4794 = vmatprep.mubr.f32.mxu0 %v434_v30  ;;  %5217 = vmatpush3.bf16.msra.mxu1 %v5214_v13 }
  0x8a   : > { %5219 = vmatprep.subr.bf16.mxu1 %v5218_v19 }
  0x8c   : > { %4795 = vmatmul.mubr.f32.gmra.mrb[4].mxu0 %v435_v31 }
  0x8d   : > { %4797 = vmatprep.mubr.f32.mxu0 %v436_v32  ;;  %5221 = vmatpush3.bf16.msra.mxu1 %v5218_v19 }
  0x8e   : > { %5223 = vmatprep.subr.bf16.mxu1 %v5222_v29 }
  0x90   : > { %4798 = vmatmul.mubr.f32.gmra.mrb[6].mxu0 %v437_v33 }
  0x91   : > { %4800 = vmatprep.mubr.f32.mxu0 %v438_v34  ;;  %5225 = vmatpush3.bf16.msra.mxu1 %v5222_v29  ;;  %v4338_v34 = vld [vmem:[%s7763_s4 + $0xa0] sm:$0xff] }
  0x94   : > { %4801 = vmatmul.mubr.f32.gmra.mrb[8].mxu0 %v439_v35  ;;  %v4339_v35 = vld [vmem:[%s7763_s4 + $0xa8] sm:$0xff] }
  0x95   : > { %4803 = vmatprep.mubr.f32.mxu0 %v440_v36 }
  0x98   : > { %4804 = vmatmul.mubr.f32.gmra.mrb[10].mxu0 %v441_v37 }
  0x99   : > { %4806 = vmatprep.mubr.f32.mxu0 %v442_v38  ;;  %v5226_v38 = vpack.c.bf16 %v4339_v35, %v4338_v34 }
  0x9b   : > { %5227 = vmatprep.subr.bf16.mxu1 %v5226_v38 }
  0x9c   : > { %4807 = vmatmul.mubr.f32.gmra.mrb[12].mxu0 %v443_v39  ;;  %5229 = vmatpush3.bf16.msra.mxu1 %v5226_v38 }
  0x9d   : > { %4809 = vmatprep.mubr.f32.mxu0 %v444_v40 }
  0xa0   : > { %4810 = vmatmul.mubr.f32.gmra.mrb[14].mxu0 %v445_v41 }
  0xa1   : > { %4812 = vmatprep.mubr.f32.mxu0 %v446_v42 }
  0xa4   : > { %4813 = vmatmul.mubr.f32.gmra.mrb[16].mxu0 %v447_v43  ;;  %v927_v43 = vld [vmem:[%s5847_s20 + $0x10] sm:$0xff] }
  0xa5   : > { %4815 = vmatprep.mubr.f32.mxu0 %v448_v44  ;;  %v4340_v44 = vld [vmem:[%s7763_s4 + $0xb0] sm:$0xff]  ;;  %4871 = vmatprep.mubr.f32.mxu1 %v927_v43 }
  0xa6   : > { %4872 = vmatmul.mubr.f32.gmra.mrb[2].mxu1 %v928_v49  ;;  %v4408_v49 = vld [vmem:[%s7763_s4 + $0xd0] sm:$0xff] }
  0xa8   : > { %4816 = vmatmul.mubr.f32.gmra.mrb[18].mxu0 %v449_v45  ;;  %v4341_v45 = vld [vmem:[%s7763_s4 + $0xb8] sm:$0xff] }
  0xa9   : > { %4818 = vmatprep.mubr.f32.mxu0 %v450_v46  ;;  %v5230_v50 = vpack.c.bf16 %v4341_v45, %v4340_v44  ;;  %v4406_v45 = vld [vmem:[%s7763_s4 + $0xc0] sm:$0xff] }
  0xab   : > { %5231 = vmatprep.subr.bf16.mxu1 %v5230_v50 }
  0xac   : > { %4819 = vmatmul.mubr.f32.gmra.mrb[20].mxu0 %v451_v47  ;;  %5233 = vmatpush3.bf16.msra.mxu1 %v5230_v50  ;;  %v4409_v50 = vld [vmem:[%s7763_s4 + $0xd8] sm:$0xff] }
  0xad   : > { %4821 = vmatprep.mubr.f32.mxu0 %v452_v62 }
  0xb0   : > { %4822 = vmatmul.mubr.f32.gmra.mrb[22].mxu0 %v453_v63 }
  0xb1   : > { %4824 = vmatprep.mubr.f32.mxu0 %v454_v0 }
  0xb4   : > { %4825 = vmatmul.mubr.f32.gmra.mrb[24].mxu0 %v455_v1 }
  0xb5   : > { %4827 = vmatprep.mubr.f32.mxu0 %v456_v2 }
  0xb8   : > { %4828 = vmatmul.mubr.f32.gmra.mrb[26].mxu0 %v457_v3 }
  0xb9   : > { %4830 = vmatprep.mubr.f32.mxu0 %v458_v4 }
  0xbc   : > { %4831 = vmatmul.mubr.f32.gmra.mrb[28].mxu0 %v459_v5 }
  0xbd   : > { %4833 = vmatprep.mubr.f32.mxu0 %v460_v6 }
  0xc0   : > { %4834 = vmatmul.mubr.f32.gmra.mrb[30].mxu0 %v461_v7 }
 0x157   : > { %v4870_v17 = vpop.f32.mrb[0].mxu1  ;;  %v4790_v18 = vpop.f32.mrb[0].mxu0 }
 0x158   : > { %v1001_v20 = vadd.f32 %v4870_v17, %v5998_v14  ;;  %v995_v21 = vpop.f32.mrb[1].mxu1  ;;  %v534_v22 = vpop.f32.mrb[1].mxu0 }
 0x159   : > { %v996_v23 = vadd.f32 %v5998_v14, %v995_v21 }
 0x15a   : > { %v1015_v24 = vmax.f32 %v1001_v20, 0.0 }
 0x15b   : > { %v1014_v27 = vmax.f32 %v996_v23, 0.0  ;;  %v4793_v28 = vpop.f32.mrb[2].mxu0 }
 0x15c   : > { %1039 = vst.msk [vmem:[#allocation2 + $0x189] sm:$0xff] %vm892_vm0, %v1015_v24  ;;  %v550_v30 = vadd.f32 %v4793_v28, %v5998_v14  ;;  %v544_v31 = vpop.f32.mrb[3].mxu0 }
 0x15d   : > { %1038 = vst.msk [vmem:[#allocation2 + $0x181] sm:$0xff] %vm892_vm0, %v1014_v27  ;;  %v545_v32 = vadd.f32 %v5998_v14, %v544_v31 }
 0x15e   : > { %v696_v33 = vmax.f32 %v550_v30, 0.0 }
 0x15f   : > { %v695_v36 = vmax.f32 %v545_v32, 0.0  ;;  %v4796_v37 = vpop.f32.mrb[4].mxu0 }
 0x160   : > { %896 = vst.msk [vmem:[#allocation2 + $0x21] sm:$0xff] %vm892_vm0, %v696_v33  ;;  %v560_v39 = vadd.f32 %v4796_v37, %v5998_v14  ;;  %v554_v40 = vpop.f32.mrb[5].mxu0 }
 0x161   : > { %895 = vst.msk [vmem:[#allocation2 + $0x19] sm:$0xff] %vm892_vm0, %v695_v36  ;;  %v555_v41 = vadd.f32 %v5998_v14, %v554_v40 }
 0x162   : > { %v698_v42 = vmax.f32 %v560_v39, 0.0 }
 0x163   : > { %v1654_v46 = vld [vmem:[#allocation2 + $0x190] sm:$0x3]  ;;  %v697_v47 = vmax.f32 %v555_v41, 0.0  ;;  %v4799_v48 = vpop.f32.mrb[6].mxu0 }
 0x164   : > { %v1653_v51 = vld [vmem:[#allocation2 + $0x188] sm:$0xff]  ;;  %v1781_v52 = vrot.slane %v1654_v46, 1  ;;  %v1652_v53 = vld [vmem:[#allocation2 + $0x180] sm:$0xff]  ;;  %898 = vst.msk [vmem:[#allocation2 + $0x39] sm:$0xff] %vm892_vm0, %v698_v42  ;;  %v570_v54 = vadd.f32 %v4799_v48, %v5998_v14  ;;  %v564_v55 = vpop.f32.mrb[7].mxu0  ;;  %v1957_v58 = vrot.slane %v1654_v46, 2 }
 0x165   : > { %v1779_v56 = vrot.slane %v1653_v51, 1  ;;  %v1778_v57 = vrot.slane %v1652_v53, 1  ;;  %897 = vst.msk [vmem:[#allocation2 + $0x31] sm:$0xff] %vm892_vm0, %v697_v47  ;;  %v565_v60 = vadd.f32 %v5998_v14, %v564_v55  ;;  %v1955_v63 = vrot.slane %v1653_v51, 2  ;;  %v4407_v46 = vld [vmem:[%s7763_s4 + $0xc8] sm:$0xff] }
 0x166   : > { %v700_v59 = vmax.f32 %v570_v54, 0.0  ;;  %v1954_v0 = vrot.slane %v1652_v53, 2 }
 0x167   : > { %v1782_v61 = vsel %vm1175_vm2, %v1779_v56, %v1781_v52  ;;  %v1780_v62 = vsel %vm1175_vm2, %v1778_v57, %v1779_v56  ;;  %v4802_v1 = vpop.f32.mrb[8].mxu0  ;;  %v699_v9 = vmax.f32 %v565_v60, 0.0  ;;  %v1958_v11 = vsel %vm1352_vm3, %v1955_v63, %v1957_v58  ;;  %v1609_v13 = vld [vmem:[#allocation2 + $0x28] sm:$0x3] }
 0x168   : > { %1845 = vrot.lane.b32.xlu1 %v1782_v61, %s5619_s12  ;;  %1843 = vrot.lane.b32.xlu0 %v1780_v62, %s5619_s12  ;;  %v6044_v2 = vld [vmem:[#allocation2 + $0x18] sm:$0xff]  ;;  %v6046_v3 = vld [vmem:[#allocation2 + $0x20] sm:$0xff]  ;;  %900 = vst.msk [vmem:[#allocation2 + $0x51] sm:$0xff] %vm892_vm0, %v700_v59  ;;  %v574_v8 = vpop.f32.mrb[9].mxu0  ;;  %v580_v10 = vadd.f32 %v4802_v1, %v5998_v14  ;;  %v1956_v12 = vsel %vm1352_vm3, %v1954_v0, %v1955_v63  ;;  %v1882_v21 = vrot.slane %v1609_v13, 2  ;;  %v1706_v22 = vrot.slane %v1609_v13, 1 }
 0x169   : > { %v1879_v4 = vrot.slane %v6044_v2, 2  ;;  %v6051_v5 = vrot.slane %v6046_v3, 2  ;;  %v1703_v6 = vrot.slane %v6044_v2, 1  ;;  %v1704_v7 = vrot.slane %v6046_v3, 1  ;;  %899 = vst.msk [vmem:[#allocation2 + $0x49] sm:$0xff] %vm892_vm0, %v699_v9 }
 0x16a   : > { %v575_v18 = vadd.f32 %v5998_v14, %v574_v8  ;;  %v702_v20 = vmax.f32 %v580_v10, 0.0  ;;  %v1084_v23 = vld [vmem:[#allocation2 + $0x28] sm:$0x3]  ;;  %v6109_v58 = vpack.c.bf16 %v4407_v46, %v4406_v45  ;;  %v6113_v60 = vpack.c.bf16 %v4409_v50, %v4408_v49 }
 0x16b   : > { %v4805_v15 = vpop.f32.mrb[10].mxu0  ;;  %v1881_v16 = vsel %vm1352_vm3, %v1879_v4, %v6051_v5  ;;  %v1705_v17 = vsel %vm1175_vm2, %v1703_v6, %v1704_v7  ;;  %v1184_v27 = vrot.slane %v1084_v23, 1  ;;  %v1883_v30 = vsel %vm1352_vm3, %v6051_v5, %v1882_v21  ;;  %v1612_v36 = vld [vmem:[#allocation2 + $0x40] sm:$0x3]  ;;  %v4411_v6 = vld [vmem:[%s7763_s4 + $0xe8] sm:$0xff] }
 0x16c   : > { %2021 = vrot.lane.b32.xlu1 %v1958_v11, %s5620_s16  ;;  %2019 = vrot.lane.b32.xlu0 %v1956_v12, %s5620_s16  ;;  %v584_v19 = vpop.f32.mrb[11].mxu0  ;;  %902 = vst.msk [vmem:[#allocation2 + $0x69] sm:$0xff] %vm892_vm0, %v702_v20  ;;  %v701_v25 = vmax.f32 %v575_v18, 0.0  ;;  %v590_v28 = vadd.f32 %v4805_v15, %v5998_v14  ;;  %v1707_v31 = vsel %vm1175_vm2, %v1704_v7, %v1706_v22  ;;  %v6078_v41 = vld [vmem:[#allocation2 + $0x38] sm:$0xff]  ;;  %v6080_v42 = vld [vmem:[#allocation2 + $0x30] sm:$0xff]  ;;  %v1361_v44 = vrot.slane %v1084_v23, 2 }
 0x16d   : > { %v585_v29 = vadd.f32 %v5998_v14, %v584_v19  ;;  %v1185_v43 = vsel %vm1175_vm2, %v1704_v7, %v1184_v27  ;;  %v1711_v47 = vrot.slane %v1612_v36, 1  ;;  %v6102_v51 = vrot.slane %v6078_v41, 1  ;;  %7802 = vst [vmem:[#allocation16_spill] sm:$0xff] %v6113_v60  ;;  %5259 = vmatprep.subr.bf16.mxu0 %v6109_v58  ;;  %v1087_v10 = vld [vmem:[#allocation2 + $0x40] sm:$0x3]  ;;  %v4415_v22 = vld [vmem:[%s7763_s4 + $0x108] sm:$0xff] }
 0x16e   : > { %901 = vst.msk [vmem:[#allocation2 + $0x61] sm:$0xff] %vm892_vm0, %v701_v25  ;;  %v704_v37 = vmax.f32 %v590_v28, 0.0  ;;  %v1708_v52 = vrot.slane %v6080_v42, 1  ;;  %v1362_v59 = vsel %vm1352_vm3, %v6051_v5, %v1361_v44  ;;  %v4410_v5 = vld [vmem:[%s7763_s4 + $0xe0] sm:$0xff]  ;;  %5261 = vmatpush3.bf16.msra.mxu0 %v6109_v58  ;;  %v6134_v7 = vrot.slane %v6078_v41, 2 }
 0x16f   : > { %v4808_v24 = vpop.f32.mrb[12].mxu0  ;;  %v703_v38 = vmax.f32 %v585_v29, 0.0  ;;  %v1712_v1 = vsel %vm1175_vm2, %v6102_v51, %v1711_v47  ;;  %v1887_v8 = vrot.slane %v1612_v36, 2  ;;  %v1884_v9 = vrot.slane %v6080_v42, 2  ;;  %5263 = vmatprep.subr.bf16.mxu0 %v6113_v60  ;;  %v2778_v20 = vld [vmem:[#allocation2 + $0x40] sm:$0x3] }
 0x170   : > { %1959 = vrot.lane.b32.xlu1 %v1881_v16, %s5620_s16  ;;  %1783 = vrot.lane.b32.xlu0 %v1705_v17, %s5619_s12  ;;  %v594_v26 = vpop.f32.mrb[13].mxu0  ;;  %v600_v32 = vadd.f32 %v4808_v24, %v5998_v14  ;;  %904 = vst.msk [vmem:[#allocation2 + $0x81] sm:$0xff] %vm892_vm0, %v704_v37  ;;  %v1710_v4 = vsel %vm1175_vm2, %v1708_v52, %v6102_v51  ;;  %v1189_v15 = vrot.slane %v1087_v10, 1  ;;  %v1366_v19 = vrot.slane %v1087_v10, 2  ;;  %v4414_v21 = vld [vmem:[%s7763_s4 + $0x100] sm:$0xff]  ;;  %v6169_v24 = vld [vmem:[#allocation2 + $0x50] sm:$0xff] }
 0x171   : > { %v595_v33 = vadd.f32 %v5998_v14, %v594_v26  ;;  %903 = vst.msk [vmem:[#allocation2 + $0x79] sm:$0xff] %vm892_vm0, %v703_v38  ;;  %v6140_v11 = vpack.c.bf16 %v4411_v6, %v4410_v5  ;;  %v1888_v12 = vsel %vm1352_vm3, %v6134_v7, %v1887_v8  ;;  %v1886_v13 = vsel %vm1352_vm3, %v1884_v9, %v6134_v7  ;;  %v1615_v25 = vld [vmem:[#allocation2 + $0x58] sm:$0x3]  ;;  %v4416_v29 = vld [vmem:[%s7763_s4 + $0x110] sm:$0xff] }
 0x172   : > { %v706_v39 = vmax.f32 %v600_v32, 0.0  ;;  %5265 = vmatpush3.bf16.msra.mxu0 %v6113_v60  ;;  %v1190_v18 = vsel %vm1175_vm2, %v6102_v51, %v1189_v15  ;;  %v1367_v26 = vsel %vm1352_vm3, %v6134_v7, %v1366_v19  ;;  %v2875_v27 = vrot.slane %v2778_v20, 1  ;;  %v1090_v47 = vld [vmem:[#allocation2 + $0x58] sm:$0x3] }
 0x173   : > { %v4811_v34 = vpop.f32.mrb[14].mxu0  ;;  %v705_v40 = vmax.f32 %v595_v33, 0.0  ;;  %7803 = vst [vmem:[#allocation17_spill] sm:$0xff] %v6140_v11  ;;  %5267 = vmatprep.subr.bf16.mxu0 %v6140_v11  ;;  %v6174_v28 = vpack.c.bf16 %v4415_v22, %v4414_v21  ;;  %v1714_v33 = vrot.slane %v6169_v24, 1  ;;  %v1890_v44 = vrot.slane %v6169_v24, 2 }
 0x174   : > { %1961 = vrot.lane.b32.xlu1 %v1883_v30, %s5620_s16  ;;  %1785 = vrot.lane.b32.xlu0 %v1707_v31, %s5619_s12  ;;  %v604_v35 = vpop.f32.mrb[15].mxu0  ;;  %906 = vst.msk [vmem:[#allocation2 + $0x99] sm:$0xff] %vm892_vm0, %v706_v39  ;;  %v610_v53 = vadd.f32 %v4811_v34, %v5998_v14  ;;  %v4417_v30 = vld [vmem:[%s7763_s4 + $0x118] sm:$0xff]  ;;  %v1716_v34 = vrot.slane %v1615_v25, 1  ;;  %v2876_v38 = vsel %vm1175_vm2, %v6102_v51, %v2875_v27  ;;  %v1892_v45 = vrot.slane %v1615_v25, 2 }
 0x175   : > { %905 = vst.msk [vmem:[#allocation2 + $0x91] sm:$0xff] %vm892_vm0, %v705_v40  ;;  %v605_v54 = vadd.f32 %v5998_v14, %v604_v35  ;;  %7805 = vst [vmem:[#allocation19_spill] sm:$0xff] %v6174_v28  ;;  %v6188_v36 = vpack.c.bf16 %v4417_v30, %v4416_v29  ;;  %v3051_v46 = vrot.slane %v2778_v20, 2  ;;  %v1194_v51 = vrot.slane %v1090_v47, 1  ;;  %v6244_v25 = vld [vmem:[#allocation2 + $0x70] sm:$0x3] }
 0x176   : > { %v708_v61 = vmax.f32 %v610_v53, 0.0  ;;  %5269 = vmatpush3.bf16.msra.mxu0 %v6140_v11  ;;  %v1893_v49 = vsel %vm1352_vm3, %v1890_v44, %v1892_v45 }
 0x177   : > { %v4814_v48 = vpop.f32.mrb[16].mxu0  ;;  %v707_v62 = vmax.f32 %v605_v54, 0.0  ;;  %7806 = vst [vmem:[#allocation20_spill] sm:$0xff] %v6188_v36  ;;  %v3052_v50 = vsel %vm1352_vm3, %v6134_v7, %v3051_v46  ;;  %v1195_v53 = vsel %vm1175_vm2, %v1714_v33, %v1194_v51  ;;  %v1621_v29 = vld [vmem:[#allocation2 + $0x88] sm:$0x3] }
 0x178   : > { %1262 = vrot.lane.b32.xlu1 %v1185_v43, %s5619_s12  ;;  %1260 = vrot.lane.b32.xlu0 %v1705_v17, %s5619_s12  ;;  %v614_v55 = vpop.f32.mrb[17].mxu0  ;;  %v620_v56 = vadd.f32 %v4814_v48, %v5998_v14  ;;  %908 = vst.msk [vmem:[#allocation2 + $0xb1] sm:$0xff] %vm892_vm0, %v708_v61  ;;  %v4413_v17 = vld [vmem:[%s7763_s4 + $0xf8] sm:$0xff]  ;;  %v1717_v43 = vsel %vm1175_vm2, %v1714_v33, %v1716_v34  ;;  %v6203_v48 = vld [vmem:[#allocation2 + $0x48] sm:$0xff]  ;;  %v1618_v61 = vld [vmem:[#allocation2 + $0x70] sm:$0x3] }
 0x179   : > { %v615_v57 = vadd.f32 %v5998_v14, %v614_v55  ;;  %907 = vst.msk [vmem:[#allocation2 + $0xa9] sm:$0xff] %vm892_vm0, %v707_v62  ;;  %v1713_v52 = vrot.slane %v6203_v48, 1  ;;  %v1371_v55 = vrot.slane %v1090_v47, 2  ;;  %v1897_v15 = vrot.slane %v1618_v61, 2  ;;  %v6248_v27 = vld [vmem:[#allocation2 + $0x80] sm:$0xff] }
 0x17a   : > { %v710_v63 = vmax.f32 %v620_v56, 0.0  ;;  %v1889_v56 = vrot.slane %v6203_v48, 2  ;;  %v1724_v34 = vrot.slane %v6248_v27, 1  ;;  %v1902_v51 = vrot.slane %v1621_v29, 2 }
 0x17b   : > { %v709_v0 = vmax.f32 %v615_v57, 0.0  ;;  %v4817_v31 = vpop.f32.mrb[18].mxu0  ;;  %v1715_v54 = vsel %vm1175_vm2, %v1713_v52, %v1714_v33  ;;  %v2781_v57 = vld [vmem:[#allocation2 + $0x58] sm:$0x3]  ;;  %v1372_v62 = vsel %vm1352_vm3, %v1890_v44, %v1371_v55 }
 0x17c   : > { %1439 = vrot.lane.b32.xlu1 %v1362_v59, %s5620_s16  ;;  %1437 = vrot.lane.b32.xlu0 %v1881_v16, %s5620_s16  ;;  %910 = vst.msk [vmem:[#allocation2 + $0xc9] sm:$0xff] %vm892_vm0, %v710_v63  ;;  %v4412_v16 = vld [vmem:[%s7763_s4 + $0xf0] sm:$0xff]  ;;  %v624_v32 = vpop.f32.mrb[19].mxu0  ;;  %v630_v35 = vadd.f32 %v4817_v31, %v5998_v14  ;;  %v6217_v59 = vld [vmem:[#allocation2 + $0x68] sm:$0xff]  ;;  %v1891_v63 = vsel %vm1352_vm3, %v1889_v56, %v1890_v44  ;;  %v3056_v22 = vrot.slane %v2781_v57, 2 }
 0x17d   : > { %909 = vst.msk [vmem:[#allocation2 + $0xc1] sm:$0xff] %vm892_vm0, %v709_v0  ;;  %v6167_v23 = vpack.c.bf16 %v4413_v17, %v4412_v16  ;;  %v625_v37 = vadd.f32 %v5998_v14, %v624_v32  ;;  %v2880_v0 = vrot.slane %v2781_v57, 1  ;;  %v1093_v17 = vld [vmem:[#allocation2 + $0x70] sm:$0x3]  ;;  %v2885_v32 = vrot.slane %v6244_v25, 1 }
 0x17e   : > { %v712_v39 = vmax.f32 %v630_v35, 0.0  ;;  %v1199_v19 = vrot.slane %v1093_v17, 1  ;;  %v1376_v21 = vrot.slane %v1093_v17, 2  ;;  %v3057_v31 = vsel %vm1352_vm3, %v1890_v44, %v3056_v22  ;;  %v1096_v56 = vld [vmem:[#allocation2 + $0x88] sm:$0x3]  ;;  %v6308_v22 = vpop.permute.xlu1 %1258 }
 0x17f   : > { %7804 = vst [vmem:[#allocation18_spill] sm:$0xff] %v6167_v23  ;;  %5271 = vmatprep.subr.bf16.mxu0 %v6167_v23  ;;  %v711_v40 = vmax.f32 %v625_v37, 0.0  ;;  %v2881_v5 = vsel %vm1175_vm2, %v1714_v33, %v2880_v0  ;;  %v4820_v6 = vpop.f32.mrb[20].mxu0  ;;  %v1726_v35 = vrot.slane %v1621_v29, 1  ;;  %v6288_v0 = vld [vmem:[#allocation2 + $0x88] sm:$0x3] }
 0x180   : > { %1789 = vrot.lane.b32.xlu1 %v1712_v1, %s5619_s12  ;;  %1787 = vrot.lane.b32.xlu0 %v1710_v4, %s5619_s12  ;;  %912 = vst.msk [vmem:[#allocation2 + $0xe1] sm:$0xff] %vm892_vm0, %v712_v39  ;;  %v1719_v1 = vrot.slane %v6217_v59, 1  ;;  %v640_v7 = vadd.f32 %v4820_v6, %v5998_v14  ;;  %v634_v8 = vpop.f32.mrb[21].mxu0  ;;  %v2890_v6 = vrot.slane %v6288_v0, 1 }
 0x181   : > { %5273 = vmatpush3.bf16.msra.mxu0 %v6167_v23  ;;  %911 = vst.msk [vmem:[#allocation2 + $0xd9] sm:$0xff] %vm892_vm0, %v711_v40  ;;  %v635_v10 = vadd.f32 %v5998_v14, %v634_v8  ;;  %v1727_v45 = vsel %vm1175_vm2, %v1724_v34, %v1726_v35 }
 0x182   : > { %5275 = vmatprep.subr.bf16.mxu0 %v6174_v28  ;;  %v1200_v20 = vsel %vm1175_vm2, %v1719_v1, %v1199_v19  ;;  %v2886_v37 = vsel %vm1175_vm2, %v1719_v1, %v2885_v32 }
 0x183   : > { %v713_v16 = vmax.f32 %v635_v10, 0.0  ;;  %v4823_v40 = vpop.f32.mrb[22].mxu0 }
 0x184   : > { %1965 = vrot.lane.b32.xlu1 %v1888_v12, %s5620_s16  ;;  %1963 = vrot.lane.b32.xlu0 %v1886_v13, %s5620_s16  ;;  %v714_v12 = vmax.f32 %v640_v7, 0.0  ;;  %v644_v44 = vpop.f32.mrb[23].mxu0  ;;  %v3061_v7 = vrot.slane %v6244_v25, 2 }
 0x185   : > { %5277 = vmatpush3.bf16.msra.mxu0 %v6174_v28  ;;  %913 = vst.msk [vmem:[#allocation2 + $0xf1] sm:$0xff] %vm892_vm0, %v713_v16  ;;  %v645_v46 = vadd.f32 %v5998_v14, %v644_v44 }
 0x186   : > { %5279 = vmatprep.subr.bf16.mxu0 %v6188_v36  ;;  %914 = vst.msk [vmem:[#allocation2 + $0xf9] sm:$0xff] %vm892_vm0, %v714_v12 }
 0x187   : > { %v715_v52 = vmax.f32 %v645_v46, 0.0  ;;  %v4826_v8 = vpop.f32.mrb[24].mxu0 }
 0x188   : > { %1266 = vrot.lane.b32.xlu1 %v1190_v18, %s5619_s12  ;;  %1264 = vrot.lane.b32.xlu0 %v1710_v4, %s5619_s12  ;;  %v654_v10 = vpop.f32.mrb[25].mxu0 }
 0x189   : > { %5281 = vmatpush3.bf16.msra.mxu0 %v6188_v36  ;;  %915 = vst.msk [vmem:[#allocation2 + $0x109] sm:$0xff] %vm892_vm0, %v715_v52  ;;  %v655_v16 = vadd.f32 %v5998_v14, %v654_v10 }
 0x18c   : > { %1443 = vrot.lane.b32.xlu1 %v1367_v26, %s5620_s16  ;;  %1441 = vrot.lane.b32.xlu0 %v1886_v13, %s5620_s16  ;;  %v6246_v26 = vld [vmem:[#allocation2 + $0x60] sm:$0xff] }
 0x18d   : > { %v1718_v33 = vrot.slane %v6246_v26, 1  ;;  %v1894_v39 = vrot.slane %v6246_v26, 2 }
 0x190   : > { %2954 = vrot.lane.b32.xlu1 %v2876_v38, %s5619_s12  ;;  %2952 = vrot.lane.b32.xlu0 %v1710_v4, %s5619_s12  ;;  %v1721_v4 = vrot.slane %v1618_v61, 1  ;;  %v1720_v38 = vsel %vm1175_vm2, %v1718_v33, %v1719_v1  ;;  %v1204_v61 = vrot.slane %v1096_v56, 1  ;;  %v6326_v33 = vpop.permute.xlu1 %1435 }
 0x192   : > { %v1722_v9 = vsel %vm1175_vm2, %v1719_v1, %v1721_v4  ;;  %v6290_v1 = vld [vmem:[#allocation2 + $0x98] sm:$0xff]  ;;  %v1624_v4 = vld [vmem:[#allocation2 + $0xa0] sm:$0x3] }
 0x193   : > { %v6300_v12 = vrot.slane %v6290_v1, 1  ;;  %v6317_v29 = vrot.slane %v6290_v1, 2 }
 0x194   : > { %1793 = vrot.lane.b32.xlu1 %v1717_v43, %s5619_s12  ;;  %3128 = vrot.lane.b32.xlu0 %v1886_v13, %s5620_s16  ;;  %v6231_v13 = vrot.slane %v6217_v59, 2  ;;  %v650_v43 = vadd.f32 %v4823_v40, %v5998_v14 }
 0x196   : > { %v1898_v18 = vsel %vm1352_vm3, %v6231_v13, %v1897_v15  ;;  %v1377_v30 = vsel %vm1352_vm3, %v6231_v13, %v1376_v21  ;;  %v716_v47 = vmax.f32 %v650_v43, 0.0  ;;  %v1731_v15 = vrot.slane %v1624_v4, 1  ;;  %v6306_v21 = vpop.permute.xlu0 %1256 }
 0x197   : > { %v3062_v19 = vsel %vm1352_vm3, %v6231_v13, %v3061_v7 }
 0x198   : > { %1969 = vrot.lane.b32.xlu1 %v1893_v49, %s5620_s16  ;;  %3130 = vrot.lane.b32.xlu0 %v3052_v50, %s5620_s16  ;;  %v1896_v49 = vsel %vm1352_vm3, %v1894_v39, %v6231_v13  ;;  %v6269_v50 = vrot.slane %v6248_v27, 2  ;;  %916 = vst.msk [vmem:[#allocation2 + $0x111] sm:$0xff] %vm892_vm0, %v716_v47  ;;  %v1732_v25 = vsel %vm1175_vm2, %v6300_v12, %v1731_v15  ;;  %v1907_v13 = vrot.slane %v1624_v4, 2  ;;  %v6358_v4 = vld [vmem:[#allocation2 + $0xb0] sm:$0xff] }
 0x199   : > { %v6373_v15 = vrot.slane %v6358_v4, 1 }
 0x19a   : > { %v6324_v32 = vpop.permute.xlu0 %1433 }
 0x19c   : > { %1270 = vrot.lane.b32.xlu1 %v1195_v53, %s5619_s12  ;;  %1791 = vrot.lane.b32.xlu0 %v1715_v54, %s5619_s12  ;;  %v6273_v53 = vld [vmem:[#allocation2 + $0x78] sm:$0xff] }
 0x19d   : > { %v1201_v55 = vrot.slane %v6273_v53, 1 }
 0x19f   : > { %v1203_v57 = vsel %vm1175_vm2, %v1201_v55, %v1724_v34  ;;  %v6355_v55 = vld [vmem:[#allocation2 + $0xa0] sm:$0x3]  ;;  %v1639_v36 = vld [vmem:[#allocation2 + $0x118] sm:$0x3] }
 0x1a0   : > { %1447 = vrot.lane.b32.xlu1 %v1372_v62, %s5620_s16  ;;  %1967 = vrot.lane.b32.xlu0 %v1891_v63, %s5620_s16  ;;  %v1205_v62 = vsel %vm1175_vm2, %v1724_v34, %v1204_v61 }
 0x1a4   : > { %2958 = vrot.lane.b32.xlu1 %v2881_v5, %s5619_s12  ;;  %1268 = vrot.lane.b32.xlu0 %v1715_v54, %s5619_s12 }
 0x1a8   : > { %1797 = vrot.lane.b32.xlu1 %v1722_v9, %s5619_s12  ;;  %1445 = vrot.lane.b32.xlu0 %v1891_v63, %s5620_s16  ;;  %v660_v9 = vadd.f32 %v4826_v8, %v5998_v14  ;;  %v2895_v8 = vrot.slane %v6355_v55, 1 }
 0x1aa   : > { %v718_v17 = vmax.f32 %v660_v9, 0.0  ;;  %v3066_v9 = vrot.slane %v6288_v0, 2  ;;  %v2896_v0 = vsel %vm1175_vm2, %v6300_v12, %v2895_v8 }
 0x1ac   : > { %1973 = vrot.lane.b32.xlu1 %v1898_v18, %s5620_s16  ;;  %2956 = vrot.lane.b32.xlu0 %v1715_v54, %s5619_s12  ;;  %v1903_v54 = vsel %vm1352_vm3, %v6269_v50, %v1902_v51  ;;  %v2891_v18 = vsel %vm1175_vm2, %v1724_v34, %v2890_v6  ;;  %918 = vst.msk [vmem:[#allocation2 + $0x129] sm:$0xff] %vm892_vm0, %v718_v17 }
 0x1ad   : > { %v1908_v34 = vsel %vm1352_vm3, %v6317_v29, %v1907_v13 }
 0x1b0   : > { %1274 = vrot.lane.b32.xlu1 %v1200_v20, %s5619_s12  ;;  %3132 = vrot.lane.b32.xlu0 %v1891_v63, %s5620_s16  ;;  %v1381_v63 = vrot.slane %v1096_v56, 2  ;;  %v717_v20 = vmax.f32 %v655_v16, 0.0 }
 0x1b2   : > { %v1382_v5 = vsel %vm1352_vm3, %v6269_v50, %v1381_v63  ;;  %917 = vst.msk [vmem:[#allocation2 + $0x121] sm:$0xff] %vm892_vm0, %v717_v20 }
 0x1b4   : > { %1451 = vrot.lane.b32.xlu1 %v1377_v30, %s5620_s16  ;;  %3134 = vrot.lane.b32.xlu0 %v3057_v31, %s5620_s16  ;;  %v1899_v30 = vrot.slane %v6273_v53, 2  ;;  %v6322_v31 = vld [vmem:[#allocation2 + $0x90] sm:$0xff] }
 0x1b6   : > { %v1901_v35 = vsel %vm1352_vm3, %v1899_v30, %v6269_v50 }
 0x1b8   : > { %2962 = vrot.lane.b32.xlu1 %v2886_v37, %s5619_s12  ;;  %1795 = vrot.lane.b32.xlu0 %v1720_v38, %s5619_s12  ;;  %v1206_v37 = vrot.slane %v6322_v31, 1 }
 0x1ba   : > { %v6341_v43 = vsel %vm1175_vm2, %v1206_v37, %v6300_v12  ;;  %v6394_v37 = vrot.slane %v6358_v4, 2 }
 0x1bc   : > { %1801 = vrot.lane.b32.xlu1 %v1727_v45, %s5619_s12  ;;  %1971 = vrot.lane.b32.xlu0 %v1896_v49, %s5620_s16  ;;  %v4829_v45 = vpop.f32.mrb[26].mxu0 }
 0x1c0   : > { %1977 = vrot.lane.b32.xlu1 %v1903_v54, %s5620_s16  ;;  %1272 = vrot.lane.b32.xlu0 %v1720_v38, %s5619_s12  ;;  %v664_v54 = vpop.f32.mrb[27].mxu0 }
 0x1c1   : > { %v665_v61 = vadd.f32 %v5998_v14, %v664_v54  ;;  %v4832_v20 = vpop.f32.mrb[28].mxu0 }
 0x1c2   : > { %v680_v13 = vadd.f32 %v4832_v20, %v5998_v14  ;;  %v674_v30 = vpop.f32.mrb[29].mxu0 }
 0x1c3   : > { %v719_v6 = vmax.f32 %v665_v61, 0.0 }
 0x1c4   : > { %1276 = vrot.lane.b32.xlu1 %v1203_v57, %s5619_s12  ;;  %1449 = vrot.lane.b32.xlu0 %v1896_v49, %s5620_s16 }
 0x1c5   : > { %919 = vst.msk [vmem:[#allocation2 + $0x139] sm:$0xff] %vm892_vm0, %v719_v6  ;;  %v1102_v6 = vld [vmem:[#allocation2 + $0xb8] sm:$0x3] }
 0x1c8   : > { %1278 = vrot.lane.b32.xlu1 %v1205_v62, %s5619_s12  ;;  %2960 = vrot.lane.b32.xlu0 %v1720_v38, %s5619_s12  ;;  %v1099_v38 = vld [vmem:[#allocation2 + $0xa0] sm:$0x3] }
 0x1c9   : > { %v1209_v44 = vrot.slane %v1099_v38, 1  ;;  %v1386_v52 = vrot.slane %v1099_v38, 2 }
 0x1cb   : > { %v1210_v51 = vsel %vm1175_vm2, %v6300_v12, %v1209_v44  ;;  %v675_v12 = vadd.f32 %v5998_v14, %v674_v30  ;;  %v1904_v44 = vrot.slane %v6322_v31, 2  ;;  %v6437_v30 = vld [vmem:[#allocation2 + $0xb8] sm:$0x3] }
 0x1cc   : > { %1455 = vrot.lane.b32.xlu1 %v1382_v5, %s5620_s16  ;;  %3136 = vrot.lane.b32.xlu0 %v1896_v49, %s5620_s16  ;;  %v670_v49 = vadd.f32 %v4829_v45, %v5998_v14  ;;  %v1627_v5 = vld [vmem:[#allocation2 + $0xb8] sm:$0x3] }
 0x1cd   : > { %v1912_v38 = vrot.slane %v1627_v5, 2  ;;  %v721_v45 = vmax.f32 %v675_v12, 0.0 }
 0x1ce   : > { %v720_v56 = vmax.f32 %v670_v49, 0.0  ;;  %v6400_v49 = vld [vmem:[#allocation2 + $0xa8] sm:$0xff] }
 0x1cf   : > { %921 = vst.msk [vmem:[#allocation2 + $0x151] sm:$0xff] %vm892_vm0, %v721_v45  ;;  %v1913_v61 = vsel %vm1352_vm3, %v6394_v37, %v1912_v38  ;;  %v1630_v38 = vld [vmem:[#allocation2 + $0xd0] sm:$0x3]  ;;  %v2900_v45 = vrot.slane %v6437_v30, 1 }
 0x1d0   : > { %2966 = vrot.lane.b32.xlu1 %v2891_v18, %s5619_s12  ;;  %3138 = vrot.lane.b32.xlu0 %v3062_v19, %s5620_s16  ;;  %920 = vst.msk [vmem:[#allocation2 + $0x141] sm:$0xff] %vm892_vm0, %v720_v56  ;;  %v3067_v19 = vsel %vm1352_vm3, %v6269_v50, %v3066_v9 }
 0x1d4   : > { %1805 = vrot.lane.b32.xlu1 %v1732_v25, %s5619_s12  ;;  %1799 = vrot.lane.b32.xlu0 %v1203_v57, %s5619_s12 }
 0x1d6   : > { %v6861_v11 = vld [vmem:[#allocation2 + $0x150] sm:$0xff] }
 0x1d8   : > { %1981 = vrot.lane.b32.xlu1 %v1908_v34, %s5620_s16  ;;  %1975 = vrot.lane.b32.xlu0 %v1901_v35, %s5620_s16 }
 0x1da   : > { %v6335_v39 = vpop.permute.xlu1 %1845  ;;  %v6337_v40 = vpop.permute.xlu0 %1843 }
 0x1dc   : > { %1280 = vrot.lane.b32.xlu1 %v6341_v43, %s5619_s12  ;;  %1453 = vrot.lane.b32.xlu0 %v1901_v35, %s5620_s16 }
 0x1de   : > { %v6346_v46 = vpop.permute.xlu1 %2021  ;;  %v6348_v47 = vpop.permute.xlu0 %2019 }
 0x1e0   : > { %1282 = vrot.lane.b32.xlu1 %v1210_v51, %s5619_s12  ;;  %2964 = vrot.lane.b32.xlu0 %v1203_v57, %s5619_s12  ;;  %v1387_v57 = vsel %vm1352_vm3, %v6317_v29, %v1386_v52  ;;  %v4835_v51 = vpop.f32.mrb[30].mxu0 }
 0x1e1   : > { %v690_v56 = vadd.f32 %v4835_v51, %v5998_v14 }
 0x1e2   : > { %v1960_v62 = vpop.permute.xlu1 %1959  ;;  %v1784_v63 = vpop.permute.xlu0 %1783 }
 0x1e3   : > { %v2055_v7 = vsel %vm892_vm0, %v6044_v2, %v1784_v63  ;;  %v1736_v2 = vrot.slane %v1627_v5, 1  ;;  %v1211_v63 = vrot.slane %v6400_v49, 1  ;;  %v684_v5 = vpop.f32.mrb[31].mxu0 }
 0x1e4   : > { %1459 = vrot.lane.b32.xlu1 %v1387_v57, %s5620_s16  ;;  %3140 = vrot.lane.b32.xlu0 %v1901_v35, %s5620_s16  ;;  %v2087_v10 = vsel %vm1561_vm4, %v2055_v7, %v1960_v62  ;;  %v722_v35 = vmax.f32 %v680_v13, 0.0  ;;  %v1906_v62 = vsel %vm1352_vm3, %v1904_v44, %v6317_v29  ;;  %v724_v7 = vmax.f32 %v690_v56, 0.0 }
 0x1e5   : > { %4898 = vmatprep.mubr.msk.f32.mxu1 %vm2132_vm5, %v2087_v10  ;;  %v685_v57 = vadd.f32 %v5998_v14, %v684_v5  ;;  %v1391_v13 = vrot.slane %v1102_v6, 2  ;;  %v1741_v56 = vrot.slane %v1630_v38, 1  ;;  %v2901_v5 = vsel %vm1175_vm2, %v6373_v15, %v2900_v45 }
 0x1e6   : > { %v1962_v16 = vpop.permute.xlu1 %1961  ;;  %v1786_v17 = vpop.permute.xlu0 %1785  ;;  %922 = vst.msk [vmem:[#allocation2 + $0x159] sm:$0xff] %vm892_vm0, %v722_v35  ;;  %924 = vst.msk [vmem:[#allocation2 + $0x171] sm:$0xff] %vm892_vm0, %v724_v7  ;;  %v6445_v35 = vld [vmem:[#allocation2 + $0xc8] sm:$0xff] }
 0x1e7   : > { %v2056_v18 = vsel %vm892_vm0, %v6046_v3, %v1786_v17  ;;  %v1737_v3 = vsel %vm1175_vm2, %v6373_v15, %v1736_v2  ;;  %v723_v10 = vmax.f32 %v685_v57, 0.0  ;;  %v6420_v2 = vsel %vm1175_vm2, %v1211_v63, %v6373_v15 }
 0x1e8   : > { %v2088_v25 = vsel %vm1561_vm4, %v2056_v18, %v1962_v16  ;;  %2970 = vrot.lane.b32.xlu1 %v2896_v0, %s5619_s12  ;;  %3142 = vrot.lane.b32.xlu0 %v3067_v19, %s5620_s16  ;;  %v1214_v16 = vrot.slane %v1102_v6, 1  ;;  %v1392_v44 = vsel %vm1352_vm3, %v6394_v37, %v1391_v13  ;;  %v6454_v51 = vrot.slane %v6445_v35, 1 }
 0x1e9   : > { %4899 = vmatmul.mubr.msk.f32.vlgmr.msra.gmra.mrb[4].mxu1 %vm2132_vm5, %v2088_v25  ;;  %923 = vst.msk [vmem:[#allocation2 + $0x169] sm:$0xff] %vm892_vm0, %v723_v10  ;;  %v6469_v57 = vrot.slane %v6445_v35, 2 }
 0x1ea   : > { %v6389_v34 = vpop.permute.xlu1 %1262  ;;  %v6391_v50 = vpop.permute.xlu0 %1260  ;;  %v1215_v25 = vsel %vm1175_vm2, %v6373_v15, %v1214_v16 }
 0x1eb   : > { %7807 = vst [vmem:[#allocation21_spill] sm:$0xff] %v6389_v34  ;;  %7808 = vst [vmem:[#allocation22_spill] sm:$0xff] %v6391_v50 }
 0x1ec   : > { %1809 = vrot.lane.b32.xlu1 %v1737_v3, %s5619_s12  ;;  %1803 = vrot.lane.b32.xlu0 %v6341_v43, %s5619_s12 }
 0x1ee   : > { %v6404_v52 = vpop.permute.xlu1 %1439  ;;  %v6406_v54 = vpop.permute.xlu0 %1437 }
 0x1ef   : > { %7809 = vst [vmem:[#allocation23_spill] sm:$0xff] %v6404_v52  ;;  %7810 = vst [vmem:[#allocation24_spill] sm:$0xff] %v6406_v54 }
 0x1f0   : > { %1985 = vrot.lane.b32.xlu1 %v1913_v61, %s5620_s16  ;;  %1979 = vrot.lane.b32.xlu0 %v1906_v62, %s5620_s16 }
 0x1f2   : > { %v1790_v8 = vpop.permute.xlu1 %1789  ;;  %v1788_v9 = vpop.permute.xlu0 %1787 }
 0x1f3   : > { %v2058_v14 = vsel %vm892_vm0, %v6078_v41, %v1790_v8  ;;  %v2057_v17 = vsel %vm892_vm0, %v6080_v42, %v1788_v9  ;;  %v1917_v8 = vrot.slane %v1630_v38, 2  ;;  %v1909_v9 = vrot.slane %v6400_v49, 2 }
 0x1f4   : > { %1284 = vrot.lane.b32.xlu1 %v6420_v2, %s5619_s12  ;;  %1457 = vrot.lane.b32.xlu0 %v1906_v62, %s5620_s16 }
 0x1f6   : > { %v1966_v18 = vpop.permute.xlu1 %1965  ;;  %v1964_v0 = vpop.permute.xlu0 %1963 }
 0x1f7   : > { %v2090_v19 = vsel %vm1561_vm4, %v2058_v14, %v1966_v18  ;;  %v2089_v20 = vsel %vm1561_vm4, %v2057_v17, %v1964_v0  ;;  %v1918_v17 = vsel %vm1352_vm3, %v6469_v57, %v1917_v8  ;;  %v1911_v18 = vsel %vm1352_vm3, %v1909_v9, %v6394_v37  ;;  %v1633_v8 = vld [vmem:[#allocation2 + $0xe8] sm:$0x3] }
 0x1f8   : > { %1286 = vrot.lane.b32.xlu1 %v1215_v25, %s5619_s12  ;;  %2968 = vrot.lane.b32.xlu0 %v6341_v43, %s5619_s12  ;;  %v3071_v43 = vrot.slane %v6355_v55, 2  ;;  %v1742_v55 = vsel %vm1175_vm2, %v6454_v51, %v1741_v56 }
 0x1f9   : > { %4901 = vmatprep.mubr.msk.f32.mxu1 %vm2132_vm5, %v2089_v20 }
 0x1fa   : > { %4902 = vmatmul.mubr.msk.f32.gmra.mrb[6].mxu1 %vm2132_vm5, %v2090_v19  ;;  %v6441_v3 = vpop.permute.xlu1 %1266  ;;  %v6443_v12 = vpop.permute.xlu0 %1264  ;;  %v3072_v6 = vsel %vm1352_vm3, %v6317_v29, %v3071_v43  ;;  %v6475_v29 = vld [vmem:[#allocation2 + $0xc0] sm:$0xff]  ;;  %v1105_v19 = vld [vmem:[#allocation2 + $0xd0] sm:$0x3] }
 0x1fb   : > { %7811 = vst [vmem:[#allocation25_spill] sm:$0xff] %v6441_v3  ;;  %7812 = vst [vmem:[#allocation26_spill] sm:$0xff] %v6443_v12  ;;  %v1216_v0 = vrot.slane %v6475_v29, 1  ;;  %v1396_v56 = vrot.slane %v1105_v19, 2  ;;  %v1604_v3 = vld [vmem:[%s7763_s4 + $0x50] sm:$0xff] }
 0x1fc   : > { %1463 = vrot.lane.b32.xlu1 %v1392_v44, %s5620_s16  ;;  %3144 = vrot.lane.b32.xlu0 %v1906_v62, %s5620_s16  ;;  %v1219_v44 = vrot.slane %v1105_v19, 1  ;;  %v1746_v19 = vrot.slane %v1633_v8, 1  ;;  %v1651_v12 = vld [vmem:[#allocation2 + $0x178] sm:$0x3] }
 0x1fd   : > { %v6493_v38 = vsel %vm1175_vm2, %v1216_v0, %v6454_v51 }
 0x1fe   : > { %v6456_v61 = vpop.permute.xlu1 %1443  ;;  %v6458_v63 = vpop.permute.xlu0 %1441 }
 0x1ff   : > { %7813 = vst [vmem:[#allocation27_spill] sm:$0xff] %v6456_v61  ;;  %7814 = vst [vmem:[#allocation28_spill] sm:$0xff] %v6458_v63  ;;  %v6859_v61 = vld [vmem:[#allocation2 + $0x158] sm:$0xff]  ;;  %v6906_v63 = vld [vmem:[#allocation2 + $0x170] sm:$0xff] }
 0x200   : > { %2974 = vrot.lane.b32.xlu1 %v2901_v5, %s5619_s12  ;;  %3146 = vrot.lane.b32.xlu0 %v3072_v6, %s5620_s16  ;;  %v6506_v5 = vld [vmem:[#allocation2 + $0xd0] sm:$0x3] }
 0x202   : > { %v2955_v62 = vpop.permute.xlu1 %2954  ;;  %v2953_v7 = vpop.permute.xlu0 %2952 }
 0x203   : > { %v3224_v15 = vsel %vm892_vm0, %v6080_v42, %v2953_v7  ;;  %v3225_v42 = vsel %vm892_vm0, %v6078_v41, %v2955_v62  ;;  %v1220_v41 = vsel %vm1175_vm2, %v6454_v51, %v1219_v44  ;;  %v6512_v7 = vld [vmem:[#allocation2 + $0xe0] sm:$0xff] }
 0x204   : > { %1813 = vrot.lane.b32.xlu1 %v1742_v55, %s5619_s12  ;;  %1807 = vrot.lane.b32.xlu0 %v6420_v2, %s5619_s12  ;;  %v1744_v0 = vrot.slane %v6512_v7, 1  ;;  %v6539_v44 = vrot.slane %v6512_v7, 2 }
 0x206   : > { %v1794_v10 = vpop.permute.xlu1 %1793  ;;  %v3129_v16 = vpop.permute.xlu0 %3128 }
 0x207   : > { %v3256_v14 = vsel %vm1561_vm4, %v3224_v15, %v3129_v16  ;;  %v1397_v15 = vsel %vm1352_vm3, %v6469_v57, %v1396_v56  ;;  %v2905_v16 = vrot.slane %v6506_v5, 1 }
 0x208   : > { %1989 = vrot.lane.b32.xlu1 %v1918_v17, %s5620_s16  ;;  %1983 = vrot.lane.b32.xlu0 %v1911_v18, %s5620_s16 }
 0x209   : > { %5042 = vmatprep.mubr.msk.f32.mxu0 %vm2132_vm5, %v3256_v14  ;;  %v2060_v14 = vsel %vm892_vm0, %v6169_v24, %v1794_v10 }
 0x20a   : > { %v1970_v20 = vpop.permute.xlu1 %1969  ;;  %v3131_v25 = vpop.permute.xlu0 %3130 }
 0x20b   : > { %v3257_v13 = vsel %vm1561_vm4, %v3225_v42, %v3131_v25  ;;  %v2092_v17 = vsel %vm1561_vm4, %v2060_v14, %v1970_v20 }
 0x20c   : > { %1288 = vrot.lane.b32.xlu1 %v6493_v38, %s5619_s12  ;;  %1461 = vrot.lane.b32.xlu0 %v1911_v18, %s5620_s16 }
 0x20d   : > { %5043 = vmatmul.mubr.msk.f32.vlgmr.msra.gmra.mrb[32].mxu0 %vm2132_vm5, %v3257_v13 }
 0x20e   : > { %v6499_v45 = vpop.permute.xlu1 %1270  ;;  %v1792_v43 = vpop.permute.xlu0 %1791 }
 0x20f   : > { %7815 = vst [vmem:[#allocation29_spill] sm:$0xff] %v6499_v45  ;;  %v2059_v6 = vsel %vm892_vm0, %v6203_v48, %v1792_v43  ;;  %v1922_v43 = vrot.slane %v1633_v8, 2  ;;  %v1108_v8 = vld [vmem:[#allocation2 + $0xe8] sm:$0x3] }
 0x210   : > { %1290 = vrot.lane.b32.xlu1 %v1220_v41, %s5619_s12  ;;  %2972 = vrot.lane.b32.xlu0 %v6420_v2, %s5619_s12  ;;  %v3076_v2 = vrot.slane %v6437_v30, 2  ;;  %v2906_v30 = vsel %vm1175_vm2, %v6454_v51, %v2905_v16  ;;  %v1914_v41 = vrot.slane %v6475_v29, 2 }
 0x212   : > { %v6510_v55 = vpop.permute.xlu1 %1447  ;;  %v1968_v62 = vpop.permute.xlu0 %1967  ;;  %v3077_v10 = vsel %vm1352_vm3, %v6394_v37, %v3076_v2  ;;  %v6545_v37 = vld [vmem:[#allocation2 + $0xd8] sm:$0xff] }
 0x213   : > { %7816 = vst [vmem:[#allocation30_spill] sm:$0xff] %v6510_v55  ;;  %v2091_v9 = vsel %vm1561_vm4, %v2059_v6, %v1968_v62  ;;  %v1923_v6 = vsel %vm1352_vm3, %v6539_v44, %v1922_v43  ;;  %v1916_v62 = vsel %vm1352_vm3, %v1914_v41, %v6469_v57  ;;  %v1401_v41 = vrot.slane %v1108_v8, 2 }
 0x214   : > { %1467 = vrot.lane.b32.xlu1 %v1397_v15, %s5620_s16  ;;  %3148 = vrot.lane.b32.xlu0 %v1911_v18, %s5620_s16  ;;  %v1747_v18 = vsel %vm1175_vm2, %v1744_v0, %v1746_v19  ;;  %v1224_v19 = vrot.slane %v1108_v8, 1 }
 0x215   : > { %4904 = vmatprep.mubr.msk.f32.mxu1 %vm2132_vm5, %v2091_v9  ;;  %v1221_v9 = vrot.slane %v6545_v37, 1 }
 0x216   : > { %4905 = vmatmul.mubr.msk.f32.gmra.mrb[8].mxu1 %vm2132_vm5, %v2092_v17  ;;  %v2959_v42 = vpop.permute.xlu1 %2958  ;;  %v6527_v25 = vpop.permute.xlu0 %1268  ;;  %v1225_v43 = vsel %vm1175_vm2, %v1744_v0, %v1224_v19 }
 0x217   : > { %7817 = vst [vmem:[#allocation31_spill] sm:$0xff] %v6527_v25  ;;  %v6560_v17 = vsel %vm1175_vm2, %v1221_v9, %v1744_v0  ;;  %v1636_v9 = vld [vmem:[#allocation2 + $0x100] sm:$0x3] }
 0x218   : > { %2978 = vrot.lane.b32.xlu1 %v2906_v30, %s5619_s12  ;;  %3150 = vrot.lane.b32.xlu0 %v3077_v10, %s5620_s16  ;;  %v3227_v30 = vsel %vm892_vm0, %v6169_v24, %v2959_v42  ;;  %v6580_v42 = vld [vmem:[#allocation2 + $0xf8] sm:$0xff] }
 0x21a   : > { %v1798_v20 = vpop.permute.xlu1 %1797  ;;  %v6536_v13 = vpop.permute.xlu0 %1445 }
 0x21b   : > { %7818 = vst [vmem:[#allocation32_spill] sm:$0xff] %v6536_v13 }
 0x21c   : > { %1817 = vrot.lane.b32.xlu1 %v1747_v18, %s5619_s12  ;;  %1811 = vrot.lane.b32.xlu0 %v6493_v38, %s5619_s12 }
 0x21e   : > { %v1974_v51 = vpop.permute.xlu1 %1973  ;;  %v2957_v56 = vpop.permute.xlu0 %2956 }
 0x21f   : > { %v3226_v15 = vsel %vm892_vm0, %v6203_v48, %v2957_v56  ;;  %v6575_v56 = vld [vmem:[#allocation2 + $0xe8] sm:$0x3] }
 0x220   : > { %1993 = vrot.lane.b32.xlu1 %v1923_v6, %s5620_s16  ;;  %1987 = vrot.lane.b32.xlu0 %v1916_v62, %s5620_s16  ;;  %v2910_v8 = vrot.slane %v6575_v56, 1 }
 0x222   : > { %v6556_v16 = vpop.permute.xlu1 %1274  ;;  %v3133_v2 = vpop.permute.xlu0 %3132 }
 0x223   : > { %7819 = vst [vmem:[#allocation33_spill] sm:$0xff] %v6556_v16  ;;  %v3258_v14 = vsel %vm1561_vm4, %v3226_v15, %v3133_v2  ;;  %v1402_v15 = vsel %vm1352_vm3, %v6539_v44, %v1401_v41  ;;  %v3081_v2 = vrot.slane %v6506_v5, 2 }
 0x224   : > { %1292 = vrot.lane.b32.xlu1 %v6560_v17, %s5619_s12  ;;  %1465 = vrot.lane.b32.xlu0 %v1916_v62, %s5620_s16 }
 0x225   : > { %5045 = vmatprep.mubr.msk.f32.mxu0 %vm2132_vm5, %v3258_v14  ;;  %v1751_v14 = vrot.slane %v1636_v9, 1  ;;  %v3082_v5 = vsel %vm1352_vm3, %v6469_v57, %v3081_v2  ;;  %v6613_v57 = vrot.slane %v6580_v42, 2 }
 0x226   : > { %v6568_v48 = vpop.permute.xlu1 %1451  ;;  %v3135_v10 = vpop.permute.xlu0 %3134 }
 0x227   : > { %7820 = vst [vmem:[#allocation34_spill] sm:$0xff] %v6568_v48  ;;  %v3259_v18 = vsel %vm1561_vm4, %v3227_v30, %v3135_v10  ;;  %v1594_v48 = vld [vmem:[%s7763_s4] sm:$0xff] }
 0x228   : > { %1294 = vrot.lane.b32.xlu1 %v1225_v43, %s5619_s12  ;;  %2976 = vrot.lane.b32.xlu0 %v6493_v38, %s5619_s12  ;;  %v6589_v38 = vrot.slane %v6580_v42, 1  ;;  %v2911_v43 = vsel %vm1175_vm2, %v1744_v0, %v2910_v8  ;;  %v1919_v8 = vrot.slane %v6545_v37, 2 }
 0x229   : > { %5046 = vmatmul.mubr.msk.f32.gmra.mrb[34].mxu0 %vm2132_vm5, %v3259_v18 }
 0x22a   : > { %v6578_v6 = vpop.permute.xlu1 %2962  ;;  %v1796_v24 = vpop.permute.xlu0 %1795 }
 0x22b   : > { %v2061_v19 = vsel %vm892_vm0, %v6246_v26, %v1796_v24  ;;  %v1752_v24 = vsel %vm1175_vm2, %v6589_v38, %v1751_v14 }
 0x22c   : > { %1471 = vrot.lane.b32.xlu1 %v1402_v15, %s5620_s16  ;;  %3152 = vrot.lane.b32.xlu0 %v1916_v62, %s5620_s16  ;;  %v2062_v62 = vsel %vm892_vm0, %v6217_v59, %v1798_v20  ;;  %v1927_v20 = vrot.slane %v1636_v9, 2 }
 0x22d   : > { %v2094_v41 = vsel %vm1561_vm4, %v2062_v62, %v1974_v51  ;;  %v6619_v51 = vld [vmem:[#allocation2 + $0xf0] sm:$0xff] }
 0x22e   : > { %v6593_v30 = vpop.permute.xlu1 %1801  ;;  %v1972_v10 = vpop.permute.xlu0 %1971  ;;  %v1226_v9 = vrot.slane %v6619_v51, 1 }
 0x22f   : > { %v2093_v18 = vsel %vm1561_vm4, %v2061_v19, %v1972_v10  ;;  %v1928_v19 = vsel %vm1352_vm3, %v6613_v57, %v1927_v20  ;;  %v1921_v10 = vsel %vm1352_vm3, %v1919_v8, %v6539_v44 }
 0x230   : > { %2982 = vrot.lane.b32.xlu1 %v2911_v43, %s5619_s12  ;;  %3154 = vrot.lane.b32.xlu0 %v3082_v5, %s5620_s16  ;;  %v1111_v43 = vld [vmem:[#allocation2 + $0x100] sm:$0x3] }
 0x231   : > { %4907 = vmatprep.mubr.msk.f32.mxu1 %vm2132_vm5, %v2093_v18  ;;  %v4873_v18 = vpop.f32.mrb[2].mxu1  ;;  %v1229_v20 = vrot.slane %v1111_v43, 1 }
 0x232   : > { %4908 = vmatmul.mubr.msk.f32.gmra.mrb[10].mxu1 %vm2132_vm5, %v2094_v41  ;;  %v6608_v0 = vpop.permute.xlu1 %1977  ;;  %v6610_v15 = vpop.permute.xlu0 %1272 }
 0x233   : > { %7821 = vst [vmem:[#allocation35_spill] sm:$0xff] %v6610_v15  ;;  %v1005_v5 = vpop.f32.mrb[3].mxu1 }
 0x234   : > { %1821 = vrot.lane.b32.xlu1 %v1752_v24, %s5619_s12  ;;  %1815 = vrot.lane.b32.xlu0 %v6560_v17, %s5619_s12  ;;  %v6636_v24 = vsel %vm1175_vm2, %v1226_v9, %v6589_v38  ;;  %v6645_v5 = vld [vmem:[#allocation2 + $0x110] sm:$0xff]  ;;  %v1230_v9 = vsel %vm1175_vm2, %v6589_v38, %v1229_v20  ;;  %v3229_v20 = vsel %vm892_vm0, %v6217_v59, %v6578_v6 }
 0x236   : > { %v6621_v2 = vpop.permute.xlu1 %1276  ;;  %v6623_v14 = vpop.permute.xlu0 %1449 }
 0x237   : > { %7822 = vst [vmem:[#allocation36_spill] sm:$0xff] %v6621_v2  ;;  %7823 = vst [vmem:[#allocation37_spill] sm:$0xff] %v6623_v14  ;;  %v1406_v2 = vrot.slane %v1111_v43, 2  ;;  %v1756_v43 = vrot.slane %v1639_v36, 1 }
 0x238   : > { %1997 = vrot.lane.b32.xlu1 %v1928_v19, %s5620_s16  ;;  %1991 = vrot.lane.b32.xlu0 %v1921_v10, %s5620_s16 }
 0x23a   : > { %v6632_v62 = vpop.permute.xlu1 %1278  ;;  %v2961_v41 = vpop.permute.xlu0 %2960 }
 0x23b   : > { %7824 = vst [vmem:[#allocation38_spill] sm:$0xff] %v6632_v62  ;;  %v3228_v8 = vsel %vm892_vm0, %v6246_v26, %v2961_v41  ;;  %v1595_v26 = vld [vmem:[%s7763_s4 + $0x8] sm:$0xff] }
 0x23c   : > { %1296 = vrot.lane.b32.xlu1 %v6636_v24, %s5619_s12  ;;  %1469 = vrot.lane.b32.xlu0 %v1921_v10, %s5620_s16  ;;  %v5234_v41 = vpack.c.bf16 %v1595_v26, %v1594_v48  ;;  %v3086_v48 = vrot.slane %v6575_v56, 2  ;;  %v1932_v56 = vrot.slane %v1639_v36, 2  ;;  %v1924_v36 = vrot.slane %v6619_v51, 2 }
 0x23e   : > { %v6643_v19 = vpop.permute.xlu1 %1455  ;;  %v3137_v18 = vpop.permute.xlu0 %3136  ;;  %5235 = vmatprep.subr.bf16.mxu1 %v5234_v41 }
 0x23f   : > { %7825 = vst [vmem:[#allocation39_spill] sm:$0xff] %v6643_v19  ;;  %v3260_v62 = vsel %vm1561_vm4, %v3228_v8, %v3137_v18  ;;  %v6661_v8 = vrot.slane %v6645_v5, 1  ;;  %5237 = vmatpush3.bf16.msra.mxu1 %v5234_v41 }
 0x240   : > { %1298 = vrot.lane.b32.xlu1 %v1230_v9, %s5619_s12  ;;  %2980 = vrot.lane.b32.xlu0 %v6560_v17, %s5619_s12  ;;  %v1407_v17 = vsel %vm1352_vm3, %v6613_v57, %v1406_v2  ;;  %v6682_v2 = vrot.slane %v6645_v5, 2 }
 0x241   : > { %5048 = vmatprep.mubr.msk.f32.mxu0 %vm2132_vm5, %v3260_v62  ;;  %v1757_v59 = vsel %vm1175_vm2, %v6661_v8, %v1756_v43 }
 0x242   : > { %v6666_v18 = vpop.permute.xlu1 %2966  ;;  %v3139_v19 = vpop.permute.xlu0 %3138 }
 0x243   : > { %v3261_v9 = vsel %vm1561_vm4, %v3229_v20, %v3139_v19  ;;  %v3087_v19 = vsel %vm1352_vm3, %v6539_v44, %v3086_v48  ;;  %v1933_v44 = vsel %vm1352_vm3, %v6682_v2, %v1932_v56  ;;  %v1597_v48 = vld [vmem:[%s7763_s4 + $0x18] sm:$0xff] }
 0x244   : > { %1475 = vrot.lane.b32.xlu1 %v1407_v17, %s5620_s16  ;;  %3156 = vrot.lane.b32.xlu0 %v1921_v10, %s5620_s16  ;;  %v6686_v10 = vld [vmem:[#allocation2 + $0x108] sm:$0xff]  ;;  %v1596_v17 = vld [vmem:[%s7763_s4 + $0x10] sm:$0xff] }
 0x245   : > { %5049 = vmatmul.mubr.msk.f32.gmra.mrb[36].mxu0 %vm2132_vm5, %v3261_v9  ;;  %v1231_v9 = vrot.slane %v6686_v10, 1  ;;  %v1929_v14 = vrot.slane %v6686_v10, 2 }
 0x246   : > { %v6677_v6 = vpop.permute.xlu1 %1805  ;;  %v1800_v62 = vpop.permute.xlu0 %1799 }
 0x247   : > { %v2063_v26 = vsel %vm892_vm0, %v6273_v53, %v1800_v62  ;;  %v1114_v62 = vld [vmem:[#allocation2 + $0x118] sm:$0x3] }
 0x248   : > { %1825 = vrot.lane.b32.xlu1 %v1757_v59, %s5619_s12  ;;  %3158 = vrot.lane.b32.xlu0 %v3087_v19, %s5620_s16  ;;  %v2064_v59 = vsel %vm892_vm0, %v6248_v27, %v6593_v30  ;;  %v5238_v19 = vpack.c.bf16 %v1597_v48, %v1596_v17  ;;  %v6719_v30 = vsel %vm1175_vm2, %v1231_v9, %v6661_v8  ;;  %v1234_v17 = vrot.slane %v1114_v62, 1  ;;  %v6731_v48 = vld [vmem:[#allocation2 + $0x128] sm:$0xff] }
 0x249   : > { %v2096_v56 = vsel %vm1561_vm4, %v2064_v59, %v6608_v0  ;;  %v1642_v59 = vld [vmem:[#allocation2 + $0x130] sm:$0x3] }
 0x24a   : > { %v6690_v41 = vpop.permute.xlu1 %1981  ;;  %v1976_v43 = vpop.permute.xlu0 %1975  ;;  %5239 = vmatprep.subr.bf16.mxu1 %v5238_v19  ;;  %v1235_v9 = vsel %vm1175_vm2, %v6661_v8, %v1234_v17 }
 0x24b   : > { %v2095_v20 = vsel %vm1561_vm4, %v2063_v26, %v1976_v43  ;;  %5241 = vmatpush3.bf16.msra.mxu1 %v5238_v19  ;;  %v1599_v19 = vld [vmem:[%s7763_s4 + $0x28] sm:$0xff] }
 0x24c   : > { %2001 = vrot.lane.b32.xlu1 %v1933_v44, %s5620_s16  ;;  %1819 = vrot.lane.b32.xlu0 %v6636_v24, %s5619_s12  ;;  %v6723_v44 = vsel %vm1352_vm3, %v1924_v36, %v6613_v57  ;;  %v1598_v36 = vld [vmem:[%s7763_s4 + $0x20] sm:$0xff] }
 0x24d   : > { %4910 = vmatprep.mubr.msk.f32.mxu1 %vm2132_vm5, %v2095_v20 }
 0x24e   : > { %4911 = vmatmul.mubr.msk.f32.gmra.mrb[12].mxu1 %vm2132_vm5, %v2096_v56  ;;  %v6713_v26 = vpop.permute.xlu1 %1280  ;;  %v6715_v43 = vpop.permute.xlu0 %1453  ;;  %v1411_v56 = vrot.slane %v1114_v62, 2 }
 0x24f   : > { %7826 = vst [vmem:[#allocation40_spill] sm:$0xff] %v6713_v26  ;;  %7827 = vst [vmem:[#allocation41_spill] sm:$0xff] %v6715_v43  ;;  %v1761_v26 = vrot.slane %v1642_v59, 1  ;;  %v5242_v43 = vpack.c.bf16 %v1599_v19, %v1598_v36 }
 0x250   : > { %1300 = vrot.lane.b32.xlu1 %v6719_v30, %s5619_s12  ;;  %1995 = vrot.lane.b32.xlu0 %v6723_v44, %s5620_s16  ;;  %v1412_v16 = vsel %vm1352_vm3, %v6682_v2, %v1411_v56 }
 0x251   : > { %5243 = vmatprep.subr.bf16.mxu1 %v5242_v43 }
 0x252   : > { %v6729_v0 = vpop.permute.xlu1 %1282  ;;  %v2965_v20 = vpop.permute.xlu0 %2964  ;;  %5245 = vmatpush3.bf16.msra.mxu1 %v5242_v43 }
 0x253   : > { %7828 = vst [vmem:[#allocation42_spill] sm:$0xff] %v6729_v0  ;;  %v6745_v0 = vrot.slane %v6731_v48, 1  ;;  %v3230_v62 = vsel %vm892_vm0, %v6273_v53, %v2965_v20  ;;  %v3231_v20 = vsel %vm892_vm0, %v6248_v27, %v6666_v18 }
 0x254   : > { %1302 = vrot.lane.b32.xlu1 %v1235_v9, %s5619_s12  ;;  %1473 = vrot.lane.b32.xlu0 %v6723_v44, %s5620_s16 }
 0x255   : > { %v1762_v53 = vsel %vm1175_vm2, %v6745_v0, %v1761_v26  ;;  %v6777_v26 = vld [vmem:[#allocation2 + $0x120] sm:$0xff] }
 0x256   : > { %v6749_v17 = vpop.permute.xlu1 %1459  ;;  %v3141_v9 = vpop.permute.xlu0 %3140  ;;  %v1236_v43 = vrot.slane %v6777_v26, 1  ;;  %v1934_v55 = vrot.slane %v6777_v26, 2 }
 0x257   : > { %7829 = vst [vmem:[#allocation43_spill] sm:$0xff] %v6749_v17  ;;  %v3262_v28 = vsel %vm1561_vm4, %v3230_v62, %v3141_v9  ;;  %v6772_v62 = vrot.slane %v6731_v48, 2  ;;  %v1600_v9 = vld [vmem:[%s7763_s4 + $0x30] sm:$0xff] }
 0x258   : > { %1479 = vrot.lane.b32.xlu1 %v1412_v16, %s5620_s16  ;;  %1823 = vrot.lane.b32.xlu0 %v6719_v30, %s5619_s12  ;;  %v6769_v16 = vsel %vm1352_vm3, %v1929_v14, %v6682_v2  ;;  %v6801_v17 = vsel %vm1175_vm2, %v1236_v43, %v6745_v0 }
 0x259   : > { %5051 = vmatprep.mubr.msk.f32.mxu0 %vm2132_vm5, %v3262_v28  ;;  %v1937_v28 = vrot.slane %v1642_v59, 2  ;;  %v1117_v59 = vld [vmem:[#allocation2 + $0x130] sm:$0x3] }
 0x25a   : > { %v6764_v36 = vpop.permute.xlu1 %2970  ;;  %v3143_v56 = vpop.permute.xlu0 %3142  ;;  %v1239_v15 = vrot.slane %v1117_v59, 1 }
 0x25b   : > { %v3263_v19 = vsel %vm1561_vm4, %v3231_v20, %v3143_v56  ;;  %v1938_v14 = vsel %vm1352_vm3, %v6772_v62, %v1937_v28 }
 0x25c   : > { %1829 = vrot.lane.b32.xlu1 %v1762_v53, %s5619_s12  ;;  %1999 = vrot.lane.b32.xlu0 %v6769_v16, %s5620_s16  ;;  %v1601_v53 = vld [vmem:[%s7763_s4 + $0x38] sm:$0xff]  ;;  %v1240_v23 = vsel %vm1175_vm2, %v6745_v0, %v1239_v15 }
 0x25d   : > { %5052 = vmatmul.mubr.msk.f32.gmra.mrb[38].mxu0 %vm2132_vm5, %v3263_v19  ;;  %v5246_v20 = vpack.c.bf16 %v1601_v53, %v1600_v9  ;;  %v2066_v9 = vsel %vm892_vm0, %v6290_v1, %v6677_v6  ;;  %v1645_v6 = vld [vmem:[#allocation2 + $0x148] sm:$0x3] }
 0x25e   : > { %v6780_v27 = vpop.permute.xlu1 %1809  ;;  %v1804_v18 = vpop.permute.xlu0 %1803 }
 0x25f   : > { %v2065_v56 = vsel %vm892_vm0, %v6322_v31, %v1804_v18  ;;  %5247 = vmatprep.subr.bf16.mxu1 %v5246_v20  ;;  %v2098_v18 = vsel %vm1561_vm4, %v2066_v9, %v6690_v41  ;;  %v6827_v41 = vsel %vm1352_vm3, %v1934_v55, %v6772_v62  ;;  %v1766_v9 = vrot.slane %v1645_v6, 1  ;;  %v1602_v55 = vld [vmem:[%s7763_s4 + $0x40] sm:$0xff] }
 0x260   : > { %2005 = vrot.lane.b32.xlu1 %v1938_v14, %s5620_s16  ;;  %1477 = vrot.lane.b32.xlu0 %v6769_v16, %s5620_s16  ;;  %v2068_v50 = vsel %vm892_vm0, %v6358_v4, %v6780_v27 }
 0x261   : > { %5249 = vmatpush3.bf16.msra.mxu1 %v5246_v20 }
 0x262   : > { %v6796_v19 = vpop.permute.xlu1 %1985  ;;  %v1980_v28 = vpop.permute.xlu0 %1979 }
 0x263   : > { %v2097_v14 = vsel %vm1561_vm4, %v2065_v56, %v1980_v28  ;;  %v6819_v56 = vld [vmem:[#allocation2 + $0x140] sm:$0xff]  ;;  %v6821_v28 = vld [vmem:[#allocation2 + $0x138] sm:$0xff] }
 0x264   : > { %1304 = vrot.lane.b32.xlu1 %v6801_v17, %s5619_s12  ;;  %1827 = vrot.lane.b32.xlu0 %v6801_v17, %s5619_s12  ;;  %v6833_v20 = vrot.slane %v6819_v56, 1 }
 0x265   : > { %4913 = vmatprep.mubr.msk.f32.mxu1 %vm2132_vm5, %v2097_v14  ;;  %v1416_v14 = vrot.slane %v1117_v59, 2 }
 0x266   : > { %4914 = vmatmul.mubr.msk.f32.gmra.mrb[14].mxu1 %vm2132_vm5, %v2098_v18  ;;  %v6815_v43 = vpop.permute.xlu1 %1284  ;;  %v6817_v53 = vpop.permute.xlu0 %1457  ;;  %v1763_v18 = vrot.slane %v6821_v28, 1 }
 0x267   : > { %7830 = vst [vmem:[#allocation44_spill] sm:$0xff] %v6815_v43  ;;  %7831 = vst [vmem:[#allocation45_spill] sm:$0xff] %v6817_v53  ;;  %v1417_v15 = vsel %vm1352_vm3, %v6772_v62, %v1416_v14 }
 0x268   : > { %1306 = vrot.lane.b32.xlu1 %v1240_v23, %s5619_s12  ;;  %2003 = vrot.lane.b32.xlu0 %v6827_v41, %s5620_s16  ;;  %v1603_v23 = vld [vmem:[%s7763_s4 + $0x48] sm:$0xff]  ;;  %v6853_v14 = vsel %vm1175_vm2, %v1763_v18, %v6833_v20  ;;  %v1939_v18 = vrot.slane %v6821_v28, 2 }
 0x269   : > { %v5250_v59 = vpack.c.bf16 %v1603_v23, %v1602_v55  ;;  %v1942_v23 = vrot.slane %v1645_v6, 2 }
 0x26a   : > { %v6836_v43 = vpop.permute.xlu1 %1286  ;;  %v2969_v53 = vpop.permute.xlu0 %2968 }
 0x26b   : > { %7832 = vst [vmem:[#allocation46_spill] sm:$0xff] %v6836_v43  ;;  %v1767_v43 = vsel %vm1175_vm2, %v6833_v20, %v1766_v9  ;;  %v3232_v45 = vsel %vm892_vm0, %v6322_v31, %v2969_v53  ;;  %5251 = vmatprep.subr.bf16.mxu1 %v5250_v59  ;;  %v6865_v9 = vrot.slane %v6819_v56, 2  ;;  %v6873_v31 = vrot.slane %v6859_v61, 1 }
 0x26c   : > { %1483 = vrot.lane.b32.xlu1 %v1417_v15, %s5620_s16  ;;  %1481 = vrot.lane.b32.xlu0 %v6827_v41, %s5620_s16  ;;  %v1648_v15 = vld [vmem:[#allocation2 + $0x160] sm:$0x3] }
 0x26d   : > { %5253 = vmatpush3.bf16.msra.mxu1 %v5250_v59  ;;  %v1771_v53 = vrot.slane %v1648_v15, 1 }
 0x26e   : > { %v6857_v13 = vpop.permute.xlu1 %1463  ;;  %v3145_v25 = vpop.permute.xlu0 %3144 }
 0x26f   : > { %7833 = vst [vmem:[#allocation47_spill] sm:$0xff] %v6857_v13  ;;  %v3264_v55 = vsel %vm1561_vm4, %v3232_v45, %v3145_v25  ;;  %v1768_v45 = vrot.slane %v6861_v11, 1  ;;  %v3233_v25 = vsel %vm892_vm0, %v6290_v1, %v6764_v36  ;;  %v1943_v13 = vsel %vm1352_vm3, %v6865_v9, %v1942_v23  ;;  %v1605_v1 = vld [vmem:[%s7763_s4 + $0x58] sm:$0xff] }
 0x270   : > { %1833 = vrot.lane.b32.xlu1 %v1767_v43, %s5619_s12  ;;  %1831 = vrot.lane.b32.xlu0 %v6853_v14, %s5619_s12  ;;  %v5254_v36 = vpack.c.bf16 %v1605_v1, %v1604_v3  ;;  %v1772_v23 = vsel %vm1175_vm2, %v6873_v31, %v1771_v53  ;;  %v6911_v3 = vrot.slane %v6859_v61, 2  ;;  %v1944_v1 = vrot.slane %v6861_v11, 2 }
 0x271   : > { %5054 = vmatprep.mubr.msk.f32.mxu0 %vm2132_vm5, %v3264_v55  ;;  %v6886_v55 = vsel %vm1352_vm3, %v1939_v18, %v6865_v9  ;;  %v6902_v18 = vsel %vm1175_vm2, %v1768_v45, %v6873_v31  ;;  %v6918_v53 = vrot.slane %v6906_v63, 1  ;;  %v1776_v45 = vrot.slane %v1651_v12, 1 }
 0x272   : > { %v6879_v6 = vpop.permute.xlu1 %2974  ;;  %v3147_v59 = vpop.permute.xlu0 %3146  ;;  %5255 = vmatprep.subr.bf16.mxu1 %v5254_v36  ;;  %v6931_v54 = vsel %vm1352_vm3, %v1944_v1, %v6911_v3  ;;  %v6954_v1 = vrot.slane %v6906_v63, 2 }
 0x273   : > { %v3265_v43 = vsel %vm1561_vm4, %v3233_v25, %v3147_v59  ;;  %5257 = vmatpush3.bf16.msra.mxu1 %v5254_v36 }
 0x274   : > { %2009 = vrot.lane.b32.xlu1 %v1943_v13, %s5620_s16  ;;  %2007 = vrot.lane.b32.xlu0 %v6886_v55, %s5620_s16  ;;  %v6908_v13 = vld [vmem:[#allocation2 + $0x168] sm:$0xff] }
 0x275   : > { %5055 = vmatmul.mubr.msk.f32.gmra.mrb[40].mxu0 %vm2132_vm5, %v3265_v43  ;;  %v1947_v43 = vrot.slane %v1648_v15, 2  ;;  %v1773_v52 = vrot.slane %v6908_v13, 1  ;;  %5290 = vmatprep.subr.bf16.mxu1 %v6109_v58 }
 0x276   : > { %v6904_v25 = vpop.permute.xlu1 %1813  ;;  %v1808_v59 = vpop.permute.xlu0 %1807 }
 0x277   : > { %v2067_v60 = vsel %vm892_vm0, %v6400_v49, %v1808_v59  ;;  %v2100_v59 = vsel %vm1561_vm4, %v2068_v50, %v6796_v19  ;;  %v1949_v50 = vrot.slane %v6908_v13, 2  ;;  %v2802_v19 = vld [vmem:[#allocation2 + $0x100] sm:$0x3] }
 0x278   : > { %1837 = vrot.lane.b32.xlu1 %v1772_v23, %s5619_s12  ;;  %1835 = vrot.lane.b32.xlu0 %v6902_v18, %s5619_s12  ;;  %v1948_v23 = vsel %vm1352_vm3, %v6911_v3, %v1947_v43 }
 0x27a   : > { %v6924_v15 = vpop.permute.xlu1 %1989  ;;  %v1984_v34 = vpop.permute.xlu0 %1983 }
 0x27b   : > { %v2099_v36 = vsel %vm1561_vm4, %v2067_v60, %v1984_v34  ;;  %v1777_v60 = vsel %vm1175_vm2, %v6918_v53, %v1776_v45  ;;  %v6946_v34 = vsel %vm1175_vm2, %v1773_v52, %v6918_v53 }
 0x27c   : > { %2013 = vrot.lane.b32.xlu1 %v1948_v23, %s5620_s16  ;;  %2011 = vrot.lane.b32.xlu0 %v6931_v54, %s5620_s16  ;;  %v1952_v23 = vrot.slane %v1651_v12, 2 }
 0x27d   : > { %4916 = vmatprep.mubr.msk.f32.mxu1 %vm2132_vm5, %v2099_v36 }
 0x27e   : > { %4917 = vmatmul.mubr.msk.f32.gmra.mrb[16].mxu1 %vm2132_vm5, %v2100_v59  ;;  %v6949_v27 = vpop.permute.xlu1 %1288  ;;  %v6951_v43 = vpop.permute.xlu0 %1461  ;;  %v1953_v36 = vsel %vm1352_vm3, %v6954_v1, %v1952_v23  ;;  %v6966_v59 = vsel %vm1352_vm3, %v1949_v50, %v6954_v1  ;;  %v1120_v50 = vld [vmem:[#allocation2 + $0x148] sm:$0x3] }
 0x27f   : > { %7834 = vst [vmem:[#allocation48_spill] sm:$0xff] %v6949_v27  ;;  %7835 = vst [vmem:[#allocation49_spill] sm:$0xff] %v6951_v43  ;;  %v2915_v27 = vrot.slane %v2802_v19, 1 }
 0x280   : > { %1841 = vrot.lane.b32.xlu1 %v1777_v60, %s5619_s12  ;;  %1839 = vrot.lane.b32.xlu0 %v6946_v34, %s5619_s12 }
 0x281   : > { %v2916_v23 = vsel %vm1175_vm2, %v6589_v38, %v2915_v27  ;;  %v1421_v27 = vrot.slane %v1120_v50, 2 }
 0x282   : > { %v6960_v52 = vpop.permute.xlu1 %1290  ;;  %v2973_v45 = vpop.permute.xlu0 %2972 }
 0x283   : > { %7836 = vst [vmem:[#allocation50_spill] sm:$0xff] %v6960_v52  ;;  %v3234_v12 = vsel %vm892_vm0, %v6400_v49, %v2973_v45  ;;  %v3235_v49 = vsel %vm892_vm0, %v6358_v4, %v6879_v6 }
 0x284   : > { %2017 = vrot.lane.b32.xlu1 %v1953_v36, %s5620_s16  ;;  %2015 = vrot.lane.b32.xlu0 %v6966_v59, %s5620_s16 }
 0x286   : > { %v6973_v60 = vpop.permute.xlu1 %1467  ;;  %v3149_v52 = vpop.permute.xlu0 %3148 }
 0x287   : > { %7837 = vst [vmem:[#allocation51_spill] sm:$0xff] %v6973_v60  ;;  %v3266_v43 = vsel %vm1561_vm4, %v3234_v12, %v3149_v52  ;;  %v1244_v52 = vrot.slane %v1120_v50, 1  ;;  %v3091_v12 = vrot.slane %v2802_v19, 2 }
 0x288   : > { %2986 = vrot.lane.b32.xlu1 %v2916_v23, %s5619_s12  ;;  %2984 = vrot.lane.b32.xlu0 %v6636_v24, %s5619_s12 }
 0x289   : > { %5057 = vmatprep.mubr.msk.f32.mxu0 %vm2132_vm5, %v3266_v43  ;;  %v1245_v4 = vsel %vm1175_vm2, %v6833_v20, %v1244_v52  ;;  %v3092_v6 = vsel %vm1352_vm3, %v6613_v57, %v3091_v12  ;;  %v2805_v43 = vld [vmem:[#allocation2 + $0x118] sm:$0x3]  ;;  %v2070_v57 = vsel %vm892_vm0, %v6445_v35, %v6904_v25  ;;  %v1123_v25 = vld [vmem:[#allocation2 + $0x160] sm:$0x3] }
 0x28a   : > { %v2979_v45 = vpop.permute.xlu1 %2978  ;;  %v3151_v36 = vpop.permute.xlu0 %3150  ;;  %v2102_v50 = vsel %vm1561_vm4, %v2070_v57, %v6924_v15  ;;  %v1249_v15 = vrot.slane %v1123_v25, 1  ;;  %v2808_v57 = vld [vmem:[#allocation2 + $0x130] sm:$0x3] }
 0x28b   : > { %v3267_v60 = vsel %vm1561_vm4, %v3235_v49, %v3151_v36  ;;  %v1422_v49 = vsel %vm1352_vm3, %v6865_v9, %v1421_v27  ;;  %v2920_v36 = vrot.slane %v2805_v43, 1  ;;  %v3096_v27 = vrot.slane %v2805_v43, 2 }
 0x28c   : > { %1308 = vrot.lane.b32.xlu1 %v6853_v14, %s5619_s12  ;;  %3160 = vrot.lane.b32.xlu0 %v6723_v44, %s5620_s16 }
 0x28d   : > { %5058 = vmatmul.mubr.msk.f32.gmra.mrb[42].mxu0 %vm2132_vm5, %v3267_v60 }
 0x28e   : > { %v6991_v38 = vpop.permute.xlu1 %1817  ;;  %v1812_v24 = vpop.permute.xlu0 %1811 }
 0x28f   : > { %v2069_v44 = vsel %vm892_vm0, %v6475_v29, %v1812_v24  ;;  %v2921_v24 = vsel %vm1175_vm2, %v6661_v8, %v2920_v36  ;;  %v1250_v36 = vsel %vm1175_vm2, %v6873_v31, %v1249_v15 }
 0x290   : > { %1310 = vrot.lane.b32.xlu1 %v1245_v4, %s5619_s12  ;;  %3162 = vrot.lane.b32.xlu0 %v3092_v6, %s5620_s16 }
 0x292   : > { %v1994_v19 = vpop.permute.xlu1 %1993  ;;  %v1988_v60 = vpop.permute.xlu0 %1987 }
 0x293   : > { %v2101_v23 = vsel %vm1561_vm4, %v2069_v44, %v1988_v60 }
 0x294   : > { %1487 = vrot.lane.b32.xlu1 %v1422_v49, %s5620_s16  ;;  %1485 = vrot.lane.b32.xlu0 %v6886_v55, %s5620_s16 }
 0x295   : > { %4919 = vmatprep.mubr.msk.f32.mxu1 %vm2132_vm5, %v2101_v23 }
 0x296   : > { %4920 = vmatmul.mubr.msk.f32.gmra.mrb[18].mxu1 %vm2132_vm5, %v2102_v50  ;;  %v1293_v52 = vpop.permute.xlu1 %1292  ;;  %v7014_v12 = vpop.permute.xlu0 %1465 }
 0x298   : > { %2990 = vrot.lane.b32.xlu1 %v2921_v24, %s5619_s12  ;;  %2988 = vrot.lane.b32.xlu0 %v6719_v30, %s5619_s12  ;;  %v3097_v30 = vsel %vm1352_vm3, %v6682_v2, %v3096_v27 }
 0x29a   : > { %v1295_v4 = vpop.permute.xlu1 %1294  ;;  %v2977_v6 = vpop.permute.xlu0 %2976 }
 0x29b   : > { %v1548_v44 = vsel %vm892_vm0, %v6512_v7, %v1295_v4  ;;  %v3236_v8 = vsel %vm892_vm0, %v6475_v29, %v2977_v6  ;;  %v3237_v29 = vsel %vm892_vm0, %v6445_v35, %v2979_v45  ;;  %v2925_v6 = vrot.slane %v2808_v57, 1  ;;  %v1126_v45 = vld [vmem:[#allocation2 + $0x178] sm:$0x3] }
 0x29c   : > { %1312 = vrot.lane.b32.xlu1 %v6902_v18, %s5619_s12  ;;  %3164 = vrot.lane.b32.xlu0 %v6769_v16, %s5620_s16  ;;  %v1426_v16 = vrot.slane %v1123_v25, 2 }
 0x29d   : > { %v2926_v35 = vsel %vm1175_vm2, %v6745_v0, %v2925_v6  ;;  %v2072_v0 = vsel %vm892_vm0, %v6512_v7, %v6991_v38 }
 0x29e   : > { %v1472_v60 = vpop.permute.xlu1 %1471  ;;  %v3153_v23 = vpop.permute.xlu0 %3152  ;;  %v1427_v4 = vsel %vm1352_vm3, %v6911_v3, %v1426_v16 }
 0x29f   : > { %v7032_v43 = vsel %vm1561_vm4, %v1548_v44, %v1472_v60  ;;  %v3268_v49 = vsel %vm1561_vm4, %v3236_v8, %v3153_v23  ;;  %v1254_v23 = vrot.slane %v1126_v45, 1 }
 0x2a0   : > { %1314 = vrot.lane.b32.xlu1 %v1250_v36, %s5619_s12  ;;  %3166 = vrot.lane.b32.xlu0 %v3097_v30, %s5620_s16  ;;  %v3101_v30 = vrot.slane %v2808_v57, 2 }
 0x2a1   : > { %5060 = vmatprep.mubr.msk.f32.mxu0 %vm2132_vm5, %v3268_v49  ;;  %v1547_v49 = vsel %vm892_vm0, %v6545_v37, %v1293_v52  ;;  %v1255_v38 = vsel %vm1175_vm2, %v6918_v53, %v1254_v23  ;;  %v2814_v23 = vld [vmem:[#allocation2 + $0x160] sm:$0x3] }
 0x2a2   : > { %v2983_v2 = vpop.permute.xlu1 %2982  ;;  %v3155_v50 = vpop.permute.xlu0 %3154 }
 0x2a3   : > { %v3269_v24 = vsel %vm1561_vm4, %v3237_v29, %v3155_v50  ;;  %v1431_v29 = vrot.slane %v1126_v45, 2 }
 0x2a4   : > { %1491 = vrot.lane.b32.xlu1 %v1427_v4, %s5620_s16  ;;  %1489 = vrot.lane.b32.xlu0 %v6931_v54, %s5620_s16 }
 0x2a5   : > { %5061 = vmatmul.mubr.msk.f32.gmra.mrb[44].mxu0 %vm2132_vm5, %v3269_v24  ;;  %v1432_v24 = vsel %vm1352_vm3, %v6954_v1, %v1431_v29 }
 0x2a6   : > { %v7049_v25 = vpop.permute.xlu1 %1821  ;;  %v1816_v27 = vpop.permute.xlu0 %1815 }
 0x2a7   : > { %v2071_v15 = vsel %vm892_vm0, %v6545_v37, %v1816_v27 }
 0x2a8   : > { %2994 = vrot.lane.b32.xlu1 %v2926_v35, %s5619_s12  ;;  %2992 = vrot.lane.b32.xlu0 %v6801_v17, %s5619_s12  ;;  %v2104_v17 = vsel %vm1561_vm4, %v2072_v0, %v1994_v19  ;;  %v2811_v19 = vld [vmem:[#allocation2 + $0x148] sm:$0x3] }
 0x2a9   : > { %v2930_v4 = vrot.slane %v2811_v19, 1 }
 0x2aa   : > { %v7058_v44 = vpop.permute.xlu1 %1997  ;;  %v1992_v8 = vpop.permute.xlu0 %1991 }
 0x2ab   : > { %v2103_v60 = vsel %vm1561_vm4, %v2071_v15, %v1992_v8  ;;  %v2931_v8 = vsel %vm1175_vm2, %v6833_v20, %v2930_v4  ;;  %v2935_v20 = vrot.slane %v2814_v23, 1 }
 0x2ac   : > { %1316 = vrot.lane.b32.xlu1 %v6946_v34, %s5619_s12  ;;  %3168 = vrot.lane.b32.xlu0 %v6827_v41, %s5620_s16  ;;  %v3102_v41 = vsel %vm1352_vm3, %v6772_v62, %v3101_v30 }
 0x2ad   : > { %4922 = vmatprep.mubr.msk.f32.mxu1 %vm2132_vm5, %v2103_v60  ;;  %v3106_v60 = vrot.slane %v2811_v19, 2 }
 0x2ae   : > { %4923 = vmatmul.mubr.msk.f32.gmra.mrb[20].mxu1 %vm2132_vm5, %v2104_v17  ;;  %v1297_v36 = vpop.permute.xlu1 %1296  ;;  %v1470_v16 = vpop.permute.xlu0 %1469 }
 0x2af   : > { %v7074_v57 = vsel %vm1561_vm4, %v1547_v49, %v1470_v16  ;;  %v3107_v49 = vsel %vm1352_vm3, %v6865_v9, %v3106_v60  ;;  %v2817_v9 = vld [vmem:[#allocation2 + $0x178] sm:$0x3] }
 0x2b0   : > { %1318 = vrot.lane.b32.xlu1 %v1255_v38, %s5619_s12  ;;  %3170 = vrot.lane.b32.xlu0 %v3102_v41, %s5620_s16 }
 0x2b2   : > { %v1299_v52 = vpop.permute.xlu1 %1298  ;;  %v2981_v50 = vpop.permute.xlu0 %2980 }
 0x2b3   : > { %v1550_v62 = vsel %vm892_vm0, %v6580_v42, %v1299_v52  ;;  %v3238_v6 = vsel %vm892_vm0, %v6545_v37, %v2981_v50  ;;  %v3239_v37 = vsel %vm892_vm0, %v6512_v7, %v2983_v2  ;;  %v2936_v7 = vsel %vm1175_vm2, %v6873_v31, %v2935_v20 }
 0x2b4   : > { %1495 = vrot.lane.b32.xlu1 %v1432_v24, %s5620_s16  ;;  %1493 = vrot.lane.b32.xlu0 %v6966_v59, %s5620_s16  ;;  %v3111_v2 = vrot.slane %v2814_v23, 2  ;;  %v2940_v52 = vrot.slane %v2817_v9, 1  ;;  %v2074_v31 = vsel %vm892_vm0, %v6580_v42, %v7049_v25  ;;  %v1549_v50 = vsel %vm892_vm0, %v6619_v51, %v1297_v36  ;;  %v2823_v23 = vld [vmem:[#allocation2 + $0x1a8] sm:$0x3] }
 0x2b5   : > { %v3116_v25 = vrot.slane %v2817_v9, 2 }
 0x2b6   : > { %v1476_v27 = vpop.permute.xlu1 %1475  ;;  %v3157_v35 = vpop.permute.xlu0 %3156  ;;  %v3112_v19 = vsel %vm1352_vm3, %v6911_v3, %v3111_v2  ;;  %v2941_v42 = vsel %vm1175_vm2, %v6918_v53, %v2940_v52 }
 0x2b7   : > { %v7092_v45 = vsel %vm1561_vm4, %v1550_v62, %v1476_v27  ;;  %v3270_v15 = vsel %vm1561_vm4, %v3238_v6, %v3157_v35  ;;  %v2820_v62 = vld [vmem:[#allocation2 + $0x190] sm:$0x3]  ;;  %v3117_v60 = vsel %vm1352_vm3, %v6954_v1, %v3116_v25 }
 0x2b8   : > { %2998 = vrot.lane.b32.xlu1 %v2931_v8, %s5619_s12  ;;  %2996 = vrot.lane.b32.xlu0 %v6853_v14, %s5619_s12  ;;  %v3121_v2 = vrot.slane %v2820_v62, 2 }
 0x2b9   : > { %5063 = vmatprep.mubr.msk.f32.mxu0 %vm2132_vm5, %v3270_v15  ;;  %v2945_v15 = vrot.slane %v2820_v62, 1 }
 0x2ba   : > { %v1826_v30 = vpop.permute.xlu1 %1825  ;;  %v3159_v0 = vpop.permute.xlu0 %3158 }
 0x2bb   : > { %v3271_v17 = vsel %vm1561_vm4, %v3239_v37, %v3159_v0  ;;  %v2076_v9 = vsel %vm892_vm0, %v6645_v5, %v1826_v30 }
 0x2bc   : > { %3174 = vrot.lane.b32.xlu1 %v3107_v49, %s5620_s16  ;;  %3172 = vrot.lane.b32.xlu0 %v6886_v55, %s5620_s16 }
 0x2bd   : > { %5064 = vmatmul.mubr.msk.f32.gmra.mrb[46].mxu0 %vm2132_vm5, %v3271_v17 }
 0x2be   : > { %v2002_v14 = vpop.permute.xlu1 %2001  ;;  %v1820_v16 = vpop.permute.xlu0 %1819 }
 0x2bf   : > { %v2073_v38 = vsel %vm892_vm0, %v6619_v51, %v1820_v16  ;;  %v7162_v16 = vld [vmem:[#allocation2 + $0x198] sm:$0xff] }
 0x2c0   : > { %3002 = vrot.lane.b32.xlu1 %v2936_v7, %s5619_s12  ;;  %3000 = vrot.lane.b32.xlu0 %v6902_v18, %s5619_s12  ;;  %v2106_v18 = vsel %vm1561_vm4, %v2074_v31, %v7058_v44  ;;  %v7139_v44 = vld [vmem:[#allocation2 + $0x180] sm:$0xff] }
 0x2c1   : > { %v2942_v53 = vrot.slane %v7139_v44, 1 }
 0x2c2   : > { %v1301_v41 = vpop.permute.xlu1 %1300  ;;  %v1996_v29 = vpop.permute.xlu0 %1995 }
 0x2c3   : > { %v2105_v55 = vsel %vm1561_vm4, %v2073_v38, %v1996_v29  ;;  %v2950_v29 = vrot.slane %v2823_v23, 1  ;;  %v1551_v52 = vsel %vm892_vm0, %v6686_v10, %v1301_v41 }
 0x2c4   : > { %3178 = vrot.lane.b32.xlu1 %v3112_v19, %s5620_s16  ;;  %3176 = vrot.lane.b32.xlu0 %v6931_v54, %s5620_s16  ;;  %v7137_v54 = vld [vmem:[#allocation2 + $0x188] sm:$0xff]  ;;  %v2947_v19 = vrot.slane %v7162_v16, 1 }
 0x2c5   : > { %4925 = vmatprep.mubr.msk.f32.mxu1 %vm2132_vm5, %v2105_v55  ;;  %v2943_v35 = vrot.slane %v7137_v54, 1  ;;  %v3119_v7 = vrot.slane %v7137_v54, 2  ;;  %v2108_v55 = vsel %vm1561_vm4, %v2076_v9, %v2002_v14 }
 0x2c6   : > { %4926 = vmatmul.mubr.msk.f32.gmra.mrb[22].mxu1 %vm2132_vm5, %v2106_v18  ;;  %v1303_v3 = vpop.permute.xlu1 %1302  ;;  %v1474_v24 = vpop.permute.xlu0 %1473 }
 0x2c7   : > { %v7133_v4 = vsel %vm1561_vm4, %v1549_v50, %v1474_v24  ;;  %v1552_v36 = vsel %vm892_vm0, %v6645_v5, %v1303_v3  ;;  %v2946_v49 = vsel %vm1175_vm2, %v2943_v35, %v2945_v15  ;;  %v2944_v20 = vsel %vm1175_vm2, %v2942_v53, %v2943_v35 }
 0x2c8   : > { %3006 = vrot.lane.b32.xlu1 %v2941_v42, %s5619_s12  ;;  %3004 = vrot.lane.b32.xlu0 %v6946_v34, %s5619_s12  ;;  %v7156_v34 = vld [vmem:[#allocation2 + $0x1a0] sm:$0xff]  ;;  %v3122_v18 = vsel %vm1352_vm3, %v3119_v7, %v3121_v2  ;;  %v3126_v24 = vrot.slane %v2823_v23, 2  ;;  %v3123_v42 = vrot.slane %v7162_v16, 2 }
 0x2c9   : > { %v2948_v38 = vrot.slane %v7156_v34, 1  ;;  %v3124_v41 = vrot.slane %v7156_v34, 2 }
 0x2ca   : > { %v1480_v6 = vpop.permute.xlu1 %1479  ;;  %v1824_v27 = vpop.permute.xlu0 %1823 }
 0x2cb   : > { %v7149_v8 = vsel %vm1561_vm4, %v1552_v36, %v1480_v6  ;;  %v2075_v37 = vsel %vm892_vm0, %v6686_v10, %v1824_v27  ;;  %v2951_v14 = vsel %vm1175_vm2, %v2948_v38, %v2950_v29  ;;  %v2949_v3 = vsel %vm1175_vm2, %v2947_v19, %v2948_v38 }
 0x2cc   : > { %3182 = vrot.lane.b32.xlu1 %v3117_v60, %s5620_s16  ;;  %3180 = vrot.lane.b32.xlu0 %v6966_v59, %s5620_s16  ;;  %v3118_v59 = vrot.slane %v7139_v44, 2  ;;  %v3127_v36 = vsel %vm1352_vm3, %v3124_v41, %v3126_v24  ;;  %v3125_v6 = vsel %vm1352_vm3, %v3123_v42, %v3124_v41 }
 0x2ce   : > { %v1830_v0 = vpop.permute.xlu1 %1829  ;;  %v2000_v17 = vpop.permute.xlu0 %1999  ;;  %v3120_v50 = vsel %vm1352_vm3, %v3118_v59, %v3119_v7 }
 0x2cf   : > { %v2107_v1 = vsel %vm1561_vm4, %v2075_v37, %v2000_v17  ;;  %v2078_v60 = vsel %vm892_vm0, %v6731_v48, %v1830_v0 }
 0x2d0   : > { %3010 = vrot.lane.b32.xlu1 %v2946_v49, %s5619_s12  ;;  %3008 = vrot.lane.b32.xlu0 %v2944_v20, %s5619_s12 }
 0x2d1   : > { %4928 = vmatprep.mubr.msk.f32.mxu1 %vm2132_vm5, %v2107_v1 }
 0x2d2   : > { %4929 = vmatmul.mubr.msk.f32.gmra.mrb[24].mxu1 %vm2132_vm5, %v2108_v55  ;;  %v2006_v31 = vpop.permute.xlu1 %2005  ;;  %v1478_v5 = vpop.permute.xlu0 %1477 }
 0x2d3   : > { %v7179_v30 = vsel %vm1561_vm4, %v1551_v52, %v1478_v5  ;;  %v2110_v23 = vsel %vm1561_vm4, %v2078_v60, %v2006_v31 }
 0x2d4   : > { %3186 = vrot.lane.b32.xlu1 %v3122_v18, %s5620_s16  ;;  %3184 = vrot.lane.b32.xlu0 %v3120_v50, %s5620_s16 }
 0x2d6   : > { %v1305_v25 = vpop.permute.xlu1 %1304  ;;  %v1828_v62 = vpop.permute.xlu0 %1827 }
 0x2d7   : > { %v2077_v27 = vsel %vm892_vm0, %v6777_v26, %v1828_v62  ;;  %v1553_v37 = vsel %vm892_vm0, %v6777_v26, %v1305_v25 }
 0x2d8   : > { %3014 = vrot.lane.b32.xlu1 %v2951_v14, %s5619_s12  ;;  %3012 = vrot.lane.b32.xlu0 %v2949_v3, %s5619_s12 }
 0x2da   : > { %v1307_v35 = vpop.permute.xlu1 %1306  ;;  %v2004_v15 = vpop.permute.xlu0 %2003 }
 0x2db   : > { %v2109_v53 = vsel %vm1561_vm4, %v2077_v27, %v2004_v15  ;;  %v1554_v17 = vsel %vm892_vm0, %v6731_v48, %v1307_v35 }
 0x2dc   : > { %3190 = vrot.lane.b32.xlu1 %v3127_v36, %s5620_s16  ;;  %3188 = vrot.lane.b32.xlu0 %v3125_v6, %s5620_s16 }
 0x2dd   : > { %4931 = vmatprep.mubr.msk.f32.mxu1 %vm2132_vm5, %v2109_v53  ;;  %v5441_v53 = vld [vmem:[#allocation2 + $0x180] sm:$0xff] }
 0x2de   : > { %4932 = vmatmul.mubr.msk.f32.gmra.mrb[26].mxu1 %vm2132_vm5, %v2110_v23  ;;  %v1484_v49 = vpop.permute.xlu1 %1483  ;;  %v1482_v20 = vpop.permute.xlu0 %1481  ;;  %v2085_v60 = vsel %vm892_vm0, %v5441_v53, %v6337_v40 }
 0x2df   : > { %v7208_v0 = vsel %vm1561_vm4, %v1554_v17, %v1484_v49  ;;  %v7211_v1 = vsel %vm1561_vm4, %v1553_v37, %v1482_v20  ;;  %v2117_v23 = vsel %vm1561_vm4, %v2085_v60, %v6348_v47  ;;  %v5442_v37 = vld [vmem:[#allocation2] sm:$0xff]  ;;  %v5444_v47 = vld [vmem:[#allocation2 + $0x8] sm:$0xff] }
 0x2e0   : > { %v7213_v7 = vpop.f32.mrb[32].mxu0  ;;  %v1529_v17 = vsel %vm892_vm0, %v5442_v37, %v6306_v21  ;;  %v7845_v37 = vld [vmem:[#allocation25_spill] sm:$0xff] }
 0x2e1   : > { %v7215_v2 = vpop.f32.mrb[33].mxu0  ;;  %v1562_v21 = vsel %vm1561_vm4, %v1529_v17, %v6324_v32 }
 0x2e2   : > { %v1834_v59 = vpop.permute.xlu1 %1833  ;;  %v1832_v9 = vpop.permute.xlu0 %1831 }
 0x2e3   : > { %v2080_v38 = vsel %vm892_vm0, %v6819_v56, %v1834_v59  ;;  %v2079_v48 = vsel %vm892_vm0, %v6821_v28, %v1832_v9  ;;  %v5443_v59 = vld [vmem:[#allocation2 + $0x188] sm:$0xff] }
 0x2e4   : > { %v2086_v9 = vsel %vm892_vm0, %v5443_v59, %v6335_v39 }
 0x2e5   : > { %v2118_v40 = vsel %vm1561_vm4, %v2086_v9, %v6346_v46  ;;  %v5450_v9 = vld [vmem:[#allocation2 + $0x48] sm:$0xff] }
 0x2e6   : > { %v2010_v29 = vpop.permute.xlu1 %2009  ;;  %v2008_v55 = vpop.permute.xlu0 %2007 }
 0x2e7   : > { %v2112_v19 = vsel %vm1561_vm4, %v2080_v38, %v2010_v29  ;;  %v2111_v52 = vsel %vm1561_vm4, %v2079_v48, %v2008_v55  ;;  %v1530_v48 = vsel %vm892_vm0, %v5444_v47, %v6308_v22 }
 0x2e8   : > { %4934 = vmatprep.mubr.msk.f32.mxu1 %vm2132_vm5, %v2111_v52  ;;  %v1563_v22 = vsel %vm1561_vm4, %v1530_v48, %v6326_v33  ;;  %v5445_v52 = vld [vmem:[#allocation2 + $0x18] sm:$0xff]  ;;  %v7849_v48 = vld [vmem:[#allocation32_spill] sm:$0xff] }
 0x2e9   : > { %4935 = vmatmul.mubr.msk.f32.gmra.mrb[28].mxu1 %vm2132_vm5, %v2112_v19 }
 0x2ea   : > { %v1838_v31 = vpop.permute.xlu1 %1837  ;;  %v1836_v5 = vpop.permute.xlu0 %1835 }
 0x2eb   : > { %v2082_v18 = vsel %vm892_vm0, %v6859_v61, %v1838_v31  ;;  %v2081_v50 = vsel %vm892_vm0, %v6861_v11, %v1836_v5  ;;  %v7838_v31 = vld [vmem:[#allocation22_spill] sm:$0xff]  ;;  %v7839_v5 = vld [vmem:[#allocation24_spill] sm:$0xff] }
 0x2ec   : > { %v1531_v32 = vsel %vm892_vm0, %v5445_v52, %v7838_v31  ;;  %v7851_v31 = vld [vmem:[#allocation18_spill] sm:$0xff] }
 0x2ee   : > { %v2014_v14 = vpop.permute.xlu1 %2013  ;;  %v2012_v3 = vpop.permute.xlu0 %2011 }
 0x2ef   : > { %v2114_v41 = vsel %vm1561_vm4, %v2082_v18, %v2014_v14  ;;  %v2113_v24 = vsel %vm1561_vm4, %v2081_v50, %v2012_v3  ;;  %v1564_v18 = vsel %vm1561_vm4, %v1531_v32, %v7839_v5  ;;  %v5447_v3 = vld [vmem:[#allocation2 + $0x20] sm:$0xff] }
 0x2f0   : > { %4937 = vmatprep.mubr.msk.f32.mxu1 %vm2132_vm5, %v2113_v24  ;;  %v7852_v32 = vld [vmem:[#allocation30_spill] sm:$0xff] }
 0x2f1   : > { %4938 = vmatmul.mubr.msk.f32.gmra.mrb[30].mxu1 %vm2132_vm5, %v2114_v41  ;;  %v7840_v41 = vld [vmem:[#allocation21_spill] sm:$0xff] }
 0x2f2   : > { %v1842_v42 = vpop.permute.xlu1 %1841  ;;  %v1840_v25 = vpop.permute.xlu0 %1839  ;;  %v1532_v24 = vsel %vm892_vm0, %v5447_v3, %v7840_v41 }
 0x2f3   : > { %v2084_v62 = vsel %vm892_vm0, %v6906_v63, %v1842_v42  ;;  %v2083_v36 = vsel %vm892_vm0, %v6908_v13, %v1840_v25  ;;  %v7841_v25 = vld [vmem:[#allocation16_spill] sm:$0xff] }
 0x2f6   : > { %v2018_v6 = vpop.permute.xlu1 %2017  ;;  %v2016_v27 = vpop.permute.xlu0 %2015 }
 0x2f7   : > { %v2116_v35 = vsel %vm1561_vm4, %v2084_v62, %v2018_v6  ;;  %v2115_v15 = vsel %vm1561_vm4, %v2083_v36, %v2016_v27  ;;  %v7842_v62 = vld [vmem:[#allocation23_spill] sm:$0xff]  ;;  %v5448_v6 = vld [vmem:[#allocation2 + $0x30] sm:$0xff]  ;;  %v7843_v27 = vld [vmem:[#allocation26_spill] sm:$0xff] }
 0x2f8   : > { %4940 = vmatprep.mubr.msk.f32.mxu1 %vm2132_vm5, %v2115_v15  ;;  %v1565_v36 = vsel %vm1561_vm4, %v1532_v24, %v7842_v62  ;;  %v7855_v62 = vld [vmem:[#allocation33_spill] sm:$0xff] }
 0x2f9   : > { %4941 = vmatmul.mubr.msk.f32.gmra.mrb[32].mxu1 %vm2132_vm5, %v2116_v35  ;;  %v7844_v35 = vld [vmem:[#allocation28_spill] sm:$0xff] }
 0x2fa   : > { %v2987_v49 = vpop.permute.xlu1 %2986  ;;  %4943 = vmatprep.mubr.msk.f32.mxu1 %vm2132_vm5, %v2117_v23  ;;  %v2985_v20 = vpop.permute.xlu0 %2984  ;;  %v5449_v23 = vld [vmem:[#allocation2 + $0x38] sm:$0xff] }
 0x2fb   : > { %v3240_v55 = vsel %vm892_vm0, %v6619_v51, %v2985_v20  ;;  %v5446_v51 = vld [vmem:[#allocation2 + $0xf8] sm:$0xff]  ;;  %v1534_v17 = vsel %vm892_vm0, %v5449_v23, %v7845_v37  ;;  %v7847_v20 = vld [vmem:[#allocation27_spill] sm:$0xff] }
 0x2fc   : > { %v7252_v38 = vpop.f32.mrb[34].mxu0  ;;  %v3241_v50 = vsel %vm892_vm0, %v5446_v51, %v2987_v49  ;;  %v7846_v49 = vld [vmem:[#allocation17_spill] sm:$0xff]  ;;  %v1567_v59 = vsel %vm1561_vm4, %v1534_v17, %v7847_v20  ;;  %v7853_v51 = vld [vmem:[#allocation35_spill] sm:$0xff] }
 0x2fd   : > { %v7258_v29 = vpop.f32.mrb[35].mxu0  ;;  %4944 = vmatmul.mubr.msk.f32.gmra.mrb[34].mxu1 %vm2132_vm5, %v2118_v40  ;;  %v7848_v40 = vld [vmem:[#allocation31_spill] sm:$0xff]  ;;  %v7859_v37 = vld [vmem:[#allocation41_spill] sm:$0xff] }
 0x2fe   : > { %v7263_v39 = vpop.permute.xlu1 %1308  ;;  %4970 = vmatprep.mubr.msk.f32.mxu1 %vm2132_vm5, %v1562_v21  ;;  %v3161_v46 = vpop.permute.xlu0 %3160  ;;  %v1535_v47 = vsel %vm892_vm0, %v5450_v9, %v7848_v40  ;;  %v3759_v20 = vld [vmem:[%s7765_s6 + $0x8] sm:$0xff] }
 0x2ff   : > { %v3272_v19 = vsel %vm1561_vm4, %v3240_v55, %v3161_v46  ;;  %v1568_v21 = vsel %vm1561_vm4, %v1535_v47, %v7849_v48 }
 0x300   : > { %5066 = vmatprep.mubr.msk.f32.mxu0 %vm2132_vm5, %v3272_v19  ;;  %v5451_v19 = vld [vmem:[#allocation2 + $0x50] sm:$0xff] }
 0x301   : > { %4971 = vmatmul.mubr.msk.f32.vlgmr.msra.gmra.mrb[4].mxu1 %vm2132_vm5, %v1563_v22  ;;  %v7850_v22 = vld [vmem:[#allocation29_spill] sm:$0xff] }
 0x302   : > { %5296 = vmatpush3.bf16.msra.mxu1 %v6109_v58  ;;  %v7277_v14 = vpop.permute.xlu1 %1310  ;;  %4973 = vmatprep.mubr.msk.f32.mxu1 %vm2132_vm5, %v1564_v18  ;;  %v3163_v33 = vpop.permute.xlu0 %3162  ;;  %v1533_v58 = vsel %vm892_vm0, %v5448_v6, %v7843_v27  ;;  %v1536_v52 = vsel %vm892_vm0, %v5451_v19, %v7850_v22  ;;  %v5452_v18 = vld [vmem:[#allocation2 + $0x60] sm:$0xff]  ;;  %v7856_v27 = vld [vmem:[#allocation19_spill] sm:$0xff] }
 0x303   : > { %v3273_v42 = vsel %vm1561_vm4, %v3241_v50, %v3163_v33  ;;  %5291 = vmatprep.subr.bf16.mxu1 %v7841_v25  ;;  %v1566_v15 = vsel %vm1561_vm4, %v1533_v58, %v7844_v35  ;;  %v1569_v5 = vsel %vm1561_vm4, %v1536_v52, %v7852_v32  ;;  %v1537_v50 = vsel %vm892_vm0, %v5452_v18, %v7853_v51  ;;  %v7854_v33 = vld [vmem:[#allocation37_spill] sm:$0xff]  ;;  %v7857_v58 = vld [vmem:[#allocation34_spill] sm:$0xff]  ;;  %v7861_v52 = vld [vmem:[#allocation20_spill] sm:$0xff] }
 0x304   : > { %5067 = vmatmul.mubr.msk.f32.gmra.mrb[48].mxu0 %vm2132_vm5, %v3273_v42  ;;  %v1570_v3 = vsel %vm1561_vm4, %v1537_v50, %v7854_v33  ;;  %v7864_v51 = vld [vmem:[#allocation45_spill] sm:$0xff] }
 0x305   : > { %4974 = vmatmul.mubr.msk.f32.gmra.mrb[6].mxu1 %vm2132_vm5, %v1565_v36 }
 0x306   : > { %v7292_v53 = vpop.permute.xlu1 %1487  ;;  %4976 = vmatprep.mubr.msk.f32.mxu1 %vm2132_vm5, %v1566_v15  ;;  %v7295_v60 = vpop.permute.xlu0 %1485  ;;  %5297 = vmatpush3.bf16.msra.mxu1 %v7841_v25  ;;  %v5453_v25 = vld [vmem:[#allocation2 + $0x68] sm:$0xff]  ;;  %v5454_v15 = vld [vmem:[#allocation2 + $0x78] sm:$0xff] }
 0x307   : > { %5292 = vmatprep.subr.bf16.mxu1 %v7846_v49  ;;  %v1538_v36 = vsel %vm892_vm0, %v5453_v25, %v7855_v62  ;;  %v7866_v62 = vld [vmem:[#allocation43_spill] sm:$0xff] }
 0x308   : > { %v1571_v35 = vsel %vm1561_vm4, %v1538_v36, %v7857_v58 }
 0x309   : > { %4977 = vmatmul.mubr.msk.f32.gmra.mrb[8].mxu1 %vm2132_vm5, %v1567_v59  ;;  %v5455_v59 = vld [vmem:[#allocation2 + $0x110] sm:$0xff] }
 0x30a   : > { %v2991_v55 = vpop.permute.xlu1 %2990  ;;  %4979 = vmatprep.mubr.msk.f32.mxu1 %vm2132_vm5, %v1568_v21  ;;  %v2989_v46 = vpop.permute.xlu0 %2988  ;;  %5298 = vmatpush3.bf16.msra.mxu1 %v7846_v49  ;;  %v3758_v49 = vld [vmem:[%s7765_s6] sm:$0xff] }
 0x30b   : > { %5293 = vmatprep.subr.bf16.mxu1 %v7851_v31  ;;  %v3242_v41 = vsel %vm892_vm0, %v6686_v10, %v2989_v46  ;;  %v7858_v10 = vld [vmem:[#allocation36_spill] sm:$0xff]  ;;  %v3243_v9 = vsel %vm892_vm0, %v5455_v59, %v2991_v55  ;;  %v5282_v48 = vpack.c.bf16 %v3759_v20, %v3758_v49  ;;  %v5456_v21 = vld [vmem:[#allocation2 + $0x80] sm:$0xff] }
 0x30c   : > { %v1539_v23 = vsel %vm892_vm0, %v5454_v15, %v7858_v10  ;;  %v7860_v46 = vld [vmem:[#allocation38_spill] sm:$0xff]  ;;  %v5457_v55 = vld [vmem:[#allocation2 + $0x90] sm:$0xff]  ;;  %v7868_v15 = vld [vmem:[#allocation49_spill] sm:$0xff] }
 0x30d   : > { %4980 = vmatmul.mubr.msk.f32.gmra.mrb[10].mxu1 %vm2132_vm5, %v1569_v5  ;;  %v1572_v17 = vsel %vm1561_vm4, %v1539_v23, %v7859_v37  ;;  %v1540_v19 = vsel %vm892_vm0, %v5456_v21, %v7860_v46  ;;  %v7863_v5 = vld [vmem:[#allocation40_spill] sm:$0xff]  ;;  %5283 = vmatprep.subr.bf16.mxu0 %v5282_v48  ;;  %v7869_v20 = vld [vmem:[#allocation46_spill] sm:$0xff] }
 0x30e   : > { %v7322_v24 = vpop.permute.xlu1 %1312  ;;  %4982 = vmatprep.mubr.msk.f32.mxu1 %vm2132_vm5, %v1570_v3  ;;  %v3165_v42 = vpop.permute.xlu0 %3164  ;;  %5299 = vmatpush3.bf16.msra.mxu1 %v7851_v31  ;;  %v7862_v31 = vld [vmem:[#allocation39_spill] sm:$0xff]  ;;  %v1541_v18 = vsel %vm892_vm0, %v5457_v55, %v7863_v5  ;;  %v5460_v49 = vld [vmem:[#allocation2 + $0xb0] sm:$0xff]  ;;  %v7872_v55 = vld [vmem:[#allocation50_spill] sm:$0xff] }
 0x30f   : > { %v3274_v6 = vsel %vm1561_vm4, %v3242_v41, %v3165_v42  ;;  %5294 = vmatprep.subr.bf16.mxu1 %v7856_v27  ;;  %v1573_v32 = vsel %vm1561_vm4, %v1540_v19, %v7862_v31  ;;  %v1574_v50 = vsel %vm1561_vm4, %v1541_v18, %v7864_v51  ;;  %5285 = vmatpush3.bf16.msra.mxu0 %v5282_v48  ;;  %v5458_v41 = vld [vmem:[#allocation2 + $0x98] sm:$0xff]  ;;  %v7865_v42 = vld [vmem:[#allocation42_spill] sm:$0xff]  ;;  %v7871_v21 = vld [vmem:[#allocation48_spill] sm:$0xff] }
 0x310   : > { %5069 = vmatprep.mubr.msk.f32.mxu0 %vm2132_vm5, %v3274_v6  ;;  %v1542_v25 = vsel %vm892_vm0, %v5458_v41, %v7865_v42  ;;  %v5459_v6 = vld [vmem:[#allocation2 + $0xa8] sm:$0xff]  ;;  %v1544_v59 = vsel %vm892_vm0, %v5460_v49, %v7869_v20  ;;  %v5461_v48 = vld [vmem:[#allocation2 + $0xc0] sm:$0xff] }
 0x311   : > { %4983 = vmatmul.mubr.msk.f32.gmra.mrb[12].mxu1 %vm2132_vm5, %v1571_v35  ;;  %v1575_v36 = vsel %vm1561_vm4, %v1542_v25, %v7866_v62  ;;  %v1545_v46 = vsel %vm892_vm0, %v5461_v48, %v7871_v21  ;;  %v7873_v51 = vld [vmem:[#allocation51_spill] sm:$0xff] }
 0x312   : > { %v7345_v40 = vpop.permute.xlu1 %1314  ;;  %4985 = vmatprep.mubr.msk.f32.mxu1 %vm2132_vm5, %v1572_v17  ;;  %v3167_v47 = vpop.permute.xlu0 %3166  ;;  %5300 = vmatpush3.bf16.msra.mxu1 %v7856_v27  ;;  %v7867_v27 = vld [vmem:[#allocation44_spill] sm:$0xff]  ;;  %v1578_v19 = vsel %vm1561_vm4, %v1545_v46, %v7014_v12  ;;  %v5463_v12 = vld [vmem:[#allocation2 + $0x128] sm:$0xff] }
 0x313   : > { %v3275_v22 = vsel %vm1561_vm4, %v3243_v9, %v3167_v47  ;;  %5295 = vmatprep.subr.bf16.mxu1 %v7861_v52  ;;  %v1543_v58 = vsel %vm892_vm0, %v5459_v6, %v7867_v27  ;;  %v7870_v9 = vld [vmem:[#allocation47_spill] sm:$0xff] }
 0x314   : > { %5070 = vmatmul.mubr.msk.f32.gmra.mrb[50].mxu0 %vm2132_vm5, %v3275_v22  ;;  %v1576_v10 = vsel %vm1561_vm4, %v1543_v58, %v7868_v15  ;;  %v1577_v47 = vsel %vm1561_vm4, %v1544_v59, %v7870_v9 }
 0x315   : > { %4986 = vmatmul.mubr.msk.f32.gmra.mrb[14].mxu1 %vm2132_vm5, %v1573_v32  ;;  %v5462_v32 = vld [vmem:[#allocation2 + $0xc8] sm:$0xff] }
 0x316   : > { %v7361_v33 = vpop.permute.xlu1 %1491  ;;  %4988 = vmatprep.mubr.msk.f32.mxu1 %vm2132_vm5, %v1574_v50  ;;  %v1490_v3 = vpop.permute.xlu0 %1489  ;;  %5301 = vmatpush3.bf16.msra.mxu1 %v7861_v52  ;;  %v1546_v5 = vsel %vm892_vm0, %v5462_v32, %v7872_v55 }
 0x317   : > { %v1579_v50 = vsel %vm1561_vm4, %v1546_v5, %v7873_v51 }
 0x318   : > { %v7371_v35 = vpop.f32.mrb[36].mxu0 }
 0x319   : > { %v7375_v23 = vpop.f32.mrb[37].mxu0  ;;  %4989 = vmatmul.mubr.msk.f32.gmra.mrb[16].mxu1 %vm2132_vm5, %v1575_v36 }
 0x31a   : > { %v2995_v37 = vpop.permute.xlu1 %2994  ;;  %4991 = vmatprep.mubr.msk.f32.mxu1 %vm2132_vm5, %v1576_v10  ;;  %v2993_v17 = vpop.permute.xlu0 %2992 }
 0x31b   : > { %v3244_v22 = vsel %vm892_vm0, %v6777_v26, %v2993_v17  ;;  %v3245_v26 = vsel %vm892_vm0, %v5463_v12, %v2995_v37  ;;  %v1558_v17 = vsel %vm892_vm0, %v6859_v61, %v7345_v40 }
 0x31d   : > { %4992 = vmatmul.mubr.msk.f32.gmra.mrb[18].mxu1 %vm2132_vm5, %v1577_v47  ;;  %v5464_v47 = vld [vmem:[#allocation2 + $0x140] sm:$0xff] }
 0x31e   : > { %v1317_v52 = vpop.permute.xlu1 %1316  ;;  %4994 = vmatprep.mubr.msk.f32.mxu1 %vm2132_vm5, %v1578_v19  ;;  %v3169_v31 = vpop.permute.xlu0 %3168 }
 0x31f   : > { %v3276_v18 = vsel %vm1561_vm4, %v3244_v22, %v3169_v31 }
 0x320   : > { %5072 = vmatprep.mubr.msk.f32.mxu0 %vm2132_vm5, %v3276_v18 }
 0x321   : > { %4995 = vmatmul.mubr.msk.f32.gmra.mrb[20].mxu1 %vm2132_vm5, %v1579_v50 }
 0x322   : > { %v1319_v41 = vpop.permute.xlu1 %1318  ;;  %4997 = vmatprep.mubr.msk.f32.mxu1 %vm2132_vm5, %v7074_v57  ;;  %v3171_v42 = vpop.permute.xlu0 %3170 }
 0x323   : > { %v3277_v25 = vsel %vm1561_vm4, %v3245_v26, %v3171_v42  ;;  %v1560_v49 = vsel %vm892_vm0, %v6906_v63, %v1319_v41 }
 0x324   : > { %5073 = vmatmul.mubr.msk.f32.gmra.mrb[52].mxu0 %vm2132_vm5, %v3277_v25 }
 0x325   : > { %4998 = vmatmul.mubr.msk.f32.gmra.mrb[22].mxu1 %vm2132_vm5, %v7032_v43 }
 0x326   : > { %v1496_v62 = vpop.permute.xlu1 %1495  ;;  %5000 = vmatprep.mubr.msk.f32.mxu1 %vm2132_vm5, %v7133_v4  ;;  %v1494_v36 = vpop.permute.xlu0 %1493  ;;  %v1555_v4 = vsel %vm892_vm0, %v6821_v28, %v7263_v39 }
 0x327   : > { %v1593_v20 = vsel %vm1561_vm4, %v1560_v49, %v1496_v62 }
 0x329   : > { %5001 = vmatmul.mubr.msk.f32.gmra.mrb[24].mxu1 %vm2132_vm5, %v7092_v45  ;;  %v1588_v45 = vsel %vm1561_vm4, %v1555_v4, %v7295_v60  ;;  %v1557_v60 = vsel %vm892_vm0, %v6861_v11, %v7322_v24 }
 0x32a   : > { %v2999_v6 = vpop.permute.xlu1 %2998  ;;  %5003 = vmatprep.mubr.msk.f32.mxu1 %vm2132_vm5, %v7179_v30  ;;  %v2997_v57 = vpop.permute.xlu0 %2996  ;;  %v1590_v10 = vsel %vm1561_vm4, %v1557_v60, %v1490_v3 }
 0x32b   : > { %v3246_v40 = vsel %vm892_vm0, %v6821_v28, %v2997_v57  ;;  %v3247_v48 = vsel %vm892_vm0, %v5464_v47, %v2999_v6 }
 0x32d   : > { %5004 = vmatmul.mubr.msk.f32.gmra.mrb[26].mxu1 %vm2132_vm5, %v7149_v8 }
 0x32e   : > { %v3175_v27 = vpop.permute.xlu1 %3174  ;;  %5006 = vmatprep.mubr.msk.f32.mxu1 %vm2132_vm5, %v7211_v1  ;;  %v3173_v43 = vpop.permute.xlu0 %3172  ;;  %v1556_v1 = vsel %vm892_vm0, %v6819_v56, %v7277_v14  ;;  %v1591_v56 = vsel %vm1561_vm4, %v1558_v17, %v7361_v33  ;;  %v1559_v14 = vsel %vm892_vm0, %v6908_v13, %v1317_v52 }
 0x32f   : > { %v1589_v39 = vsel %vm1561_vm4, %v1556_v1, %v7292_v53  ;;  %v1592_v53 = vsel %vm1561_vm4, %v1559_v14, %v1494_v36  ;;  %v3278_v33 = vsel %vm1561_vm4, %v3246_v40, %v3173_v43  ;;  %v3279_v21 = vsel %vm1561_vm4, %v3247_v48, %v3175_v27 }
 0x330   : > { %v7418_v58 = vpop.f32.mrb[38].mxu0 }
 0x331   : > { %v7422_v15 = vpop.f32.mrb[39].mxu0  ;;  %5007 = vmatmul.mubr.msk.f32.gmra.mrb[28].mxu1 %vm2132_vm5, %v7208_v0 }
 0x332   : > { %v3003_v8 = vpop.permute.xlu1 %3002  ;;  %5009 = vmatprep.mubr.msk.f32.mxu1 %vm2132_vm5, %v1588_v45  ;;  %v3001_v30 = vpop.permute.xlu0 %3000 }
 0x333   : > { %v3248_v46 = vsel %vm892_vm0, %v6861_v11, %v3001_v30  ;;  %v3249_v52 = vsel %vm892_vm0, %v6859_v61, %v3003_v8 }
 0x335   : > { %5010 = vmatmul.mubr.msk.f32.gmra.mrb[30].mxu1 %vm2132_vm5, %v1589_v39  ;;  %v7512_v39 = vld [vmem:[%s7764_s5] ss:$0 sm:$0xff] }
 0x336   : > { %v3179_v0 = vpop.permute.xlu1 %3178  ;;  %5012 = vmatprep.mubr.msk.f32.mxu1 %vm2132_vm5, %v1590_v10  ;;  %v3177_v37 = vpop.permute.xlu0 %3176 }
 0x337   : > { %v3280_v19 = vsel %vm1561_vm4, %v3248_v46, %v3177_v37  ;;  %v3281_v31 = vsel %vm1561_vm4, %v3249_v52, %v3179_v0 }
 0x339   : > { %5013 = vmatmul.mubr.msk.f32.gmra.mrb[32].mxu1 %vm2132_vm5, %v1591_v56 }
 0x33a   : > { %v3007_v24 = vpop.permute.xlu1 %3006  ;;  %5015 = vmatprep.mubr.msk.f32.mxu1 %vm2132_vm5, %v1592_v53  ;;  %v3005_v3 = vpop.permute.xlu0 %3004 }
 0x33b   : > { %v3250_v32 = vsel %vm892_vm0, %v6908_v13, %v3005_v3  ;;  %v3251_v18 = vsel %vm892_vm0, %v6906_v63, %v3007_v24 }
 0x33d   : > { %5016 = vmatmul.mubr.msk.f32.gmra.mrb[34].mxu1 %vm2132_vm5, %v1593_v20 }
 0x33e   : > { %v3183_v59 = vpop.permute.xlu1 %3182  ;;  %5075 = vmatprep.mubr.msk.f32.mxu1 %vm2132_vm5, %v3278_v33  ;;  %v3181_v9 = vpop.permute.xlu0 %3180 }
 0x33f   : > { %v3282_v55 = vsel %vm1561_vm4, %v3250_v32, %v3181_v9  ;;  %v3283_v51 = vsel %vm1561_vm4, %v3251_v18, %v3183_v59 }
 0x341   : > { %5076 = vmatmul.mubr.msk.f32.vlgmr.msra.gmra.mrb[26].mxu1 %vm2132_vm5, %v3279_v21 }
 0x342   : > { %v3011_v28 = vpop.permute.xlu1 %3010  ;;  %5078 = vmatprep.mubr.msk.f32.mxu1 %vm2132_vm5, %v3280_v19  ;;  %v3009_v22 = vpop.permute.xlu0 %3008 }
 0x343   : > { %v3252_v61 = vsel %vm892_vm0, %v7139_v44, %v3009_v22  ;;  %v3253_v63 = vsel %vm892_vm0, %v7137_v54, %v3011_v28  ;;  %v3760_v54 = vld [vmem:[%s7765_s6 + $0x10] sm:$0xff] }
 0x345   : > { %5079 = vmatmul.mubr.msk.f32.gmra.mrb[28].mxu1 %vm2132_vm5, %v3281_v31 }
 0x346   : > { %v3187_v11 = vpop.permute.xlu1 %3186  ;;  %5081 = vmatprep.mubr.msk.f32.mxu1 %vm2132_vm5, %v3282_v55  ;;  %v3185_v5 = vpop.permute.xlu0 %3184 }
 0x347   : > { %v3284_v13 = vsel %vm1561_vm4, %v3252_v61, %v3185_v5  ;;  %v3285_v42 = vsel %vm1561_vm4, %v3253_v63, %v3187_v11 }
 0x348   : > { %v7476_v50 = vpop.f32.mrb[40].mxu0 }
 0x349   : > { %v7479_v12 = vpop.f32.mrb[41].mxu0  ;;  %5082 = vmatmul.mubr.msk.f32.gmra.mrb[30].mxu1 %vm2132_vm5, %v3283_v51 }
 0x34a   : > { %v3015_v26 = vpop.permute.xlu1 %3014  ;;  %5084 = vmatprep.mubr.msk.f32.mxu1 %vm2132_vm5, %v3284_v13  ;;  %v3013_v41 = vpop.permute.xlu0 %3012 }
 0x34b   : > { %v3255_v44 = vsel %vm892_vm0, %v7156_v34, %v3015_v26  ;;  %v3254_v25 = vsel %vm892_vm0, %v7162_v16, %v3013_v41  ;;  %v3761_v34 = vld [vmem:[%s7765_s6 + $0x18] sm:$0xff] }
 0x34c   : > { %v5286_v27 = vpack.c.bf16 %v3761_v34, %v3760_v54 }
 0x34d   : > { %5085 = vmatmul.mubr.msk.f32.gmra.mrb[32].mxu1 %vm2132_vm5, %v3285_v42 }
 0x34e   : > { %v3191_v62 = vpop.permute.xlu1 %3190  ;;  %v3189_v36 = vpop.permute.xlu0 %3188  ;;  %5287 = vmatprep.subr.bf16.mxu0 %v5286_v27 }
 0x34f   : > { %v3287_v6 = vsel %vm1561_vm4, %v3255_v44, %v3191_v62  ;;  %v3286_v57 = vsel %vm1561_vm4, %v3254_v25, %v3189_v36  ;;  %5289 = vmatpush3.bf16.msra.mxu0 %v5286_v27 }
 0x350   : > { %5087 = vmatprep.mubr.msk.f32.mxu1 %vm2132_vm5, %v3286_v57 }
 0x351   : > { %5088 = vmatmul.mubr.msk.f32.gmra.mrb[34].mxu1 %vm2132_vm5, %v3287_v6 }
 0x360   : > { %v5059_v16 = vpop.f32.mrb[42].mxu0 }
 0x361   : > { %v3513_v43 = vpop.f32.mrb[43].mxu0 }
 0x378   : > { %v7501_v4 = vpop.f32.mrb[44].mxu0 }
 0x379   : > { %v7503_v45 = vpop.f32.mrb[45].mxu0 }
 0x390   : > { %v7505_v8 = vpop.f32.mrb[46].mxu0 }
 0x391   : > { %v7507_v30 = vpop.f32.mrb[47].mxu0 }
 0x3d4   : > { %v4972_v1 = vpop.f32.mrb[4].mxu1 }
 0x3d5   : > { %v5302_v60 = vadd.f32 %v7213_v7, %v4972_v1  ;;  %v2616_v10 = vpop.f32.mrb[5].mxu1 }
 0x3d6   : > { %v5303_v0 = vadd.f32 %v7215_v2, %v2616_v10 }
 0x3d7   : > { %v3662_v37 = vadd.f32 %v5302_v60, %v7512_v39  ;;  %v7517_v17 = vpop.f32.mrb[48].mxu0 }
 0x3d8   : > { %v3661_v56 = vadd.f32 %v5303_v0, %v7512_v39  ;;  %v4975_v14 = vpop.f32.mrb[6].mxu1  ;;  %v7520_v53 = vpop.f32.mrb[49].mxu0 }
 0x3d9   : > { %v5304_v24 = vadd.f32 %v7252_v38, %v4975_v14  ;;  %v2626_v3 = vpop.f32.mrb[7].mxu1  ;;  %v3694_v40 = vmax.f32 %v3662_v37, 0.0 }
 0x3da   : > { %v3693_v49 = vmax.f32 %v3661_v56, 0.0  ;;  %v5305_v20 = vadd.f32 %v7258_v29, %v2626_v3 }
 0x3db   : > { %v3664_v7 = vadd.f32 %v5304_v24, %v7512_v39 }
 0x3dc   : > { %v3663_v2 = vadd.f32 %v5305_v20, %v7512_v39  ;;  %v4978_v33 = vpop.f32.mrb[8].mxu1  ;;  %5098 = vmatprep.mubr.msk.f32.mxu0 %vm892_vm0, %v3693_v49 }
 0x3dd   : > { %v5306_v59 = vadd.f32 %v7371_v35, %v4978_v33  ;;  %v2636_v9 = vpop.f32.mrb[9].mxu1  ;;  %5099 = vmatmul.mubr.msk.f32.vlgmr.msra.gmra.mrb[54].mxu0 %vm892_vm0, %v3694_v40  ;;  %v3696_v48 = vmax.f32 %v3664_v7, 0.0 }
 0x3de   : > { %v3695_v47 = vmax.f32 %v3663_v2, 0.0  ;;  %v5307_v38 = vadd.f32 %v7375_v23, %v2636_v9 }
 0x3df   : > { %v3666_v21 = vadd.f32 %v5306_v59, %v7512_v39 }
 0x3e0   : > { %v3665_v29 = vadd.f32 %v5307_v38, %v7512_v39  ;;  %v4981_v46 = vpop.f32.mrb[10].mxu1  ;;  %5101 = vmatprep.mubr.msk.f32.mxu0 %vm892_vm0, %v3695_v47 }
 0x3e1   : > { %v5308_v19 = vadd.f32 %v7418_v58, %v4981_v46  ;;  %v2646_v28 = vpop.f32.mrb[11].mxu1  ;;  %5102 = vmatmul.mubr.msk.f32.gmra.mrb[56].mxu0 %vm892_vm0, %v3696_v48  ;;  %v3698_v52 = vmax.f32 %v3666_v21, 0.0 }
 0x3e2   : > { %v3697_v35 = vmax.f32 %v3665_v29, 0.0  ;;  %v5309_v22 = vadd.f32 %v7422_v15, %v2646_v28 }
 0x3e3   : > { %v3668_v31 = vadd.f32 %v5308_v19, %v7512_v39 }
 0x3e4   : > { %v3667_v23 = vadd.f32 %v5309_v22, %v7512_v39  ;;  %v4984_v32 = vpop.f32.mrb[12].mxu1  ;;  %5104 = vmatprep.mubr.msk.f32.mxu0 %vm892_vm0, %v3697_v35 }
 0x3e5   : > { %v5310_v55 = vadd.f32 %v7476_v50, %v4984_v32  ;;  %v2656_v11 = vpop.f32.mrb[13].mxu1  ;;  %5105 = vmatmul.mubr.msk.f32.gmra.mrb[58].mxu0 %vm892_vm0, %v3698_v52  ;;  %v3700_v18 = vmax.f32 %v3668_v31, 0.0 }
 0x3e6   : > { %v3699_v58 = vmax.f32 %v3667_v23, 0.0  ;;  %v5311_v5 = vadd.f32 %v7479_v12, %v2656_v11 }
 0x3e7   : > { %v3670_v51 = vadd.f32 %v5310_v55, %v7512_v39  ;;  %v5071_v15 = vpop.f32.mrb[50].mxu0 }
 0x3e8   : > { %v3669_v61 = vadd.f32 %v5311_v5, %v7512_v39  ;;  %v4987_v13 = vpop.f32.mrb[14].mxu1  ;;  %v3553_v26 = vpop.f32.mrb[51].mxu0  ;;  %5107 = vmatprep.mubr.msk.f32.mxu0 %vm892_vm0, %v3699_v58 }
 0x3e9   : > { %v5312_v41 = vadd.f32 %v5059_v16, %v4987_v13  ;;  %v2666_v63 = vpop.f32.mrb[15].mxu1  ;;  %5108 = vmatmul.mubr.msk.f32.gmra.mrb[60].mxu0 %vm892_vm0, %v3700_v18  ;;  %v3702_v44 = vmax.f32 %v3670_v51, 0.0 }
 0x3ea   : > { %v3701_v50 = vmax.f32 %v3669_v61, 0.0  ;;  %v5313_v42 = vadd.f32 %v3513_v43, %v2666_v63 }
 0x3eb   : > { %v3672_v25 = vadd.f32 %v5312_v41, %v7512_v39 }
 0x3ec   : > { %v3671_v12 = vadd.f32 %v5313_v42, %v7512_v39  ;;  %v4990_v62 = vpop.f32.mrb[16].mxu1  ;;  %5110 = vmatprep.mubr.msk.f32.mxu0 %vm892_vm0, %v3701_v50 }
 0x3ed   : > { %v5314_v36 = vadd.f32 %v7501_v4, %v4990_v62  ;;  %v2676_v6 = vpop.f32.mrb[17].mxu1  ;;  %5111 = vmatmul.mubr.msk.f32.gmra.mrb[62].mxu0 %vm892_vm0, %v3702_v44  ;;  %v3704_v34 = vmax.f32 %v3672_v25, 0.0 }
 0x3ee   : > { %v3703_v57 = vmax.f32 %v3671_v12, 0.0  ;;  %v5315_v54 = vadd.f32 %v7503_v45, %v2676_v6 }
 0x3ef   : > { %v3674_v27 = vadd.f32 %v5314_v36, %v7512_v39 }
 0x3f0   : > { %v3673_v16 = vadd.f32 %v5315_v54, %v7512_v39  ;;  %v4993_v43 = vpop.f32.mrb[18].mxu1  ;;  %5113 = vmatprep.mubr.msk.f32.mxu0 %vm892_vm0, %v3703_v57 }
 0x3f1   : > { %v5316_v1 = vadd.f32 %v7505_v8, %v4993_v43  ;;  %v2686_v60 = vpop.f32.mrb[19].mxu1  ;;  %5114 = vmatmul.mubr.msk.f32.gmra.mrb[64].mxu0 %vm892_vm0, %v3704_v34  ;;  %v3706_v0 = vmax.f32 %v3674_v27, 0.0 }
 0x3f2   : > { %v3705_v4 = vmax.f32 %v3673_v16, 0.0  ;;  %v5317_v10 = vadd.f32 %v7507_v30, %v2686_v60 }
 0x3f3   : > { %v3676_v37 = vadd.f32 %v5316_v1, %v7512_v39 }
 0x3f4   : > { %v3675_v45 = vadd.f32 %v5317_v10, %v7512_v39  ;;  %v4996_v56 = vpop.f32.mrb[20].mxu1  ;;  %5116 = vmatprep.mubr.msk.f32.mxu0 %vm892_vm0, %v3705_v4  ;;  %v7601_v4 = vld [vmem:[%s7766_s7] ss:$0 sm:$0xff]  ;;  %v4452_v10 = vld [vmem:[%s5839_s24 + $0x18] sm:$0xff] }
 0x3f5   : > { %v5318_v14 = vadd.f32 %v7517_v17, %v4996_v56  ;;  %v2696_v24 = vpop.f32.mrb[21].mxu1  ;;  %5117 = vmatmul.mubr.msk.f32.gmra.mrb[66].mxu0 %vm892_vm0, %v3706_v0  ;;  %v3708_v49 = vmax.f32 %v3676_v37, 0.0  ;;  %v4451_v37 = vld [vmem:[%s5839_s24 + $0x10] sm:$0xff] }
 0x3f6   : > { %v3707_v8 = vmax.f32 %v3675_v45, 0.0  ;;  %v5319_v3 = vadd.f32 %v7520_v53, %v2696_v24 }
 0x3f7   : > { %v3678_v20 = vadd.f32 %v5318_v14, %v7512_v39  ;;  %v5074_v30 = vpop.f32.mrb[52].mxu0 }
 0x3f8   : > { %v3677_v40 = vadd.f32 %v5319_v3, %v7512_v39  ;;  %v4999_v7 = vpop.f32.mrb[22].mxu1  ;;  %v3563_v2 = vpop.f32.mrb[53].mxu0  ;;  %5119 = vmatprep.mubr.msk.f32.mxu0 %vm892_vm0, %v3707_v8  ;;  %v4454_v8 = vld [vmem:[%s5839_s24 + $0x28] sm:$0xff] }
 0x3f9   : > { %v5320_v33 = vadd.f32 %v5071_v15, %v4999_v7  ;;  %v2706_v59 = vpop.f32.mrb[23].mxu1  ;;  %5120 = vmatmul.mubr.msk.f32.gmra.mrb[68].mxu0 %vm892_vm0, %v3708_v49  ;;  %v3710_v47 = vmax.f32 %v3678_v20, 0.0 }
 0x3fa   : > { %v3709_v17 = vmax.f32 %v3677_v40, 0.0  ;;  %v5321_v9 = vadd.f32 %v3553_v26, %v2706_v59 }
 0x3fb   : > { %v3680_v38 = vadd.f32 %v5320_v33, %v7512_v39 }
 0x3fc   : > { %v3679_v53 = vadd.f32 %v5321_v9, %v7512_v39  ;;  %v5002_v48 = vpop.f32.mrb[24].mxu1  ;;  %5122 = vmatprep.mubr.msk.f32.mxu0 %vm892_vm0, %v3709_v17  ;;  %v4456_v17 = vld [vmem:[%s5839_s24 + $0x38] sm:$0xff] }
 0x3fd   : > { %v5322_v21 = vadd.f32 %v5074_v30, %v5002_v48  ;;  %v2716_v29 = vpop.f32.mrb[25].mxu1  ;;  %5123 = vmatmul.mubr.msk.f32.gmra.mrb[70].mxu0 %vm892_vm0, %v3710_v47  ;;  %v3712_v28 = vmax.f32 %v3680_v38, 0.0  ;;  %v4453_v30 = vld [vmem:[%s5839_s24 + $0x20] sm:$0xff] }
 0x3fe   : > { %v3711_v46 = vmax.f32 %v3679_v53, 0.0  ;;  %v5323_v19 = vadd.f32 %v3563_v2, %v2716_v29  ;;  %v4455_v53 = vld [vmem:[%s5839_s24 + $0x30] sm:$0xff] }
 0x3ff   : > { %v3682_v35 = vadd.f32 %v5322_v21, %v7512_v39 }
 0x400   : > { %v3681_v22 = vadd.f32 %v5323_v19, %v7512_v39  ;;  %5125 = vmatprep.mubr.msk.f32.mxu0 %vm892_vm0, %v3711_v46 }
 0x401   : > { %5126 = vmatmul.mubr.msk.f32.gmra.mrb[72].mxu0 %vm892_vm0, %v3712_v28  ;;  %v3714_v31 = vmax.f32 %v3682_v35, 0.0  ;;  %v4458_v28 = vld [vmem:[%s5839_s24 + $0x48] sm:$0xff] }
 0x402   : > { %v3713_v52 = vmax.f32 %v3681_v22, 0.0 }
 0x404   : > { %5128 = vmatprep.mubr.msk.f32.mxu0 %vm892_vm0, %v3713_v52 }
 0x405   : > { %5129 = vmatmul.mubr.msk.f32.gmra.mrb[74].mxu0 %vm892_vm0, %v3714_v31  ;;  %v4457_v31 = vld [vmem:[%s5839_s24 + $0x40] sm:$0xff] }
 0x414   : > { %v5077_v23 = vpop.f32.mrb[26].mxu1 }
 0x415   : > { %v3684_v32 = vadd.f32 %v5077_v23, %v7512_v39  ;;  %v3573_v55 = vpop.f32.mrb[27].mxu1 }
 0x416   : > { %v3683_v11 = vadd.f32 %v7512_v39, %v3573_v55 }
 0x417   : > { %v3716_v18 = vmax.f32 %v3684_v32, 0.0 }
 0x418   : > { %v3715_v58 = vmax.f32 %v3683_v11, 0.0  ;;  %v5080_v5 = vpop.f32.mrb[28].mxu1 }
 0x419   : > { %v3686_v51 = vadd.f32 %v5080_v5, %v7512_v39  ;;  %v3583_v15 = vpop.f32.mrb[29].mxu1  ;;  %v4460_v5 = vld [vmem:[%s5839_s24 + $0x58] sm:$0xff] }
 0x41a   : > { %v3685_v61 = vadd.f32 %v7512_v39, %v3583_v15  ;;  %5131 = vmatprep.mubr.msk.f32.mxu0 %vm892_vm0, %v3715_v58 }
 0x41b   : > { %5132 = vmatmul.mubr.msk.f32.gmra.mrb[76].mxu0 %vm892_vm0, %v3716_v18  ;;  %v3718_v41 = vmax.f32 %v3686_v51, 0.0 }
 0x41c   : > { %v3717_v13 = vmax.f32 %v3685_v61, 0.0  ;;  %v5083_v26 = vpop.f32.mrb[30].mxu1  ;;  %v4459_v61 = vld [vmem:[%s5839_s24 + $0x50] sm:$0xff] }
 0x41d   : > { %v3688_v63 = vadd.f32 %v5083_v26, %v7512_v39  ;;  %v3593_v50 = vpop.f32.mrb[31].mxu1 }
 0x41e   : > { %v3687_v42 = vadd.f32 %v7512_v39, %v3593_v50  ;;  %5134 = vmatprep.mubr.msk.f32.mxu0 %vm892_vm0, %v3717_v13 }
 0x41f   : > { %5135 = vmatmul.mubr.msk.f32.gmra.mrb[78].mxu0 %vm892_vm0, %v3718_v41  ;;  %v3720_v12 = vmax.f32 %v3688_v63, 0.0 }
 0x420   : > { %v3719_v44 = vmax.f32 %v3687_v42, 0.0  ;;  %v5086_v25 = vpop.f32.mrb[32].mxu1  ;;  %v4462_v42 = vld [vmem:[%s5839_s24 + $0x68] sm:$0xff] }
 0x421   : > { %v3690_v62 = vadd.f32 %v5086_v25, %v7512_v39  ;;  %v3603_v36 = vpop.f32.mrb[33].mxu1 }
 0x422   : > { %v3689_v6 = vadd.f32 %v7512_v39, %v3603_v36  ;;  %5137 = vmatprep.mubr.msk.f32.mxu0 %vm892_vm0, %v3719_v44 }
 0x423   : > { %5138 = vmatmul.mubr.msk.f32.gmra.mrb[80].mxu0 %vm892_vm0, %v3720_v12  ;;  %v3722_v34 = vmax.f32 %v3690_v62, 0.0  ;;  %v4461_v62 = vld [vmem:[%s5839_s24 + $0x60] sm:$0xff] }
 0x424   : > { %v3721_v57 = vmax.f32 %v3689_v6, 0.0  ;;  %v5089_v54 = vpop.f32.mrb[34].mxu1 }
 0x425   : > { %v3692_v27 = vadd.f32 %v5089_v54, %v7512_v39  ;;  %v3613_v16 = vpop.f32.mrb[35].mxu1 }
 0x426   : > { %v3691_v43 = vadd.f32 %v7512_v39, %v3613_v16  ;;  %5140 = vmatprep.mubr.msk.f32.mxu0 %vm892_vm0, %v3721_v57 }
 0x427   : > { %5141 = vmatmul.mubr.msk.f32.gmra.mrb[82].mxu0 %vm892_vm0, %v3722_v34  ;;  %v3724_v60 = vmax.f32 %v3692_v27, 0.0  ;;  %v4464_v27 = vld [vmem:[%s5839_s24 + $0x78] sm:$0xff] }
 0x428   : > { %v3723_v1 = vmax.f32 %v3691_v43, 0.0 }
 0x42a   : > { %5143 = vmatprep.mubr.msk.f32.mxu0 %vm892_vm0, %v3723_v1 }
 0x42b   : > { %5144 = vmatmul.mubr.msk.f32.gmra.mrb[84].mxu0 %vm892_vm0, %v3724_v60  ;;  %v4463_v60 = vld [vmem:[%s5839_s24 + $0x70] sm:$0xff] }
 0x4b0   : > { %v5100_v39 = vpop.f32.mrb[54].mxu0 }
 0x4b1   : > { %v3937_v0 = vadd.f32 %v5100_v39, %v7601_v4  ;;  %v3931_v45 = vpop.f32.mrb[55].mxu0 }
 0x4b2   : > { %v3932_v56 = vadd.f32 %v7601_v4, %v3931_v45 }
 0x4b3   : > { %v4091_v14 = vadd.f32 %v4452_v10, %v3937_v0 }
 0x4b4   : > { %v4090_v24 = vadd.f32 %v4451_v37, %v3932_v56  ;;  %v5103_v3 = vpop.f32.mrb[56].mxu0  ;;  %v4466_v56 = vld [vmem:[%s5839_s24 + $0x88] sm:$0xff] }
 0x4b5   : > { %v4123_v49 = vmax.f32 %v4091_v14, 0.0  ;;  %v3947_v20 = vadd.f32 %v5103_v3, %v7601_v4  ;;  %v3941_v40 = vpop.f32.mrb[57].mxu0  ;;  %v4465_v3 = vld [vmem:[%s5839_s24 + $0x80] sm:$0xff] }
 0x4b6   : > { %v4122_v7 = vmax.f32 %v4090_v24, 0.0  ;;  %v3942_v2 = vadd.f32 %v7601_v4, %v3941_v40 }
 0x4b7   : > { %4155 = vst [vmem:[%s7613_s25 + $0x8] sm:$0xff] %v4123_v49  ;;  %v4093_v33 = vadd.f32 %v4454_v8, %v3947_v20 }
 0x4b8   : > { %4154 = vst [vmem:[%s7613_s25] sm:$0xff] %v4122_v7  ;;  %v4092_v59 = vadd.f32 %v4453_v30, %v3942_v2  ;;  %v5106_v9 = vpop.f32.mrb[58].mxu0  ;;  %v4468_v2 = vld [vmem:[%s5839_s24 + $0x98] sm:$0xff] }
 0x4b9   : > { %v4125_v47 = vmax.f32 %v4093_v33, 0.0  ;;  %v3957_v38 = vadd.f32 %v5106_v9, %v7601_v4  ;;  %v3951_v48 = vpop.f32.mrb[59].mxu0  ;;  %v4467_v9 = vld [vmem:[%s5839_s24 + $0x90] sm:$0xff] }
 0x4ba   : > { %v4124_v21 = vmax.f32 %v4092_v59, 0.0  ;;  %v3952_v29 = vadd.f32 %v7601_v4, %v3951_v48 }
 0x4bb   : > { %4157 = vst [vmem:[%s7613_s25 + $0x18] sm:$0xff] %v4125_v47  ;;  %v4095_v46 = vadd.f32 %v4456_v17, %v3957_v38 }
 0x4bc   : > { %4156 = vst [vmem:[%s7613_s25 + $0x10] sm:$0xff] %v4124_v21  ;;  %v4094_v19 = vadd.f32 %v4455_v53, %v3952_v29  ;;  %v5109_v35 = vpop.f32.mrb[60].mxu0  ;;  %v4470_v29 = vld [vmem:[%s5839_s24 + $0xa8] sm:$0xff] }
 0x4bd   : > { %v4127_v22 = vmax.f32 %v4095_v46, 0.0  ;;  %v3967_v52 = vadd.f32 %v5109_v35, %v7601_v4  ;;  %v3961_v23 = vpop.f32.mrb[61].mxu0  ;;  %v4469_v35 = vld [vmem:[%s5839_s24 + $0xa0] sm:$0xff] }
 0x4be   : > { %v4126_v32 = vmax.f32 %v4094_v19, 0.0  ;;  %v3962_v55 = vadd.f32 %v7601_v4, %v3961_v23 }
 0x4bf   : > { %4159 = vst [vmem:[%s7613_s25 + $0x28] sm:$0xff] %v4127_v22  ;;  %v4097_v11 = vadd.f32 %v4458_v28, %v3967_v52 }
 0x4c0   : > { %4158 = vst [vmem:[%s7613_s25 + $0x20] sm:$0xff] %v4126_v32  ;;  %v4096_v58 = vadd.f32 %v4457_v31, %v3962_v55  ;;  %v5112_v18 = vpop.f32.mrb[62].mxu0  ;;  %v4472_v55 = vld [vmem:[%s5839_s24 + $0xb8] sm:$0xff] }
 0x4c1   : > { %v4129_v51 = vmax.f32 %v4097_v11, 0.0  ;;  %v3977_v15 = vadd.f32 %v5112_v18, %v7601_v4  ;;  %v3971_v13 = vpop.f32.mrb[63].mxu0  ;;  %v4471_v18 = vld [vmem:[%s5839_s24 + $0xb0] sm:$0xff] }
 0x4c2   : > { %v4128_v26 = vmax.f32 %v4096_v58, 0.0  ;;  %v3972_v41 = vadd.f32 %v7601_v4, %v3971_v13 }
 0x4c3   : > { %4161 = vst [vmem:[%s7613_s25 + $0x38] sm:$0xff] %v4129_v51  ;;  %v4099_v63 = vadd.f32 %v4460_v5, %v3977_v15 }
 0x4c4   : > { %4160 = vst [vmem:[%s7613_s25 + $0x30] sm:$0xff] %v4128_v26  ;;  %v4098_v50 = vadd.f32 %v4459_v61, %v3972_v41  ;;  %v5115_v44 = vpop.f32.mrb[64].mxu0 }
 0x4c5   : > { %v4131_v25 = vmax.f32 %v4099_v63, 0.0  ;;  %v3987_v12 = vadd.f32 %v5115_v44, %v7601_v4  ;;  %v3981_v36 = vpop.f32.mrb[65].mxu0 }
 0x4c6   : > { %v4130_v6 = vmax.f32 %v4098_v50, 0.0  ;;  %v3982_v57 = vadd.f32 %v7601_v4, %v3981_v36  ;;  %v4474_v50 = vld [vmem:[%s5839_s24 + $0xc8] sm:$0xff] }
 0x4c7   : > { %4163 = vst [vmem:[%s7613_s25 + $0x48] sm:$0xff] %v4131_v25  ;;  %v4101_v54 = vadd.f32 %v4462_v42, %v3987_v12  ;;  %v4473_v25 = vld [vmem:[%s5839_s24 + $0xc0] sm:$0xff] }
 0x4c8   : > { %4162 = vst [vmem:[%s7613_s25 + $0x40] sm:$0xff] %v4130_v6  ;;  %v4100_v34 = vadd.f32 %v4461_v62, %v3982_v57  ;;  %v5118_v16 = vpop.f32.mrb[66].mxu0  ;;  %v4476_v57 = vld [vmem:[%s5839_s24 + $0xd8] sm:$0xff] }
 0x4c9   : > { %v4133_v43 = vmax.f32 %v4101_v54, 0.0  ;;  %v3997_v1 = vadd.f32 %v5118_v16, %v7601_v4  ;;  %v3991_v10 = vpop.f32.mrb[67].mxu0  ;;  %v4475_v16 = vld [vmem:[%s5839_s24 + $0xd0] sm:$0xff] }
 0x4ca   : > { %v4132_v39 = vmax.f32 %v4100_v34, 0.0  ;;  %v3992_v0 = vadd.f32 %v7601_v4, %v3991_v10 }
 0x4cb   : > { %4165 = vst [vmem:[%s7613_s25 + $0x58] sm:$0xff] %v4133_v43  ;;  %v4103_v37 = vadd.f32 %v4464_v27, %v3997_v1 }
 0x4cc   : > { %4164 = vst [vmem:[%s7613_s25 + $0x50] sm:$0xff] %v4132_v39  ;;  %v4102_v45 = vadd.f32 %v4463_v60, %v3992_v0  ;;  %v5121_v14 = vpop.f32.mrb[68].mxu0  ;;  %v4478_v0 = vld [vmem:[%s5839_s24 + $0xe8] sm:$0xff] }
 0x4cd   : > { %v4135_v24 = vmax.f32 %v4103_v37, 0.0  ;;  %v4007_v8 = vadd.f32 %v5121_v14, %v7601_v4  ;;  %v4001_v49 = vpop.f32.mrb[69].mxu0  ;;  %v4477_v14 = vld [vmem:[%s5839_s24 + $0xe0] sm:$0xff] }
 0x4ce   : > { %v4134_v20 = vmax.f32 %v4102_v45, 0.0  ;;  %v4002_v30 = vadd.f32 %v7601_v4, %v4001_v49 }
 0x4cf   : > { %4167 = vst [vmem:[%s7613_s25 + $0x68] sm:$0xff] %v4135_v24  ;;  %v4105_v40 = vadd.f32 %v4466_v56, %v4007_v8 }
 0x4d0   : > { %4166 = vst [vmem:[%s7613_s25 + $0x60] sm:$0xff] %v4134_v20  ;;  %v4104_v7 = vadd.f32 %v4465_v3, %v4002_v30  ;;  %v5124_v33 = vpop.f32.mrb[70].mxu0  ;;  %v4480_v30 = vld [vmem:[%s5839_s24 + $0xf8] sm:$0xff] }
 0x4d1   : > { %v4137_v59 = vmax.f32 %v4105_v40, 0.0  ;;  %v4017_v17 = vadd.f32 %v5124_v33, %v7601_v4  ;;  %v4011_v47 = vpop.f32.mrb[71].mxu0  ;;  %v4479_v33 = vld [vmem:[%s5839_s24 + $0xf0] sm:$0xff]  ;;  %s4203_s24 = sshll.u32 %s7613_s25, 4  ;;  %s7708_s24 = int_to_ptr.vmem [resolvable:$true] %s4203_s24 }
 0x4d2   : > { %v4136_v38 = vmax.f32 %v4104_v7, 0.0  ;;  %v4012_v53 = vadd.f32 %v7601_v4, %v4011_v47  ;;  %p5533_p7 = scmp.lt.s32.totalorder %s7708_s24, %s5531_s29 }
 0x4d3   : > { %4169 = vst [vmem:[%s7613_s25 + $0x78] sm:$0xff] %v4137_v59  ;;  %v4107_v48 = vadd.f32 %v4468_v2, %v4017_v17 }
 0x4d4   : > { %4168 = vst [vmem:[%s7613_s25 + $0x70] sm:$0xff] %v4136_v38  ;;  %v4106_v21 = vadd.f32 %v4467_v9, %v4012_v53  ;;  %v5127_v46 = vpop.f32.mrb[72].mxu0  ;;  %v3757_v53 = vld [vmem:[%s5847_s20 + $0x8] sm:$0xff] }
 0x4d5   : > { %v4139_v19 = vmax.f32 %v4107_v48, 0.0  ;;  %v4027_v28 = vadd.f32 %v5127_v46, %v7601_v4  ;;  %v4021_v22 = vpop.f32.mrb[73].mxu0  ;;  %v3756_v46 = vld [vmem:[%s5847_s20] sm:$0xff]  ;;  %s5526_s20 = scalar_lea.vmem %s7708_s24, 4096 }
 0x4d6   : > { %v4138_v52 = vmax.f32 %v4106_v21, 0.0  ;;  %v4022_v31 = vadd.f32 %v7601_v4, %v4021_v22  ;;  %p5527_p0 = scmp.ne.s32.totalorder %s7708_s24, %s5526_s20  ;;  %p5534_p10 = scmp.lt.s32.totalorder %s5532_s17, %s5526_s20 }
 0x4d7   : > { %4171 = vst [vmem:[%s7613_s25 + $0x88] sm:$0xff] %v4139_v19  ;;  %v4109_v23 = vadd.f32 %v4470_v29, %v4027_v28 }
 0x4d8   : > { %4170 = vst [vmem:[%s7613_s25 + $0x80] sm:$0xff] %v4138_v52  ;;  %v4108_v32 = vadd.f32 %v4469_v35, %v4022_v31  ;;  %v5130_v11 = vpop.f32.mrb[74].mxu0  ;;  %p5528_p12 = pnand %p5527_p0, %p7874_p3  ;;  %p5535_p9 = por %p5534_p10, %p5533_p7 }
 0x4d9   : > { %v4141_v58 = vmax.f32 %v4109_v23, 0.0  ;;  %v4037_v5 = vadd.f32 %v5130_v11, %v7601_v4  ;;  %v4031_v51 = vpop.f32.mrb[75].mxu0 }
 0x4da   : > { %v4140_v15 = vmax.f32 %v4108_v32, 0.0  ;;  %v4032_v61 = vadd.f32 %v7601_v4, %v4031_v51  ;;  %p5529_p13 = pneg %p5528_p12 }
 0x4db   : > { %4173 = vst [vmem:[%s7613_s25 + $0x98] sm:$0xff] %v4141_v58  ;;  %v4111_v13 = vadd.f32 %v4472_v55, %v4037_v5 }
 0x4dc   : > { %4172 = vst [vmem:[%s7613_s25 + $0x90] sm:$0xff] %v4140_v15  ;;  %v4110_v26 = vadd.f32 %v4471_v18, %v4032_v61  ;;  %p5536_p11 = pnand %p5535_p9, %p5529_p13 }
 0x4dd   : > { %v4143_v41 = vmax.f32 %v4111_v13, 0.0 }
 0x4de   : > { %v4142_v63 = vmax.f32 %v4110_v26, 0.0 }
 0x4df   : > { %4175 = vst [vmem:[%s7613_s25 + $0xa8] sm:$0xff] %v4143_v41 }
 0x4e0   : > { %4174 = vst [vmem:[%s7613_s25 + $0xa0] sm:$0xff] %v4142_v63 }
 0x4ee   : > { %v5133_v42 = vpop.f32.mrb[76].mxu0 }
 0x4ef   : > { %v4047_v44 = vadd.f32 %v5133_v42, %v7601_v4  ;;  %v4041_v12 = vpop.f32.mrb[77].mxu0 }
 0x4f0   : > { %v4042_v62 = vadd.f32 %v7601_v4, %v4041_v12 }
 0x4f1   : > { %v4113_v36 = vadd.f32 %v4474_v50, %v4047_v44 }
 0x4f2   : > { %v4112_v6 = vadd.f32 %v4473_v25, %v4042_v62  ;;  %v5136_v54 = vpop.f32.mrb[78].mxu0 }
 0x4f3   : > { %v4145_v34 = vmax.f32 %v4113_v36, 0.0  ;;  %v4057_v27 = vadd.f32 %v5136_v54, %v7601_v4  ;;  %v4051_v43 = vpop.f32.mrb[79].mxu0 }
 0x4f4   : > { %v4144_v1 = vmax.f32 %v4112_v6, 0.0  ;;  %v4052_v60 = vadd.f32 %v7601_v4, %v4051_v43 }
 0x4f5   : > { %4177 = vst [vmem:[%s7613_s25 + $0xb8] sm:$0xff] %v4145_v34  ;;  %v4115_v10 = vadd.f32 %v4476_v57, %v4057_v27 }
 0x4f6   : > { %4176 = vst [vmem:[%s7613_s25 + $0xb0] sm:$0xff] %v4144_v1  ;;  %v4114_v39 = vadd.f32 %v4475_v16, %v4052_v60  ;;  %v5139_v37 = vpop.f32.mrb[80].mxu0 }
 0x4f7   : > { %v4147_v45 = vmax.f32 %v4115_v10, 0.0  ;;  %v4067_v56 = vadd.f32 %v5139_v37, %v7601_v4  ;;  %v4061_v24 = vpop.f32.mrb[81].mxu0 }
 0x4f8   : > { %v4146_v8 = vmax.f32 %v4114_v39, 0.0  ;;  %v4062_v3 = vadd.f32 %v7601_v4, %v4061_v24 }
 0x4f9   : > { %4179 = vst [vmem:[%s7613_s25 + $0xc8] sm:$0xff] %v4147_v45  ;;  %v4117_v49 = vadd.f32 %v4478_v0, %v4067_v56 }
 0x4fa   : > { %4178 = vst [vmem:[%s7613_s25 + $0xc0] sm:$0xff] %v4146_v8  ;;  %v4116_v20 = vadd.f32 %v4477_v14, %v4062_v3  ;;  %v5142_v40 = vpop.f32.mrb[82].mxu0 }
 0x4fb   : > { %v4149_v7 = vmax.f32 %v4117_v49, 0.0  ;;  %v4077_v2 = vadd.f32 %v5142_v40, %v7601_v4  ;;  %v4071_v59 = vpop.f32.mrb[83].mxu0 }
 0x4fc   : > { %v4148_v17 = vmax.f32 %v4116_v20, 0.0  ;;  %v4072_v9 = vadd.f32 %v7601_v4, %v4071_v59 }
 0x4fd   : > { %4181 = vst [vmem:[%s7613_s25 + $0xd8] sm:$0xff] %v4149_v7  ;;  %v4119_v47 = vadd.f32 %v4480_v30, %v4077_v2 }
 0x4fe   : > { %4180 = vst [vmem:[%s7613_s25 + $0xd0] sm:$0xff] %v4148_v17  ;;  %v4118_v38 = vadd.f32 %v4479_v33, %v4072_v9  ;;  %v5145_v48 = vpop.f32.mrb[84].mxu0 }
 0x4ff   : > { %v4151_v21 = vmax.f32 %v4119_v47, 0.0  ;;  %v4087_v29 = vadd.f32 %v5145_v48, %v7601_v4  ;;  %v4081_v19 = vpop.f32.mrb[85].mxu0 }
 0x500   : > { %v4150_v28 = vmax.f32 %v4118_v38, 0.0  ;;  %v4082_v35 = vadd.f32 %v7601_v4, %v4081_v19 }
 0x501   : > { %4183 = vst [vmem:[%s7613_s25 + $0xe8] sm:$0xff] %v4151_v21  ;;  %v4121_v22 = vadd.f32 %v4087_v29, %v3757_v53 }
 0x502   : > { %4182 = vst [vmem:[%s7613_s25 + $0xe0] sm:$0xff] %v4150_v28  ;;  %v4120_v52 = vadd.f32 %v4082_v35, %v3756_v46 }
 0x503   : > { %v4153_v31 = vmax.f32 %v4121_v22, 0.0 }
 0x504   : > { %v4152_v23 = vmax.f32 %v4120_v52, 0.0 }
 0x505   : > { %4185 = vst [vmem:[%s7613_s25 + $0xf8] sm:$0xff] %v4153_v31 }
 0x506   : > { %4184 = vst [vmem:[%s7613_s25 + $0xf0] sm:$0xff] %v4152_v23 }
 0x507   : > { %5539 = shalt.err (!%p5536_p11)
}
 0x508   : > { %s5540_s14 = scalar_lea.hbm %s7706_s23, 4096  ;;  %s5544_s19 = scalar_lea.hbm %s7767_s8, 8192 }
 0x509   : > { %p5541_p1 = scmp.ne.s32.totalorder %s7706_s23, %s5540_s14  ;;  %p5545_p4 = scmp.lt.u32.totalorder %s7706_s23, %s7767_s8 }
 0x50a   : > { %p5546_p6 = scmp.lt.u32.totalorder %s5544_s19, %s5540_s14  ;;  %p5548_p0 = scmp.lt.u32.totalorder %s5540_s14, %s7706_s23 }
 0x50b   : > { %p5542_p5 = pnand %p5541_p1, %p7874_p3 }
 0x50c   : > { %p5547_p8 = por %p5546_p6, %p5545_p4 }
 0x50d   : > { %p5543_p2 = pneg %p5542_p5 }
 0x50e   : > { %p5549_p12 = por %p5548_p0, %p5547_p8 }
 0x510   : > { %p5550_p13 = pnand %p5549_p12, %p5543_p2 }
 0x512   : > { %5553 = shalt.err (!%p5550_p13)
}
 0x513   : > { %s5622_s25 = smov 128   ;;  %s5623_s22 = smov 8  }
 0x514   : > { %5371 = dma.vmem_to_hbm [thread:$0]  (%p7874_p3), %s7708_s24, 4096, %s7706_s23, %s4187_s30, %s5622_s25, %s5622_s25, %s5623_s22  }
 0x515 PF: > { %s7875_s12 = sld [smem:[#allocation15_spill]]  ;;  %s4218_s16 = sand.u32 1, %s5592_s27  }
 0x516   : > { %p7877_p10 = scmp.ge.s32.totalorder %s5612_s10, 2  ;;  %s4219_s20 = scalar_lea.sflag [#allocation5], %s4218_s16 }
 0x51b   : > { %p7876_p7 = scmp.ne.s32.totalorder %s7875_s12, 0 }
 0x51d   : > { %p5381_p9 = pnand %p7877_p10, %p7876_p7 }
 0x51f   : > { %5587 = dma.done.wait (!%p5381_p9), %s4219_s20, 4096  }
 0x520   : > { %5589 = vsyncadd (!%p5381_p9), %s4219_s20, 4294963200  ;;  %s27_s10 = sadd.s32 1, %s5612_s10   ;;  %s7878_s0 = sld [smem:[#allocation12_spill]] }
 0x521   : > { %p24_p11 = scmp.ge.s32.totalorder %s27_s10, 4   ;;  %s7879_s29 = sld [smem:[#allocation14_spill]] }
 0x522   : > { %s7880_s18 = sld [smem:[#allocation13_spill]]  ;;  %s7881_s27 = smov %s5596_s28 }
 0x523   : > { %s7883_s30 = smov %s5608_s9  ;;  %26 = sbr.rel (!%p24_p11) target bundleno = 10 (0xa), region = 116 }
 0x526   : > { %s7882_s28 = smov %s7878_s0 }
 0x528   : > { %s7884_s9 = smov %s7880_s18 }
 0x52a   :  { %4224 = vsyncpa [#allocation4], 1 }
 0x52b   :  { %4226 = vsyncpa [#allocation4 + $0x1], 1 }
 0x52c   :  { %4227 = vsyncpa [#allocation7], 1 }
 0x52d   :  { %4229 = vsyncpa [#allocation7 + $0x1], 1 }
 0x52e   :  { %4230 = vsyncpa [#allocation5], 1 }
 0x52f   :  { %4232 = vsyncpa [#allocation5 + $0x1], 1 }

</bundles_post_ra>
